<compile_context>
chip_gen: v6e
topology: v6e:2x2x1
jax: 0.10.0
libtpu: 0.0.40
codegen_flags: <defaults>
</compile_context>

<pallas_src>
import jax
import jax.numpy as jnp
from jax import lax
from jax.experimental import pallas as pl
from jax.experimental.pallas import tpu as pltpu


def _round_up(x, m):
    return (x + m - 1) // m * m


def _cdiv(a, b):
    return -(-a // b)


def _chip_caps():
    """Return (vmem_budget_bytes, has_two_tensorcores) for the local chip.

    v5e/v6e: 128 MiB VMEM, 1 TensorCore  -> ~100 MiB budget, no forced M split.
    v7x    :  64 MiB VMEM, 2 TensorCores -> ~42 MiB budget, shard M over TCs.
    Falls back to the conservative (v7x-like) settings if the query fails.
    """
    phys = None
    cores = None
    try:
        info = pltpu.get_tpu_info()
        phys = int(getattr(info, "vmem_capacity_bytes", 0)) or None
        for name in ("num_cores", "core_count", "num_tensorcores"):
            v = getattr(info, name, None)
            if v:
                cores = int(v)
                break
    except Exception:
        pass
    if phys is None:
        phys = 64 << 20                      # conservative default
    if cores is None:
        cores = 2 if phys <= (64 << 20) else 1
    budget = (100 << 20) if phys >= (96 << 20) else (42 << 20)
    return budget, cores >= 2


# ----------------------------- kernels -------------------------------------

def _kernel_single(w_ref, p_ref, shift_ref, o_ref):
    y = jnp.dot(w_ref[...], p_ref[...], preferred_element_type=jnp.float32)
    o_ref[...] = jnp.maximum(y + shift_ref[...], 0.0).astype(o_ref.dtype)


def _kernel_single_res(w_ref, p_ref, shift_ref, skip_ref, o_ref):
    y = jnp.dot(w_ref[...], p_ref[...], preferred_element_type=jnp.float32)
    y = jnp.maximum(y + shift_ref[...], 0.0)
    o_ref[...] = (y + skip_ref[...].astype(jnp.float32)).astype(o_ref.dtype)


def _kernel_ksplit(w_ref, p_ref, shift_ref, o_ref, acc_ref):
    k = pl.program_id(1)
    part = jnp.dot(w_ref[...], p_ref[...], preferred_element_type=jnp.float32)

    @pl.when(k == 0)
    def _():
        acc_ref[...] = part

    @pl.when(k != 0)
    def _():
        acc_ref[...] += part

    @pl.when(k == pl.num_programs(1) - 1)
    def _():
        o_ref[...] = jnp.maximum(acc_ref[...] + shift_ref[...], 0.0).astype(o_ref.dtype)


def _kernel_ksplit_res(w_ref, p_ref, shift_ref, skip_ref, o_ref, acc_ref):
    k = pl.program_id(1)
    part = jnp.dot(w_ref[...], p_ref[...], preferred_element_type=jnp.float32)

    @pl.when(k == 0)
    def _():
        acc_ref[...] = part

    @pl.when(k != 0)
    def _():
        acc_ref[...] += part

    @pl.when(k == pl.num_programs(1) - 1)
    def _():
        y = jnp.maximum(acc_ref[...] + shift_ref[...], 0.0)
        o_ref[...] = (y + skip_ref[...].astype(jnp.float32)).astype(o_ref.dtype)


# ------------------------- parameter preprocessing --------------------------

def prepare_up_params(w, bn_scale, bn_shift):
    """One-time (parameter-load-time) repack of the ConvTranspose2d weight.

    Returns:
      wq        : (4*Cout, 9*Cin) bf16, parity-major rows, BN scale folded in.
      shift_col : (4*Cout, 1)     f32, parity-replicated BN shift.
    For output pixel (oy, ox) = (2p+r, 2q+s) the contributing input is
    (p+dy, q+dx) with kernel index (ky, kx) = (r+1-2dy, s+1-2dx) when valid.
    """
    Cin, Cout = w.shape[0], w.shape[1]
    rows = []
    for r in (0, 1):
        for s in (0, 1):
            blocks = []
            for dy in (-1, 0, 1):
                for dx in (-1, 0, 1):
                    ky, kx = r + 1 - 2 * dy, s + 1 - 2 * dx
                    if 0 <= ky < 4 and 0 <= kx < 4:
                        blocks.append(w[:, :, ky, kx].T)              # (Cout, Cin)
                    else:
                        blocks.append(jnp.zeros((Cout, Cin), w.dtype))
            rows.append(jnp.concatenate(blocks, axis=1))              # (Cout, 9*Cin)
    wq = jnp.concatenate(rows, axis=0).astype(jnp.float32)            # (4*Cout, 9*Cin)
    scale_row = jnp.tile(bn_scale.astype(jnp.float32), 4)[:, None]
    wq = (wq * scale_row).astype(jnp.bfloat16)                        # fold BN scale
    shift_col = jnp.tile(bn_shift.astype(jnp.float32), 4)[:, None]
    return wq, shift_col


# ------------------------------ forward ------------------------------------

def res_unet_up(x, skip, wq, shift_col, *, residual=True,
                tm_target=None, max_vmem_bytes=None):
    """ResUNetUp forward (eval mode) with pre-packed params from
    prepare_up_params:
        y = ReLU(BN(ConvTranspose2d(x; k=4, s=2, p=1, bias=False)))
        return y + skip   if residual else   y
    x: (N, Cin, H, W); skip: (N, Cout, 2H, 2W); wq: (4*Cout, 9*Cin) bf16.
    """
    N, Cin, H, W = x.shape
    NC, K = wq.shape
    Cout = NC // 4
    assert K == 9 * Cin
    if residual:
        assert skip.shape == (N, Cout, 2 * H, 2 * W)

    M = N * H * W

    real_budget, two_tc = _chip_caps()
    budget = min(real_budget, int(max_vmem_bytes)) if max_vmem_bytes else real_budget
    if tm_target is None:
        tm_target = 512 if two_tc else 1024    # bigger lane tiles on 128 MiB chips

    # ---- M tiling: M on the lane axis (lane-dense output) ----
    nm = max(1, _cdiv(M, tm_target))
    if two_tc and M >= 256:
        nm = max(nm, 2)                        # megacore-shard M (v7x only)
    tm = _round_up(_cdiv(M, nm), 128)
    Mp = nm * tm

    out_bytes = 2                              # bf16 writeback
    skip_bytes = 2 if residual else 0

    def vmem_need(tk_, ksplit):
        b = (2 * NC * tk_ * 2                  # weight bf16 (double-buffered)
             + 2 * tk_ * tm * 2                # patches bf16
             + 2 * NC * tm * out_bytes         # output
             + 2 * NC * tm * skip_bytes        # skip (residual only)
             + 2 * NC * 4)                     # BN shift column
        if ksplit:
            b += NC * tm * 4                   # f32 accumulator scratch
        return b

    # ---- K axis: collapse (resident weight, single dot) when it fits ----
    Kp_full = _round_up(K, 128)
    headroom = 2 << 20
    if vmem_need(Kp_full, False) + headroom <= budget:
        nk, tk, ksplit = 1, Kp_full, False
    else:
        nk, ksplit = 2, True
        while True:
            tk = _round_up(_cdiv(K, nk), 128)  # shrink tk first, never tm / NC
            if vmem_need(tk, True) + headroom <= budget or tk <= 128:
                break
            nk += 1
    Kp = nk * tk

    # ---- glue: 3x3-tap im2col in transposed (K, M) layout, bf16 operand ----
    # TODO(synk): build the taps in-kernel from a halo'd (Cin, N, H+2, W+2)
    # slab (memory_space=pl.ANY + make_async_copy) instead of materializing
    # this 9x-expanded tensor through HBM.
    xT = jnp.transpose(x, (1, 0, 2, 3))                        # (Cin, N, H, W)
    xTp = jnp.pad(xT, ((0, 0), (0, 0), (1, 1), (1, 1)))
    taps = [xTp[:, :, dy:dy + H, dx:dx + W] for dy in range(3) for dx in range(3)]
    patches_t = jnp.stack(taps, axis=0).reshape(K, M)          # row = tap*Cin + ci
    patches_t = jnp.pad(patches_t,
                        ((0, Kp - K), (0, Mp - M))).astype(jnp.bfloat16)

    wq_p = jnp.pad(wq.astype(jnp.bfloat16), ((0, 0), (0, Kp - K)))
    shift_c = shift_col.astype(jnp.float32).reshape(NC, 1)

    operands = [wq_p, patches_t, shift_c]
    if residual:
        # TODO(synk): keep inter-stage tensors in parity-major layout and drop
        # this transpose (and the output inverse transpose below).
        s_r = skip.reshape(N, Cout, H, 2, W, 2)                # (N,Cout,p,r,q,s)
        s_t = jnp.transpose(s_r, (3, 5, 1, 0, 2, 4)).reshape(NC, M)
        skip_t = jnp.pad(s_t, ((0, 0), (0, Mp - M))).astype(jnp.bfloat16)
        operands.append(skip_t)

    vmem_req = int(min(max(vmem_need(tk, ksplit) + (4 << 20), 16 << 20),
                       real_budget))

    if not ksplit:
        in_specs = [
            pl.BlockSpec((NC, Kp), lambda i: (0, 0)),          # resident weight
            pl.BlockSpec((tk, tm), lambda i: (0, i)),          # patches
            pl.BlockSpec((NC, 1), lambda i: (0, 0)),           # BN shift
        ]
        if residual:
            in_specs.append(pl.BlockSpec((NC, tm), lambda i: (0, i)))
        out_t = pl.pallas_call(
            _kernel_single_res if residual else _kernel_single,
            out_shape=jax.ShapeDtypeStruct((NC, Mp), jnp.bfloat16),
            grid_spec=pltpu.PrefetchScalarGridSpec(
                num_scalar_prefetch=0,
                grid=(nm,),
                in_specs=in_specs,
                out_specs=pl.BlockSpec((NC, tm), lambda i: (0, i)),
            ),
            compiler_params=pltpu.CompilerParams(
                dimension_semantics=("parallel",),
                vmem_limit_bytes=vmem_req),
        )(*operands)
    else:
        in_specs = [
            pl.BlockSpec((NC, tk), lambda i, k: (0, k)),
            pl.BlockSpec((tk, tm), lambda i, k: (k, i)),
            pl.BlockSpec((NC, 1), lambda i, k: (0, 0)),
        ]
        if residual:
            in_specs.append(pl.BlockSpec((NC, tm), lambda i, k: (0, i)))
        out_t = pl.pallas_call(
            _kernel_ksplit_res if residual else _kernel_ksplit,
            out_shape=jax.ShapeDtypeStruct((NC, Mp), jnp.bfloat16),
            grid_spec=pltpu.PrefetchScalarGridSpec(
                num_scalar_prefetch=0,
                grid=(nm, nk),                                  # K (reduction) last
                in_specs=in_specs,
                out_specs=pl.BlockSpec((NC, tm), lambda i, k: (0, i)),
                scratch_shapes=[pltpu.VMEM((NC, tm), jnp.float32)],
            ),
            compiler_params=pltpu.CompilerParams(
                dimension_semantics=("parallel", "arbitrary"),
                vmem_limit_bytes=vmem_req),
        )(*operands)

    # ---- glue: parity-major (NC, M) -> NCHW (N, Cout, 2H, 2W) ----
    out_t = out_t[:, :M]
    o = out_t.reshape(2, 2, Cout, N, H, W)                     # (r,s,Cout,N,p,q)
    o = jnp.transpose(o, (3, 2, 4, 0, 5, 1))                   # (N,Cout,p,r,q,s)
    return o.reshape(N, Cout, 2 * H, 2 * W).astype(x.dtype)


def reference(x, skip, w, bn_scale, bn_shift, residual):
    """Pure-JAX reference of ResUNetUp.forward (eval-mode BN)."""
    w_t = jnp.flip(w, axis=(2, 3)).transpose(1, 0, 2, 3)       # (Cout, Cin, 4, 4)
    y = lax.conv_general_dilated(
        x, w_t, window_strides=(1, 1), padding=((2, 2), (2, 2)),
        lhs_dilation=(2, 2), rhs_dilation=(1, 1),
        dimension_numbers=("NCHW", "OIHW", "NCHW"),
        precision=lax.Precision.HIGHEST)
    y = y * bn_scale[None, :, None, None] + bn_shift[None, :, None, None]
    y = jnp.maximum(y, 0.0)
    return y + skip if residual else y


if __name__ == "__main__":
    # up5 stage of AutoEncoderGen's UR: ResUNetUp(128, 64); with a 64x64 model
    # input the up5 activations are 16x16 spatially.  batch=2 keeps it small.
    N, Cin, Cout, H, W = 2, 128, 64, 16, 16
    key = jax.random.PRNGKey(0)
    kx, ks, kw, kb, km, kg = jax.random.split(key, 6)

    # bf16 is the kernel's MXU/operand dtype; pre-round the f32 test inputs so
    # the f32 reference sees exactly the values the kernel consumes, and pick
    # the BN scale as an exact power of two so folding it into the bf16 weight
    # is lossless.  (In production the bf16 operand cast is a real, small
    # accuracy delta vs the f32 PyTorch ConvTranspose2d.)
    x = jax.random.normal(kx, (N, Cin, H, W), jnp.float32)
    x = x.astype(jnp.bfloat16).astype(jnp.float32)
    skip = jax.random.normal(ks, (N, Cout, 2 * H, 2 * W), jnp.float32)
    skip = skip.astype(jnp.bfloat16).astype(jnp.float32)
    w = 0.1 * jax.random.normal(kw, (Cin, Cout, 4, 4), jnp.float32)
    w = w.astype(jnp.bfloat16).astype(jnp.float32)

    # BatchNorm2d(out_size) inference-mode fold:
    #   scale = gamma / sqrt(running_var + eps), shift = beta - mean * scale.
    bn_scale = 2.0 ** jax.random.randint(kg, (Cout,), -1, 2).astype(jnp.float32)
    beta = 0.1 * jax.random.normal(kb, (Cout,), jnp.float32)
    running_mean = 0.1 * jax.random.normal(km, (Cout,), jnp.float32)
    bn_shift = beta - running_mean * bn_scale

    # Parameter preprocessing hoisted out of the per-call path (run once).
    wq, shift_col = prepare_up_params(w, bn_scale, bn_shift)

    # residual_unet=1 path (x + skip) and the default residual_unet=0 path.
    out_res = res_unet_up(x, skip, wq, shift_col, residual=True)
    out_plain = res_unet_up(x, skip, wq, shift_col, residual=False)
    # Also exercise the K-split fallback (taken when the full weight does not
    # fit the VMEM budget, e.g. the 512->512 stages on v7x).
    out_split = res_unet_up(x, skip, wq, shift_col, residual=True,
                            max_vmem_bytes=3 << 20)
    jax.block_until_ready((out_res, out_plain, out_split))

    ref_res = reference(x, skip, w, bn_scale, bn_shift, True)
    ref_plain = reference(x, skip, w, bn_scale, bn_shift, False)

    atol = rtol = 2e-2   # bf16 writeback rounding is the only kernel-side error
    assert out_res.shape == (N, Cout, 2 * H, 2 * W), out_res.shape
    assert out_plain.shape == (N, Cout, 2 * H, 2 * W), out_plain.shape
    assert jnp.allclose(out_res, ref_res, atol=atol, rtol=rtol), "residual mismatch"
    assert jnp.allclose(out_plain, ref_plain, atol=atol, rtol=rtol), "plain mismatch"
    assert jnp.allclose(out_split, ref_res, atol=atol, rtol=rtol), "k-split mismatch"

    print("KERNEL_OK")
</pallas_src>

<mosaic_0001>
module attributes {stable_mosaic.version = 11 : i64} {
  func.func @_kernel_single_res(%arg0: i32, %arg1: memref<256x1152xbf16, #tpu.memory_space<vmem>>, %arg2: memref<1152x256xbf16, #tpu.memory_space<vmem>>, %arg3: memref<256x1xf32, #tpu.memory_space<vmem>>, %arg4: memref<256x256xbf16, #tpu.memory_space<vmem>>, %arg5: memref<256x256xbf16, #tpu.memory_space<vmem>>) attributes {dimension_semantics = [#tpu.dimension_semantics<parallel>], iteration_bounds = array<i64: 2>, scalar_prefetch = 0 : i64, scratch_operands = 0 : i64, tpu.core_type = #tpu.core_type<tc>, window_params = [{pipeline_mode = #tpu.pipeline_mode<synchronous>, transform_indices = @transform_0, window_bounds = array<i64: 256, 1152>}, {transform_indices = @transform_1, window_bounds = array<i64: 1152, 256>}, {pipeline_mode = #tpu.pipeline_mode<synchronous>, transform_indices = @transform_2, window_bounds = array<i64: 256, 1>}, {transform_indices = @transform_3, window_bounds = array<i64: 256, 256>}, {transform_indices = @transform_4, window_bounds = array<i64: 256, 256>}]} {
    %c0 = arith.constant 0 : index
    %c0_0 = arith.constant 0 : index
    %0 = vector.load %arg1[%c0, %c0_0] : memref<256x1152xbf16, #tpu.memory_space<vmem>>, vector<256x1152xbf16>
    %c0_1 = arith.constant 0 : index
    %c0_2 = arith.constant 0 : index
    %1 = vector.load %arg2[%c0_1, %c0_2] : memref<1152x256xbf16, #tpu.memory_space<vmem>>, vector<1152x256xbf16>
    %cst = arith.constant dense<0.000000e+00> : vector<256x256xf32>
    %2 = tpu.matmul %0, %1, %cst {dimension_numbers = #tpu.dot_dimension_numbers<[1], [0], [0], [1], [0, 0, 1, 1], [], []>} : vector<256x1152xbf16>, vector<1152x256xbf16>, vector<256x256xf32> -> vector<256x256xf32>
    %c0_3 = arith.constant 0 : index
    %c0_4 = arith.constant 0 : index
    %3 = vector.load %arg3[%c0_3, %c0_4] : memref<256x1xf32, #tpu.memory_space<vmem>>, vector<256x1xf32>
    %4 = vector.broadcast %3 : vector<256x1xf32> to vector<256x256xf32>
    %5 = arith.addf %2, %4 : vector<256x256xf32>
    %cst_5 = arith.constant 0.000000e+00 : f32
    %6 = vector.broadcast %cst_5 : f32 to vector<256x256xf32>
    %7 = arith.maximumf %5, %6 : vector<256x256xf32>
    %c0_6 = arith.constant 0 : index
    %c0_7 = arith.constant 0 : index
    %8 = vector.load %arg4[%c0_6, %c0_7] : memref<256x256xbf16, #tpu.memory_space<vmem>>, vector<256x256xbf16>
    %9 = arith.extf %8 : vector<256x256xbf16> to vector<256x256xf32>
    %10 = arith.addf %7, %9 : vector<256x256xf32>
    %11 = arith.truncf %10 : vector<256x256xf32> to vector<256x256xbf16>
    %c0_8 = arith.constant 0 : index
    %c0_9 = arith.constant 0 : index
    %12 = vector.load %arg5[%c0_8, %c0_9] : memref<256x256xbf16, #tpu.memory_space<vmem>>, vector<256x256xbf16>
    tpu.vector_store %arg5[%c0_8, %c0_9], %11 {strides = array<i32>} : memref<256x256xbf16, #tpu.memory_space<vmem>>, vector<256x256xbf16>,
    return
  }
  func.func @transform_0(%arg0: i32) -> (i32, i32) {
    %c0_i32 = arith.constant 0 : i32
    %c0_i32_0 = arith.constant 0 : i32
    %c0_i32_1 = arith.constant 0 : i32
    return %c0_i32, %c0_i32_0 : i32, i32
  }
  func.func @transform_1(%arg0: i32) -> (i32, i32) {
    %c0_i32 = arith.constant 0 : i32
    %c0_i32_0 = arith.constant 0 : i32
    return %c0_i32, %arg0 : i32, i32
  }
  func.func @transform_2(%arg0: i32) -> (i32, i32) {
    %c0_i32 = arith.constant 0 : i32
    %c0_i32_0 = arith.constant 0 : i32
    %c0_i32_1 = arith.constant 0 : i32
    return %c0_i32, %c0_i32_0 : i32, i32
  }
  func.func @transform_3(%arg0: i32) -> (i32, i32) {
    %c0_i32 = arith.constant 0 : i32
    %c0_i32_0 = arith.constant 0 : i32
    return %c0_i32, %arg0 : i32, i32
  }
  func.func @transform_4(%arg0: i32) -> (i32, i32) {
    %c0_i32 = arith.constant 0 : i32
    %c0_i32_0 = arith.constant 0 : i32
    return %c0_i32, %arg0 : i32, i32
  }
}

</mosaic_0001>

<bundles_post_ra>
// kernel: tpu_custom_call.1
= control target key start
LH: loop header
LB: loop body
LE: loop exit
PB: predicated region body
PF: predicated region fallthrough
CT: control target
= control target key end

     0   :  { %9 = vsyncpa [#allocation3], 0  ;;  %s5806_s0 = inlined_call_operand.hbm [shape: bf16[256,1152], index: 0, kind: input, shape index: {}]   ;;  %s5807_s1 = inlined_call_operand.hbm [shape: bf16[1152,512], index: 1, kind: input, shape index: {}]   ;;  %s5808_s2 = inlined_call_operand.vmem [shape: f32[256,1], index: 2, kind: input, shape index: {}]   ;;  %s5809_s3 = inlined_call_operand.hbm [shape: bf16[256,512], index: 3, kind: input, shape index: {}]   ;;  %s5810_s4 = inlined_call_operand.hbm [shape: bf16[256,512], index: 4, kind: output, shape index: {}]  }
   0x1   :  { %10 = vsyncpa [#allocation6], 0 }
   0x2   :  { %12 = vsyncpa [#allocation6 + $0x1], 0 }
   0x3   :  { %13 = vsyncpa [#allocation4], 0 }
   0x4   :  { %15 = vsyncpa [#allocation4 + $0x1], 0  ;;  %s4850_s15 = smov 0   ;;  %s4852_s16 = smov 0  }
   0x5   :  { %s4854_s17 = smov 0   ;;  %s4856_s18 = smov 0  }
   0x6 LB: > { %s4871_s19 = sadd.s32 1, %s4810_s18   ;;  %s49_s20 = sadd.s32 1, %s4806_s17  ;;  %s4810_s18 = sphi %s4856_s18, %s5924_s18   ;;  %s4806_s17 = sphi %s4854_s17, %s5923_s17   ;;  %s4802_s16 = sphi %s4852_s16, %s5922_s16   ;;  %s4798_s15 = sphi %s4850_s15, %s5921_s15  }
   0x7   : > { %s46_s21 = ssub.s32 %s4810_s18, %s4871_s19  ;;  %p56_p0 = scmp.ne.s32.totalorder %s4806_s17, %s4802_s16 }
   0x8   : > { %p47_p1 = scmp.eq.s32.totalorder %s46_s21, 0  ;;  %p57_p2 = scmp.eq.s32.totalorder %s4810_s18, 0 }
   0x9   : > { %p4189_p4 = scmp.lt.s32.totalorder %s4810_s18, 2  ;;  %s175_s23 = sand.u32 1, %s4810_s18  }
   0xa   : > { %s4882_s22 = scalar_select %p47_p1, %s4806_s17, %s49_s20  }
   0xb   : > { %p58_p5 = por %p57_p2, %p56_p0  ;;  %s177_s24 = sand.u32 1, %s4806_s17  }
   0xc   : > { %s4161_s25 = smul.u32 1152, %s177_s24  ;;  %s4094_s26 = sshll.u32 %s4810_s18, 7 }
   0xd   : > { %s4895_s29 = scalar_lea.hbm %s5807_s1, %s4094_s26  ;;  %p4897_p6 = pnand %p4189_p4, %p58_p5 }
   0xe   : > { %s179_s5 = scalar_lea.vmem [#allocation5], %s4161_s25  ;;  %s4903_s7 = sshll.u32 %s177_s24, 8 }
   0xf   : > { %s186_s6 = sshll.u32 %s179_s5, 4  ;;  %s4905_s8 = scalar_lea.sflag [#allocation6], %s175_s23  ;;  %s4901_s6 = int_to_ptr.vmem [resolvable:$true] %s186_s6 }
  0x10   : > { %s4660_s9 = scalar_lea.hbm %s4895_s29, 18432  ;;  %p4662_p8 = pneg %p4897_p6 }
  0x11   : > { %p4661_p7 = scmp.ne.s32.totalorder %s4895_s29, %s4660_s9  ;;  %s4665_s12 = scalar_lea.hbm %s5807_s1, 36864 }
  0x12   : > { %p4666_p11 = scmp.lt.s32.totalorder %s4895_s29, %s5807_s1  ;;  %p4667_p12 = scmp.lt.s32.totalorder %s4665_s12, %s4660_s9 }
  0x13   : > { %p4663_p9 = pnand %p4662_p8, %p4661_p7 }
  0x14   : > { %p4668_p13 = por %p4667_p12, %p4666_p11 }
  0x15   : > { %p4664_p10 = pneg %p4663_p9 }
  0x17   : > { %p4669_p1 = pnand %p4668_p13, %p4664_p10 }
  0x19   : > { %4672 = shalt.err (!%p4669_p1)
}
  0x1a   : > { %s4673_s20 = scalar_lea.vmem %s4901_s6, 18432  ;;  %s4812_s21 = smov [#allocation5]  }
  0x1b   : > { %p4674_p2 = scmp.ne.s32.totalorder %s4901_s6, %s4673_s20  ;;  %s4678_s23 = sshll.u32 %s4812_s21, 4  ;;  %s4679_s23 = int_to_ptr.vmem [resolvable:$false] %s4678_s23 }
  0x1c   : > { %s4680_s24 = scalar_lea.vmem %s4679_s23, 36864  ;;  %p4681_p7 = scmp.lt.s32.totalorder %s4901_s6, %s4679_s23 }
  0x1d   : > { %p4676_p4 = pnand %p4674_p2, %p4662_p8  ;;  %p4682_p9 = scmp.lt.s32.totalorder %s4680_s24, %s4673_s20 }
  0x1f   : > { %p4677_p5 = pneg %p4676_p4  ;;  %p4683_p3 = por %p4682_p9, %p4681_p7 }
  0x21   : > { %p4684_p11 = pnand %p4683_p3, %p4677_p5 }
  0x23   : > { %4687 = shalt.err (!%p4684_p11)
}
  0x24   : > { %s5811_s25 = smov 256   ;;  %s5813_s27 = smov 128  }
  0x25   : > { %s4815_s28 = smov 8   ;;  %s200_s5 = scalar_lea.vmem [#allocation7], %s4903_s7 }
  0x26   : > { %4180 = dma.hbm_to_vmem [thread:$0]  (!%p4897_p6), %s4895_s29, 18432, %s4901_s6, %s4905_s8, %s5811_s25, %s5813_s27, %s4815_s28  }
  0x27   : > { %s207_s9 = sshll.u32 %s200_s5, 4  ;;  %s4937_s10 = sadd.s32 4294967295, %s4810_s18   ;;  %s4978_s9 = int_to_ptr.vmem [resolvable:$true] %s207_s9 }
  0x28   : > { %s3756_s11 = sadd.s32 4294967294, %s4810_s18   ;;  %p62_p3 = scmp.ne.s32.totalorder %s4802_s16, %s4798_s15 }
  0x29   : > { %p5812_p10 = scmp.eq.s32.totalorder %s4937_s10, 0  ;;  %p133_p12 = scmp.eq.s32.totalorder %s4937_s10, 1 }
  0x2a   : > { %p139_p13 = scmp.eq.s32.totalorder %s3756_s11, 1  ;;  %p3757_p1 = scmp.ge.s32.totalorder %s4810_s18, 1 }
  0x2b   : > { %p4947_p2 = por %p5812_p10, %p62_p3  ;;  %p4954_p4 = por %p133_p12, %p56_p0 }
  0x2c   : > { %p4958_p5 = por %p139_p13, %p62_p3  ;;  %p146_p7 = scmp.lt.s32.totalorder %s4810_s18, 3 }
  0x2d   : > { %s5820_s12 = scalar_select %p4947_p2, 1, 0 }
  0x2e   : > { %s5821_s29 = scalar_select %p4954_p4, 1, 0 }
  0x2f   : > { %s5822_s6 = scalar_select %p4958_p5, 1, 0 }
  0x30   : > { %p4963_p9 = pnand %p3757_p1, %p146_p7  ;;  %s4816_s13 = smov [#allocation2]  }
  0x31   : > { %s158_s14 = sshll.u32 %s4816_s13, 4  ;;  %s4972_s23 = scalar_lea.hbm %s5809_s3, %s4094_s26  ;;  %s4976_s14 = int_to_ptr.vmem [resolvable:$true] %s158_s14 }
  0x32   : > { %s5823_s7 = scalar_select %p4963_p9, 1, 0 }
  0x33   : > { %p4173_p0 = pneg %p4963_p9  ;;  %s4688_s5 = scalar_lea.hbm %s4972_s23, 4096 }
  0x34   : > { %p4689_p3 = scmp.ne.s32.totalorder %s4972_s23, %s4688_s5  ;;  %s4693_s13 = scalar_lea.hbm %s5809_s3, 8192 }
  0x35   : > { %p4982_p11 = pnand %p4173_p0, %p5812_p10  ;;  %p4694_p1 = scmp.lt.s32.totalorder %s4972_s23, %s5809_s3 }
  0x36   : > { %p4691_p12 = pnand %p4689_p3, %p4662_p8  ;;  %p4695_p7 = scmp.lt.s32.totalorder %s4693_s13, %s4688_s5 }
  0x38   : > { %p4692_p13 = pneg %p4691_p12  ;;  %p4696_p5 = por %p4695_p7, %p4694_p1 }
  0x3a   : > { %p4697_p0 = pnand %p4696_p5, %p4692_p13 }
  0x3c   : > { %4700 = shalt.err (!%p4697_p0)
}
  0x3d   : > { %s4701_s25 = scalar_lea.vmem %s4978_s9, 4096  ;;  %s4817_s26 = smov [#allocation7]  }
  0x3e   : > { %p4702_p10 = scmp.ne.s32.totalorder %s4978_s9, %s4701_s25  ;;  %s4706_s11 = sshll.u32 %s4817_s26, 4  ;;  %s4707_s11 = int_to_ptr.vmem [resolvable:$false] %s4706_s11 }
  0x3f   : > { %s4708_s27 = scalar_lea.vmem %s4707_s11, 8192  ;;  %p4709_p4 = scmp.lt.s32.totalorder %s4978_s9, %s4707_s11 }
  0x40   : > { %p4704_p3 = pnand %p4702_p10, %p4662_p8  ;;  %p4710_p2 = scmp.lt.s32.totalorder %s4708_s27, %s4701_s25 }
  0x42   : > { %p4705_p12 = pneg %p4704_p3  ;;  %p4711_p9 = por %p4710_p2, %p4709_p4 }
  0x44   : > { %p4712_p1 = pnand %p4711_p9, %p4705_p12 }
  0x46   : > { %4715 = shalt.err (!%p4712_p1)
}
  0x47   : > { %s5825_s5 = smov 128   ;;  %s5826_s13 = smov 256  }
  0x48   : > { %4183 = dma.hbm_to_vmem [thread:$0]  (!%p4897_p6), %s4972_s23, 4096, %s4978_s9, %s4905_s8, %s5826_s13, %s5825_s5, %s4815_s28  }
  0x49   : > { %p4718_p8 = pneg %p4982_p11  ;;  %s4727_s20 = scalar_lea.vmem %s4976_s14, 18432 }
  0x4a   : > { %p4728_p10 = scmp.ne.s32.totalorder %s4976_s14, %s4727_s20  ;;  %p4735_p5 = scmp.lt.s32.totalorder %s4976_s14, %s4976_s14 }
  0x4b   : > { %p4736_p9 = scmp.lt.s32.totalorder %s4727_s20, %s4727_s20 }
  0x4c   : > { %p4730_p2 = pnand %p4728_p10, %p4718_p8 }
  0x4d   : > { %p4737_p13 = por %p4736_p9, %p4735_p5 }
  0x4e   : > { %p4731_p4 = pneg %p4730_p2 }
  0x50   : > { %p4738_p7 = pnand %p4737_p13, %p4731_p4 }
  0x52   : > { %4741 = shalt.err (!%p4738_p7)
}
  0x53   : > { %s4818_s30 = smov 576   ;;  %s4819_s25 = smov 36  }
  0x54   : > { %4176 = dma.hbm_to_vmem [thread:$0]  (!%p4982_p11), %s5806_s0, 18432, %s4976_s14, [#allocation3], %s4818_s30, %s4818_s30, %s4819_s25  }
  0x55   : > { %p5827_p6 = scmp.ne.s32.totalorder %s5823_s7, 0 }
  0x57   : > { %219 = sbr.rel (%p5827_p6) target bundleno = 702 (0x2be), region = 36 }
  0x5c   : > { %p5828_p0 = scmp.eq.s32.totalorder %s4937_s10, 0 }
  0x5e   : > { %4785 = dma.done.wait (%p5828_p0), [#allocation3], 18432   ;;  %p5829_p3 = pmov %p5828_p0 }
  0x5f   : > { %s225_s8 = sand.u32 1, %s4937_s10   ;;  %s5032_s28 = sand.u32 1, %s4802_s16  }
  0x60   : > { %4787 = vsyncadd (%p5829_p3), [#allocation3], 4294948864  ;;  %s4162_s9 = smul.u32 1152, %s5032_s28  ;;  %s226_s23 = scalar_lea.sflag [#allocation6], %s225_s8 }
  0x61   : > { %p5830_p11 = scmp.ne.s32.totalorder %s5820_s12, 0 }
  0x62   : > { %s5035_s24 = scalar_lea.vmem [#allocation5], %s4162_s9 }
  0x63   : > { %4789 = dma.done.wait (%p5830_p11), %s226_s23, 22528  }
  0x64   : > { %4791 = vsyncadd (%p5830_p11), %s226_s23, 4294944768  ;;  %v5817_v0 = vmov 0   ;;  %v4236_v1 = vld [vmem:[%s5035_s24 + $0x74] ss:$8 sps:$4 sm:$0xff]   ;;  %v4238_v2 = vld [vmem:[%s5035_s24 + $0x70] ss:$8 sps:$4 sm:$0xff]  }
  0x65   : > { %4234 = vset.pattern.permute.xlu0 %v5817_v0  ;;  %4235 = vset.pattern.permute.xlu1 %v5817_v0  ;;  %v4239_v3 = vld [vmem:[%s5035_s24 + $0x64] ss:$8 sps:$4 sm:$0xff]   ;;  %v4241_v4 = vld [vmem:[%s5035_s24 + $0x60] ss:$8 sps:$4 sm:$0xff]   ;;  %v4242_v5 = vld [vmem:[%s5035_s24 + $0x54] ss:$8 sps:$4 sm:$0xff]  }
  0x66   : > { %2224 = vmatprep.subr.bf16.mxu0 %v4236_v1  ;;  %4129 = vmatprep.subr.bf16.mxu1 %v4236_v1  ;;  %v4244_v6 = vld [vmem:[%s5035_s24 + $0x50] ss:$8 sps:$4 sm:$0xff]   ;;  %v4245_v7 = vld [vmem:[%s5035_s24 + $0x44] ss:$8 sps:$4 sm:$0xff]   ;;  %v4247_v8 = vld [vmem:[%s5035_s24 + $0x40] ss:$8 sps:$4 sm:$0xff]  }
  0x67   : > { %2225 = vmatpush1.bf16.msra.mxu0 %v4238_v2  ;;  %4145 = vmatpush1.bf16.msra.mxu1 %v4238_v2  ;;  %v4248_v9 = vld [vmem:[%s5035_s24 + $0x34] ss:$8 sps:$4 sm:$0xff]   ;;  %v4250_v10 = vld [vmem:[%s5035_s24 + $0x30] ss:$8 sps:$4 sm:$0xff]   ;;  %v4251_v11 = vld [vmem:[%s5035_s24 + $0x24] ss:$8 sps:$4 sm:$0xff]  }
  0x68   : > { %2226 = vmatprep.subr.bf16.mxu0 %v4239_v3  ;;  %4130 = vmatprep.subr.bf16.mxu1 %v4239_v3  ;;  %v4253_v12 = vld [vmem:[%s5035_s24 + $0x20] ss:$8 sps:$4 sm:$0xff]   ;;  %v4254_v13 = vld [vmem:[%s5035_s24 + $0x14] ss:$8 sps:$4 sm:$0xff]   ;;  %v4256_v15 = vld [vmem:[%s5035_s24 + $0x10] ss:$8 sps:$4 sm:$0xff]  }
  0x69   : > { %v4286_v14 = vld [vmem:[#allocation2 + $0x4] ss:$36 sps:$4 sm:$0xff]   ;;  %v4260_v19 = vld [vmem:[%s5035_s24 + $0xf4] ss:$8 sps:$4 sm:$0xff]   ;;  %v4262_v20 = vld [vmem:[%s5035_s24 + $0xf0] ss:$8 sps:$4 sm:$0xff]  }
  0x6a   : > { %v4289_v16 = vld [vmem:[#allocation2 + $0x244] ss:$36 sps:$4 sm:$0xff]   ;;  %2256 = vmatprep.mubr.bf16.mxu0 %v4286_v14  ;;  %v4266_v23 = vld [vmem:[%s5035_s24 + $0xd4] ss:$8 sps:$4 sm:$0xff]   ;;  %v4268_v24 = vld [vmem:[%s5035_s24 + $0xd0] ss:$8 sps:$4 sm:$0xff]  }
  0x6b   : > { %2227 = vmatpush1.bf16.msra.mxu0 %v4241_v4  ;;  %4146 = vmatpush1.bf16.msra.mxu1 %v4241_v4  ;;  %v4257_v17 = vld [vmem:[%s5035_s24 + $0x4] ss:$8 sps:$4 sm:$0xff]   ;;  %v4259_v18 = vld [vmem:[%s5035_s24] ss:$8 sps:$4 sm:$0xff]   ;;  %v4272_v27 = vld [vmem:[%s5035_s24 + $0xb4] ss:$8 sps:$4 sm:$0xff]  }
  0x6c   : > { %2228 = vmatprep.subr.bf16.mxu0 %v4242_v5  ;;  %4131 = vmatprep.subr.bf16.mxu1 %v4242_v5  ;;  %v4263_v21 = vld [vmem:[%s5035_s24 + $0xe4] ss:$8 sps:$4 sm:$0xff]   ;;  %v4265_v22 = vld [vmem:[%s5035_s24 + $0xe0] ss:$8 sps:$4 sm:$0xff]   ;;  %v4274_v28 = vld [vmem:[%s5035_s24 + $0xb0] ss:$8 sps:$4 sm:$0xff]  }
  0x6d   : > { %2336 = vmatprep.mubr.bf16.mxu1 %v4289_v16  ;;  %v4269_v25 = vld [vmem:[%s5035_s24 + $0xc4] ss:$8 sps:$4 sm:$0xff]   ;;  %v4271_v26 = vld [vmem:[%s5035_s24 + $0xc0] ss:$8 sps:$4 sm:$0xff]   ;;  %v4278_v31 = vld [vmem:[%s5035_s24 + $0x94] ss:$8 sps:$4 sm:$0xff]  }
  0x6e   : > { %v4275_v29 = vld [vmem:[%s5035_s24 + $0xa4] ss:$8 sps:$4 sm:$0xff]   ;;  %v4277_v30 = vld [vmem:[%s5035_s24 + $0xa0] ss:$8 sps:$4 sm:$0xff]   ;;  %v4280_v32 = vld [vmem:[%s5035_s24 + $0x90] ss:$8 sps:$4 sm:$0xff]  }
  0x6f   : > { %2229 = vmatpush1.bf16.msra.mxu0 %v4244_v6  ;;  %4147 = vmatpush1.bf16.msra.mxu1 %v4244_v6  ;;  %v4281_v33 = vld [vmem:[%s5035_s24 + $0x84] ss:$8 sps:$4 sm:$0xff]   ;;  %v4283_v34 = vld [vmem:[%s5035_s24 + $0x80] ss:$8 sps:$4 sm:$0xff]   ;;  %v4292_v35 = vld [vmem:[%s5035_s24 + $0x174] ss:$8 sps:$4 sm:$0xff]  }
  0x70   : > { %2230 = vmatprep.subr.bf16.mxu0 %v4245_v7  ;;  %4132 = vmatprep.subr.bf16.mxu1 %v4245_v7  ;;  %v4284_v36 = vld [vmem:[#allocation2] ss:$36 sps:$4 sm:$0xff]   ;;  %v4295_v37 = vld [vmem:[%s5035_s24 + $0x274] ss:$8 sps:$4 sm:$0xff]   ;;  %v4290_v40 = vld [vmem:[%s5035_s24 + $0x170] ss:$8 sps:$4 sm:$0xff]  }
  0x71   : > { %v4287_v38 = vld [vmem:[#allocation2 + $0x240] ss:$36 sps:$4 sm:$0xff]   ;;  %v4293_v41 = vld [vmem:[%s5035_s24 + $0x270] ss:$8 sps:$4 sm:$0xff]   ;;  %v577_v49 = vld [vmem:[%s5808_s2 + $0x8] sm:$0xff]  ;;  %s4128_s13 = sshll.u32 %s4937_s10, 7 }
  0x72   : > { %v576_v39 = vld [vmem:[%s5808_s2] sm:$0xff]  ;;  %v4302_v44 = vld [vmem:[#allocation2 + $0x4c] ss:$36 sps:$4 sm:$0xff]   ;;  %v4310_v50 = vld [vmem:[%s5035_s24 + $0x154] ss:$8 sps:$4 sm:$0xff]   ;;  %s5760_s27 = scalar_lea.hbm %s5810_s4, %s4128_s13  ;;  %s3638_s21 = scalar_lea.sflag [#allocation4], %s5032_s28 }
  0x73   : > { %2231 = vmatpush1.bf16.msra.mxu0 %v4247_v8  ;;  %4148 = vmatpush1.bf16.msra.mxu1 %v4247_v8  ;;  %v4298_v42 = vld [vmem:[%s5035_s24 + $0x164] ss:$8 sps:$4 sm:$0xff]   ;;  %v4296_v46 = vld [vmem:[%s5035_s24 + $0x160] ss:$8 sps:$4 sm:$0xff]   ;;  %v578_v48 = vld [vmem:[%s5808_s2 + $0x10] sm:$0xff]  ;;  %p5918_p1 = scmp.ne.s32.totalorder %s5821_s29, 0 }
  0x74   : > { %2232 = vmatprep.subr.bf16.mxu0 %v4248_v9  ;;  %4133 = vmatprep.subr.bf16.mxu1 %v4248_v9  ;;  %v4301_v43 = vld [vmem:[%s5035_s24 + $0x264] ss:$8 sps:$4 sm:$0xff]   ;;  %v4299_v47 = vld [vmem:[%s5035_s24 + $0x260] ss:$8 sps:$4 sm:$0xff]   ;;  %v4313_v51 = vld [vmem:[%s5035_s24 + $0x254] ss:$8 sps:$4 sm:$0xff]  }
  0x75   : > { %610 = vperm.xlu0 %4234, %v576_v39   ;;  %v4304_v45 = vld [vmem:[#allocation2 + $0x28c] ss:$36 sps:$4 sm:$0xff]   ;;  %620 = vperm.xlu1 %4235, %v578_v48   ;;  %v4314_v58 = vld [vmem:[%s5035_s24 + $0x140] ss:$8 sps:$4 sm:$0xff]   ;;  %v4320_v59 = vld [vmem:[#allocation2 + $0x94] ss:$36 sps:$4 sm:$0xff]  }
  0x76   : > { %v4306_v52 = vld [vmem:[#allocation2 + $0x48] ss:$36 sps:$4 sm:$0xff]   ;;  %v4308_v54 = vld [vmem:[%s5035_s24 + $0x150] ss:$8 sps:$4 sm:$0xff]   ;;  %v580_v63 = vld [vmem:[%s5808_s2 + $0x20] sm:$0xff]  ;;  %s4821_s8 = smov [#allocation8]  }
  0x77   : > { %2233 = vmatpush1.bf16.msra.mxu0 %v4250_v10  ;;  %4149 = vmatpush1.bf16.msra.mxu1 %v4250_v10  ;;  %v4307_v53 = vld [vmem:[#allocation2 + $0x288] ss:$36 sps:$4 sm:$0xff]   ;;  %v4311_v55 = vld [vmem:[%s5035_s24 + $0x250] ss:$8 sps:$4 sm:$0xff]   ;;  %v4328_v2 = vld [vmem:[%s5035_s24 + $0x134] ss:$8 sps:$4 sm:$0xff]  }
  0x78   : > { %2234 = vmatprep.subr.bf16.mxu0 %v4251_v11  ;;  %4134 = vmatprep.subr.bf16.mxu1 %v4251_v11  ;;  %v4316_v56 = vld [vmem:[%s5035_s24 + $0x144] ss:$8 sps:$4 sm:$0xff]   ;;  %v4322_v60 = vld [vmem:[#allocation2 + $0x2d4] ss:$36 sps:$4 sm:$0xff]   ;;  %v4317_v61 = vld [vmem:[%s5035_s24 + $0x240] ss:$8 sps:$4 sm:$0xff]  }
  0x79   : > { %615 = vperm.xlu0 %4234, %v577_v49   ;;  %v4319_v57 = vld [vmem:[%s5035_s24 + $0x244] ss:$8 sps:$4 sm:$0xff]   ;;  %v579_v62 = vld [vmem:[%s5808_s2 + $0x18] sm:$0xff]  ;;  %v4324_v1 = vld [vmem:[#allocation2 + $0x90] ss:$36 sps:$4 sm:$0xff]   ;;  %s4746_s9 = sshll.u32 %s4821_s8, 4  ;;  %s4747_s9 = int_to_ptr.vmem [resolvable:$false] %s4746_s9 }
  0x7a   : > { %v4331_v3 = vld [vmem:[%s5035_s24 + $0x234] ss:$8 sps:$4 sm:$0xff]   ;;  %v4326_v5 = vld [vmem:[%s5035_s24 + $0x130] ss:$8 sps:$4 sm:$0xff]   ;;  %625 = vperm.xlu1 %4235, %v579_v62   ;;  %v4334_v7 = vld [vmem:[%s5035_s24 + $0x124] ss:$8 sps:$4 sm:$0xff]  }
  0x7b   : > { %2235 = vmatpush1.bf16.msra.mxu0 %v4253_v12  ;;  %4150 = vmatpush1.bf16.msra.mxu1 %v4253_v12  ;;  %v4325_v4 = vld [vmem:[#allocation2 + $0x2d0] ss:$36 sps:$4 sm:$0xff]   ;;  %v4337_v8 = vld [vmem:[%s5035_s24 + $0x224] ss:$8 sps:$4 sm:$0xff]   ;;  %v4338_v9 = vld [vmem:[#allocation2 + $0xdc] ss:$36 sps:$4 sm:$0xff]  }
  0x7c   : > { %2236 = vmatprep.subr.bf16.mxu0 %v4254_v13  ;;  %4135 = vmatprep.subr.bf16.mxu1 %v4254_v13  ;;  %v4329_v6 = vld [vmem:[%s5035_s24 + $0x230] ss:$8 sps:$4 sm:$0xff]   ;;  %v4332_v10 = vld [vmem:[%s5035_s24 + $0x120] ss:$8 sps:$4 sm:$0xff]   ;;  %v4346_v13 = vld [vmem:[%s5035_s24 + $0x114] ss:$8 sps:$4 sm:$0xff]  }
  0x7d   : > { %630 = vperm.xlu0 %4234, %v580_v63   ;;  %v4340_v11 = vld [vmem:[#allocation2 + $0x31c] ss:$36 sps:$4 sm:$0xff]   ;;  %v581_v14 = vld [vmem:[%s5808_s2 + $0x28] sm:$0xff]  ;;  %v4383_v48 = vld [vmem:[%s5035_s24 + $0x2d0] ss:$8 sps:$4 sm:$0xff]   ;;  %s4748_s23 = scalar_lea.vmem %s4747_s9, 8192 }
  0x7e   : > { %v4335_v12 = vld [vmem:[%s5035_s24 + $0x220] ss:$8 sps:$4 sm:$0xff]   ;;  %v4349_v16 = vld [vmem:[%s5035_s24 + $0x214] ss:$8 sps:$4 sm:$0xff]   ;;  %635 = vperm.xlu1 %4235, %v581_v14   ;;  %v4388_v49 = vld [vmem:[%s5035_s24 + $0x1c4] ss:$8 sps:$4 sm:$0xff]  }
  0x7f   : > { %2237 = vmatpush1.bf16.msra.mxu0 %v4256_v15  ;;  %4151 = vmatpush1.bf16.msra.mxu1 %v4256_v15  ;;  %v582_v15 = vld [vmem:[%s5808_s2 + $0x30] sm:$0xff]  ;;  %v4368_v39 = vld [vmem:[%s5035_s24 + $0x1e0] ss:$8 sps:$4 sm:$0xff]   ;;  %v4406_v63 = vld [vmem:[%s5035_s24 + $0x1a4] ss:$8 sps:$4 sm:$0xff]  }
  0x80   : > { %2238 = vmatprep.subr.bf16.mxu0 %v4257_v17  ;;  %4136 = vmatprep.subr.bf16.mxu1 %v4257_v17  ;;  %v4342_v17 = vld [vmem:[#allocation2 + $0xd8] ss:$36 sps:$4 sm:$0xff]   ;;  %v4424_v14 = vld [vmem:[%s5035_s24 + $0x184] ss:$8 sps:$4 sm:$0xff]  }
  0x81   : > { %640 = vperm.xlu0 %4234, %v582_v15   ;;  %v4401_v62 = vld [vmem:[%s5035_s24 + $0x2b0] ss:$8 sps:$4 sm:$0xff]   ;;  %v4427_v15 = vld [vmem:[%s5035_s24 + $0x284] ss:$8 sps:$4 sm:$0xff]  }
  0x83   : > { %2239 = vmatpush1.bf16.msra.mxu0 %v4259_v18  ;;  %4152 = vmatpush1.bf16.msra.mxu1 %v4259_v18  ;;  %v4343_v18 = vld [vmem:[#allocation2 + $0x318] ss:$36 sps:$4 sm:$0xff]  }
  0x84   : > { %2240 = vmatprep.subr.bf16.mxu0 %v4260_v19  ;;  %4137 = vmatprep.subr.bf16.mxu1 %v4260_v19  ;;  %v4344_v19 = vld [vmem:[%s5035_s24 + $0x110] ss:$8 sps:$4 sm:$0xff]  }
  0x87   : > { %2241 = vmatpush2.bf16.msra.mxu0 %v4262_v20  ;;  %4153 = vmatpush2.bf16.msra.mxu1 %v4262_v20  ;;  %v4347_v20 = vld [vmem:[%s5035_s24 + $0x210] ss:$8 sps:$4 sm:$0xff]  }
  0x88   : > { %2242 = vmatprep.subr.bf16.mxu0 %v4263_v21  ;;  %4138 = vmatprep.subr.bf16.mxu1 %v4263_v21  ;;  %v4352_v21 = vld [vmem:[%s5035_s24 + $0x104] ss:$8 sps:$4 sm:$0xff]  }
  0x8b   : > { %2243 = vmatpush2.bf16.msra.mxu0 %v4265_v22  ;;  %4154 = vmatpush2.bf16.msra.mxu1 %v4265_v22  ;;  %v4355_v22 = vld [vmem:[%s5035_s24 + $0x204] ss:$8 sps:$4 sm:$0xff]  }
  0x8c   : > { %2244 = vmatprep.subr.bf16.mxu0 %v4266_v23  ;;  %4139 = vmatprep.subr.bf16.mxu1 %v4266_v23  ;;  %v4350_v23 = vld [vmem:[%s5035_s24 + $0x100] ss:$8 sps:$4 sm:$0xff]  }
  0x8f   : > { %2245 = vmatpush2.bf16.msra.mxu0 %v4268_v24  ;;  %4155 = vmatpush2.bf16.msra.mxu1 %v4268_v24  ;;  %v4353_v24 = vld [vmem:[%s5035_s24 + $0x200] ss:$8 sps:$4 sm:$0xff]  }
  0x90   : > { %2246 = vmatprep.subr.bf16.mxu0 %v4269_v25  ;;  %4140 = vmatprep.subr.bf16.mxu1 %v4269_v25  ;;  %v4356_v25 = vld [vmem:[#allocation2 + $0x124] ss:$36 sps:$4 sm:$0xff]  }
  0x93   : > { %2247 = vmatpush2.bf16.msra.mxu0 %v4271_v26  ;;  %4156 = vmatpush2.bf16.msra.mxu1 %v4271_v26  ;;  %v4358_v26 = vld [vmem:[#allocation2 + $0x364] ss:$36 sps:$4 sm:$0xff]  }
  0x94   : > { %2248 = vmatprep.subr.bf16.mxu0 %v4272_v27  ;;  %4141 = vmatprep.subr.bf16.mxu1 %v4272_v27  ;;  %v4364_v27 = vld [vmem:[%s5035_s24 + $0x1f4] ss:$8 sps:$4 sm:$0xff]  }
  0x97   : > { %2249 = vmatpush2.bf16.msra.mxu0 %v4274_v28  ;;  %4157 = vmatpush2.bf16.msra.mxu1 %v4274_v28  ;;  %v583_v28 = vld [vmem:[%s5808_s2 + $0x38] sm:$0xff] }
  0x98   : > { %2250 = vmatprep.subr.bf16.mxu0 %v4275_v29  ;;  %4142 = vmatprep.subr.bf16.mxu1 %v4275_v29  ;;  %v584_v29 = vld [vmem:[%s5808_s2 + $0x40] sm:$0xff] }
  0x99   : > { %645 = vperm.xlu1 %4235, %v583_v28   ;;  %650 = vperm.xlu0 %4234, %v584_v29   ;;  %v4440_v28 = vld [vmem:[#allocation2 + $0x54] ss:$36 sps:$4 sm:$0xff]   ;;  %v4442_v29 = vld [vmem:[#allocation2 + $0x5c] ss:$36 sps:$4 sm:$0xff]  }
  0x9b   : > { %2251 = vmatpush2.bf16.msra.mxu0 %v4277_v30  ;;  %4158 = vmatpush2.bf16.msra.mxu1 %v4277_v30  ;;  %v4367_v30 = vld [vmem:[%s5035_s24 + $0x2f4] ss:$8 sps:$4 sm:$0xff]  }
  0x9c   : > { %2252 = vmatprep.subr.bf16.mxu0 %v4278_v31  ;;  %4143 = vmatprep.subr.bf16.mxu1 %v4278_v31  ;;  %v4360_v31 = vld [vmem:[#allocation2 + $0x120] ss:$36 sps:$4 sm:$0xff]  }
  0x9f   : > { %2253 = vmatpush2.bf16.msra.mxu0 %v4280_v32  ;;  %4159 = vmatpush2.bf16.msra.mxu1 %v4280_v32  ;;  %v4361_v32 = vld [vmem:[#allocation2 + $0x360] ss:$36 sps:$4 sm:$0xff]  }
  0xa0   : > { %2254 = vmatprep.subr.bf16.mxu0 %v4281_v33  ;;  %4144 = vmatprep.subr.bf16.mxu1 %v4281_v33  ;;  %v4362_v33 = vld [vmem:[%s5035_s24 + $0x1f0] ss:$8 sps:$4 sm:$0xff]  }
  0xa3   : > { %2255 = vmatpush2.bf16.msra.mxu0 %v4283_v34  ;;  %4160 = vmatpush2.bf16.msra.mxu1 %v4283_v34  ;;  %v4365_v34 = vld [vmem:[%s5035_s24 + $0x2f0] ss:$8 sps:$4 sm:$0xff]  }
  0xa4   : > { %2417 = vmatprep.subr.bf16.mxu1 %v4292_v35  ;;  %2610 = vmatprep.subr.bf16.mxu0 %v4295_v37  ;;  %v4370_v35 = vld [vmem:[%s5035_s24 + $0x1e4] ss:$8 sps:$4 sm:$0xff]  }
  0xa5   : > { %v4374_v37 = vld [vmem:[#allocation2 + $0x16c] ss:$36 sps:$4 sm:$0xff]  }
  0xa6   : > { %2257 = vmatmul.mubr.bf16.vlgmr.msra.gmra.mxu0 %v4284_v36  ;;  %2337 = vmatmul.mubr.bf16.vlgmr.msra.gmra.mxu1 %v4287_v38  ;;  %v4373_v36 = vld [vmem:[%s5035_s24 + $0x2e4] ss:$8 sps:$4 sm:$0xff]  }
  0xa7   : > { %2418 = vmatpush1.bf16.msra.mxu1 %v4290_v40  ;;  %2611 = vmatpush1.bf16.msra.mxu0 %v4293_v41  ;;  %v4376_v38 = vld [vmem:[#allocation2 + $0x3ac] ss:$36 sps:$4 sm:$0xff]   ;;  %v4371_v40 = vld [vmem:[%s5035_s24 + $0x2e0] ss:$8 sps:$4 sm:$0xff]  }
  0xa8   : > { %2419 = vmatprep.subr.bf16.mxu1 %v4298_v42  ;;  %2612 = vmatprep.subr.bf16.mxu0 %v4301_v43  ;;  %v585_v41 = vld [vmem:[%s5808_s2 + $0x48] sm:$0xff]  ;;  %v586_v42 = vld [vmem:[%s5808_s2 + $0x50] sm:$0xff] }
  0xa9   : > { %2266 = vmatprep.mubr.bf16.mxu0 %v4302_v44  ;;  %2346 = vmatprep.mubr.bf16.mxu1 %v4304_v45  ;;  %v4378_v43 = vld [vmem:[#allocation2 + $0x168] ss:$36 sps:$4 sm:$0xff]   ;;  %v4382_v44 = vld [vmem:[%s5035_s24 + $0x1d4] ss:$8 sps:$4 sm:$0xff]  }
  0xaa   : > { %v4385_v45 = vld [vmem:[%s5035_s24 + $0x2d4] ss:$8 sps:$4 sm:$0xff]   ;;  %655 = vperm.xlu1 %4235, %v585_v41   ;;  %660 = vperm.xlu0 %4234, %v586_v42   ;;  %v4451_v42 = vld [vmem:[#allocation2 + $0xa4] ss:$36 sps:$4 sm:$0xff]  }
  0xab   : > { %2420 = vmatpush1.bf16.msra.mxu1 %v4296_v46  ;;  %2613 = vmatpush1.bf16.msra.mxu0 %v4299_v47  ;;  %v4379_v46 = vld [vmem:[#allocation2 + $0x3a8] ss:$36 sps:$4 sm:$0xff]   ;;  %v4380_v47 = vld [vmem:[%s5035_s24 + $0x1d0] ss:$8 sps:$4 sm:$0xff]   ;;  %v4449_v41 = vld [vmem:[#allocation2 + $0x9c] ss:$36 sps:$4 sm:$0xff]  }
  0xac   : > { %2421 = vmatprep.subr.bf16.mxu1 %v4310_v50  ;;  %2614 = vmatprep.subr.bf16.mxu0 %v4313_v51  ;;  %v4391_v50 = vld [vmem:[%s5035_s24 + $0x2c4] ss:$8 sps:$4 sm:$0xff]   ;;  %v4392_v51 = vld [vmem:[#allocation2 + $0x1b4] ss:$36 sps:$4 sm:$0xff]  }
  0xae   : > { %2267 = vmatmul.mubr.bf16.gmra.mxu0 %v4306_v52  ;;  %2347 = vmatmul.mubr.bf16.gmra.mxu1 %v4307_v53  ;;  %v4386_v52 = vld [vmem:[%s5035_s24 + $0x1c0] ss:$8 sps:$4 sm:$0xff]   ;;  %v4394_v53 = vld [vmem:[#allocation2 + $0x3f4] ss:$36 sps:$4 sm:$0xff]  }
  0xaf   : > { %2422 = vmatpush1.bf16.msra.mxu1 %v4308_v54  ;;  %2615 = vmatpush1.bf16.msra.mxu0 %v4311_v55  ;;  %v4389_v54 = vld [vmem:[%s5035_s24 + $0x2c0] ss:$8 sps:$4 sm:$0xff]   ;;  %v4400_v55 = vld [vmem:[%s5035_s24 + $0x1b4] ss:$8 sps:$4 sm:$0xff]  }
  0xb0   : > { %2423 = vmatprep.subr.bf16.mxu1 %v4316_v56  ;;  %2616 = vmatprep.subr.bf16.mxu0 %v4319_v57  ;;  %v587_v56 = vld [vmem:[%s5808_s2 + $0x58] sm:$0xff]  ;;  %v588_v57 = vld [vmem:[%s5808_s2 + $0x60] sm:$0xff] }
  0xb1   : > { %2276 = vmatprep.mubr.bf16.mxu0 %v4320_v59  ;;  %2356 = vmatprep.mubr.bf16.mxu1 %v4322_v60  ;;  %v4396_v59 = vld [vmem:[#allocation2 + $0x1b0] ss:$36 sps:$4 sm:$0xff]  }
  0xb2   : > { %v4397_v60 = vld [vmem:[#allocation2 + $0x3f0] ss:$36 sps:$4 sm:$0xff]   ;;  %665 = vperm.xlu1 %4235, %v587_v56   ;;  %670 = vperm.xlu0 %4234, %v588_v57  }
  0xb3   : > { %2424 = vmatpush1.bf16.msra.mxu1 %v4314_v58  ;;  %2617 = vmatpush1.bf16.msra.mxu0 %v4317_v61  ;;  %v4403_v58 = vld [vmem:[%s5035_s24 + $0x2b4] ss:$8 sps:$4 sm:$0xff]   ;;  %v4398_v61 = vld [vmem:[%s5035_s24 + $0x1b0] ss:$8 sps:$4 sm:$0xff]  }
  0xb4   : > { %2425 = vmatprep.subr.bf16.mxu1 %v4328_v2  ;;  %2618 = vmatprep.subr.bf16.mxu0 %v4331_v3  ;;  %v4404_v2 = vld [vmem:[%s5035_s24 + $0x1a0] ss:$8 sps:$4 sm:$0xff]   ;;  %v4463_v56 = vld [vmem:[#allocation2 + $0xec] ss:$36 sps:$4 sm:$0xff]  }
  0xb5   : > { %v4410_v3 = vld [vmem:[#allocation2 + $0x1fc] ss:$36 sps:$4 sm:$0xff]   ;;  %v4476_v57 = vld [vmem:[%s5035_s24 + $0x330] ss:$8 sps:$4 sm:$0xff]  }
  0xb6   : > { %2277 = vmatmul.mubr.bf16.gmra.mxu0 %v4324_v1  ;;  %2357 = vmatmul.mubr.bf16.gmra.mxu1 %v4325_v4  ;;  %v4409_v1 = vld [vmem:[%s5035_s24 + $0x2a4] ss:$8 sps:$4 sm:$0xff]   ;;  %v4412_v4 = vld [vmem:[#allocation2 + $0x43c] ss:$36 sps:$4 sm:$0xff]  }
  0xb7   : > { %2426 = vmatpush1.bf16.msra.mxu1 %v4326_v5  ;;  %2619 = vmatpush1.bf16.msra.mxu0 %v4329_v6  ;;  %v4407_v5 = vld [vmem:[%s5035_s24 + $0x2a0] ss:$8 sps:$4 sm:$0xff]   ;;  %v4418_v6 = vld [vmem:[%s5035_s24 + $0x194] ss:$8 sps:$4 sm:$0xff]  }
  0xb8   : > { %2427 = vmatprep.subr.bf16.mxu1 %v4334_v7  ;;  %2620 = vmatprep.subr.bf16.mxu0 %v4337_v8  ;;  %v589_v7 = vld [vmem:[%s5808_s2 + $0x68] sm:$0xff]  ;;  %v590_v8 = vld [vmem:[%s5808_s2 + $0x70] sm:$0xff] }
  0xb9   : > { %2286 = vmatprep.mubr.bf16.mxu0 %v4338_v9  ;;  %2366 = vmatprep.mubr.bf16.mxu1 %v4340_v11  ;;  %v4421_v9 = vld [vmem:[%s5035_s24 + $0x294] ss:$8 sps:$4 sm:$0xff]  }
  0xba   : > { %v4415_v11 = vld [vmem:[#allocation2 + $0x438] ss:$36 sps:$4 sm:$0xff]   ;;  %675 = vperm.xlu1 %4235, %v589_v7   ;;  %680 = vperm.xlu0 %4234, %v590_v8  }
  0xbb   : > { %2428 = vmatpush1.bf16.msra.mxu1 %v4332_v10  ;;  %2621 = vmatpush1.bf16.msra.mxu0 %v4335_v12  ;;  %v4414_v10 = vld [vmem:[#allocation2 + $0x1f8] ss:$36 sps:$4 sm:$0xff]  }
  0xbc   : > { %2429 = vmatprep.subr.bf16.mxu1 %v4346_v13  ;;  %2622 = vmatprep.subr.bf16.mxu0 %v4349_v16  ;;  %v4416_v12 = vld [vmem:[%s5035_s24 + $0x190] ss:$8 sps:$4 sm:$0xff]   ;;  %v4422_v16 = vld [vmem:[%s5035_s24 + $0x180] ss:$8 sps:$4 sm:$0xff]  }
  0xbd   : > { %v4419_v13 = vld [vmem:[%s5035_s24 + $0x290] ss:$8 sps:$4 sm:$0xff]  }
  0xbe   : > { %2287 = vmatmul.mubr.bf16.gmra.mxu0 %v4342_v17  ;;  %2367 = vmatmul.mubr.bf16.gmra.mxu1 %v4343_v18  ;;  %v4425_v17 = vld [vmem:[%s5035_s24 + $0x280] ss:$8 sps:$4 sm:$0xff]   ;;  %v4430_v18 = vld [vmem:[#allocation2 + $0xc] ss:$36 sps:$4 sm:$0xff]   ;;  %v4472_v7 = vld [vmem:[#allocation2 + $0x134] ss:$36 sps:$4 sm:$0xff]  }
  0xbf   : > { %2430 = vmatpush1.bf16.msra.mxu1 %v4344_v19  ;;  %2623 = vmatpush1.bf16.msra.mxu0 %v4347_v20  ;;  %v4433_v19 = vld [vmem:[#allocation2 + $0x14] ss:$36 sps:$4 sm:$0xff]  }
  0xc0   : > { %2431 = vmatprep.subr.bf16.mxu1 %v4352_v21  ;;  %2624 = vmatprep.subr.bf16.mxu0 %v4355_v22  ;;  %v591_v20 = vld [vmem:[%s5808_s2 + $0x78] sm:$0xff]  ;;  %v592_v21 = vld [vmem:[%s5808_s2 + $0x80] sm:$0xff] }
  0xc1   : > { %2296 = vmatprep.mubr.bf16.mxu0 %v4356_v25  ;;  %2376 = vmatprep.mubr.bf16.mxu1 %v4358_v26  ;;  %v4436_v22 = vld [vmem:[%s5035_s24 + $0x374] ss:$8 sps:$4 sm:$0xff]   ;;  %v4434_v26 = vld [vmem:[%s5035_s24 + $0x370] ss:$8 sps:$4 sm:$0xff]  }
  0xc2   : > { %v4431_v25 = vld [vmem:[#allocation2 + $0x10] ss:$36 sps:$4 sm:$0xff]   ;;  %685 = vperm.xlu1 %4235, %v591_v20   ;;  %690 = vperm.xlu0 %4234, %v592_v21   ;;  %v607_v20 = vld [vmem:[%s5808_s2 + $0xf8] sm:$0xff] }
  0xc3   : > { %2432 = vmatpush1.bf16.msra.mxu1 %v4350_v23  ;;  %2625 = vmatpush1.bf16.msra.mxu0 %v4353_v24  ;;  %v4439_v23 = vld [vmem:[%s5035_s24 + $0x474] ss:$8 sps:$4 sm:$0xff]   ;;  %v4428_v24 = vld [vmem:[#allocation2 + $0x8] ss:$36 sps:$4 sm:$0xff]   ;;  %v4497_v8 = vld [vmem:[%s5035_s24 + $0x310] ss:$8 sps:$4 sm:$0xff]  }
  0xc4   : > { %2433 = vmatprep.subr.bf16.mxu1 %v4364_v27  ;;  %2626 = vmatprep.subr.bf16.mxu0 %v4367_v30  ;;  %v4437_v27 = vld [vmem:[%s5035_s24 + $0x470] ss:$8 sps:$4 sm:$0xff]   ;;  %v4446_v30 = vld [vmem:[%s5035_s24 + $0x360] ss:$8 sps:$4 sm:$0xff]  }
  0xc5   : > { %v4484_v21 = vld [vmem:[#allocation2 + $0x17c] ss:$36 sps:$4 sm:$0xff]  }
  0xc6   : > { %2297 = vmatmul.mubr.bf16.gmra.mxu0 %v4360_v31  ;;  %2377 = vmatmul.mubr.bf16.gmra.mxu1 %v4361_v32  ;;  %v4448_v31 = vld [vmem:[%s5035_s24 + $0x364] ss:$8 sps:$4 sm:$0xff]  }
  0xc7   : > { %2434 = vmatpush2.bf16.msra.mxu1 %v4362_v33  ;;  %2627 = vmatpush2.bf16.msra.mxu0 %v4365_v34  ;;  %v593_v32 = vld [vmem:[%s5808_s2 + $0x88] sm:$0xff]  ;;  %v594_v33 = vld [vmem:[%s5808_s2 + $0x90] sm:$0xff] }
  0xc8   : > { %2435 = vmatprep.subr.bf16.mxu1 %v4370_v35  ;;  %2628 = vmatprep.subr.bf16.mxu0 %v4373_v36  ;;  %v4460_v34 = vld [vmem:[%s5035_s24 + $0x464] ss:$8 sps:$4 sm:$0xff]   ;;  %v4458_v35 = vld [vmem:[%s5035_s24 + $0x460] ss:$8 sps:$4 sm:$0xff]   ;;  %v4444_v36 = vld [vmem:[#allocation2 + $0x50] ss:$36 sps:$4 sm:$0xff]  }
  0xc9   : > { %2306 = vmatprep.mubr.bf16.mxu0 %v4374_v37  ;;  %2386 = vmatprep.mubr.bf16.mxu1 %v4376_v38  ;;  %v4457_v37 = vld [vmem:[%s5035_s24 + $0x354] ss:$8 sps:$4 sm:$0xff]  }
  0xca   : > { %v4481_v38 = vld [vmem:[%s5035_s24 + $0x454] ss:$8 sps:$4 sm:$0xff]   ;;  %695 = vperm.xlu1 %4235, %v593_v32   ;;  %700 = vperm.xlu0 %4234, %v594_v33   ;;  %v4586_v32 = vld [vmem:[%s5035_s24 + $0x404] ss:$8 sps:$4 sm:$0xff]  }
  0xcb   : > { %2436 = vmatpush2.bf16.msra.mxu1 %v4368_v39  ;;  %2629 = vmatpush2.bf16.msra.mxu0 %v4371_v40  ;;  %v4445_v39 = vld [vmem:[#allocation2 + $0x58] ss:$36 sps:$4 sm:$0xff]   ;;  %v4493_v33 = vld [vmem:[#allocation2 + $0x1c4] ss:$36 sps:$4 sm:$0xff]  }
  0xcc   : > { %2437 = vmatprep.subr.bf16.mxu1 %v4382_v44  ;;  %2630 = vmatprep.subr.bf16.mxu0 %v4385_v45  ;;  %v595_v40 = vld [vmem:[%s5808_s2 + $0x98] sm:$0xff]  ;;  %v596_v44 = vld [vmem:[%s5808_s2 + $0xa0] sm:$0xff] }
  0xcd   : > { %v4469_v45 = vld [vmem:[%s5035_s24 + $0x344] ss:$8 sps:$4 sm:$0xff]  }
  0xce   : > { %2307 = vmatmul.mubr.bf16.gmra.mxu0 %v4378_v43  ;;  %2387 = vmatmul.mubr.bf16.gmra.mxu1 %v4379_v46  ;;  %v4455_v43 = vld [vmem:[%s5035_s24 + $0x350] ss:$8 sps:$4 sm:$0xff]   ;;  %v597_v46 = vld [vmem:[%s5808_s2 + $0xa8] sm:$0xff] }
  0xcf   : > { %2438 = vmatpush2.bf16.msra.mxu1 %v4380_v47  ;;  %2631 = vmatpush2.bf16.msra.mxu0 %v4383_v48  ;;  %v4479_v47 = vld [vmem:[%s5035_s24 + $0x450] ss:$8 sps:$4 sm:$0xff]   ;;  %v4502_v48 = vld [vmem:[%s5035_s24 + $0x444] ss:$8 sps:$4 sm:$0xff]  }
  0xd0   : > { %2439 = vmatprep.subr.bf16.mxu1 %v4388_v49  ;;  %2632 = vmatprep.subr.bf16.mxu0 %v4391_v50  ;;  %v4453_v49 = vld [vmem:[#allocation2 + $0x98] ss:$36 sps:$4 sm:$0xff]   ;;  %v4454_v50 = vld [vmem:[#allocation2 + $0xa0] ss:$36 sps:$4 sm:$0xff]  }
  0xd1   : > { %2316 = vmatprep.mubr.bf16.mxu0 %v4392_v51  ;;  %2396 = vmatprep.mubr.bf16.mxu1 %v4394_v53  ;;  %v4467_v51 = vld [vmem:[%s5035_s24 + $0x340] ss:$8 sps:$4 sm:$0xff]   ;;  %v4478_v53 = vld [vmem:[%s5035_s24 + $0x334] ss:$8 sps:$4 sm:$0xff]  }
  0xd2   : > { %705 = vperm.xlu1 %4235, %v595_v40   ;;  %710 = vperm.xlu0 %4234, %v596_v44   ;;  %v4562_v40 = vld [vmem:[%s5035_s24 + $0x3b4] ss:$8 sps:$4 sm:$0xff]   ;;  %v4574_v44 = vld [vmem:[%s5035_s24 + $0x3a4] ss:$8 sps:$4 sm:$0xff]  }
  0xd3   : > { %2440 = vmatpush2.bf16.msra.mxu1 %v4386_v52  ;;  %2633 = vmatpush2.bf16.msra.mxu0 %v4389_v54  ;;  %v598_v52 = vld [vmem:[%s5808_s2 + $0xb0] sm:$0xff]  ;;  %v4461_v54 = vld [vmem:[#allocation2 + $0xe4] ss:$36 sps:$4 sm:$0xff]  }
  0xd4   : > { %2441 = vmatprep.subr.bf16.mxu1 %v4400_v55  ;;  %2634 = vmatprep.subr.bf16.mxu0 %v4403_v58  ;;  %v599_v55 = vld [vmem:[%s5808_s2 + $0xb8] sm:$0xff]  ;;  %v600_v58 = vld [vmem:[%s5808_s2 + $0xc0] sm:$0xff] }
  0xd6   : > { %2317 = vmatmul.mubr.bf16.gmra.mxu0 %v4396_v59  ;;  %2397 = vmatmul.mubr.bf16.gmra.mxu1 %v4397_v60  ;;  %v4490_v59 = vld [vmem:[%s5035_s24 + $0x324] ss:$8 sps:$4 sm:$0xff]  }
  0xd7   : > { %2442 = vmatpush2.bf16.msra.mxu1 %v4398_v61  ;;  %2635 = vmatpush2.bf16.msra.mxu0 %v4401_v62  ;;  %v601_v60 = vld [vmem:[%s5808_s2 + $0xc8] sm:$0xff] }
  0xd8   : > { %2443 = vmatprep.subr.bf16.mxu1 %v4406_v63  ;;  %2636 = vmatprep.subr.bf16.mxu0 %v4409_v1  ;;  %v4500_v61 = vld [vmem:[%s5035_s24 + $0x440] ss:$8 sps:$4 sm:$0xff]   ;;  %v4523_v63 = vld [vmem:[%s5035_s24 + $0x434] ss:$8 sps:$4 sm:$0xff]  }
  0xd9   : > { %2326 = vmatprep.mubr.bf16.mxu0 %v4410_v3  ;;  %2406 = vmatprep.mubr.bf16.mxu1 %v4412_v4  ;;  %v4488_v62 = vld [vmem:[%s5035_s24 + $0x320] ss:$8 sps:$4 sm:$0xff]   ;;  %v602_v3 = vld [vmem:[%s5808_s2 + $0xd0] sm:$0xff] }
  0xda   : > { %715 = vperm.xlu1 %4235, %v597_v46   ;;  %720 = vperm.xlu0 %4234, %v598_v52   ;;  %v4465_v1 = vld [vmem:[#allocation2 + $0xe0] ss:$36 sps:$4 sm:$0xff]   ;;  %v4499_v4 = vld [vmem:[%s5035_s24 + $0x314] ss:$8 sps:$4 sm:$0xff]  }
  0xdb   : > { %2444 = vmatpush2.bf16.msra.mxu1 %v4404_v2  ;;  %2637 = vmatpush2.bf16.msra.mxu0 %v4407_v5  ;;  %v4466_v2 = vld [vmem:[#allocation2 + $0xe8] ss:$36 sps:$4 sm:$0xff]  }
  0xdc   : > { %2445 = vmatprep.subr.bf16.mxu1 %v4418_v6  ;;  %2638 = vmatprep.subr.bf16.mxu0 %v4421_v9  ;;  %v4470_v5 = vld [vmem:[#allocation2 + $0x12c] ss:$36 sps:$4 sm:$0xff]   ;;  %v603_v6 = vld [vmem:[%s5808_s2 + $0xd8] sm:$0xff]  ;;  %v604_v9 = vld [vmem:[%s5808_s2 + $0xe0] sm:$0xff] }
  0xdd   : > { %v4572_v46 = vld [vmem:[%s5035_s24 + $0x3a0] ss:$8 sps:$4 sm:$0xff]   ;;  %v4595_v52 = vld [vmem:[%s5035_s24 + $0x384] ss:$8 sps:$4 sm:$0xff]  }
  0xde   : > { %2327 = vmatmul.mubr.bf16.gmra.mxu0 %v4414_v10  ;;  %2407 = vmatmul.mubr.bf16.gmra.mxu1 %v4415_v11  ;;  %v4511_v10 = vld [vmem:[%s5035_s24 + $0x304] ss:$8 sps:$4 sm:$0xff]  }
  0xdf   : > { %2446 = vmatpush2.bf16.msra.mxu1 %v4416_v12  ;;  %2639 = vmatpush2.bf16.msra.mxu0 %v4419_v13  ;;  %v605_v11 = vld [vmem:[%s5808_s2 + $0xe8] sm:$0xff]  ;;  %v4521_v12 = vld [vmem:[%s5035_s24 + $0x430] ss:$8 sps:$4 sm:$0xff]  }
  0xe0   : > { %2447 = vmatprep.subr.bf16.mxu1 %v4424_v14  ;;  %2640 = vmatprep.subr.bf16.mxu0 %v4427_v15  ;;  %v4509_v13 = vld [vmem:[%s5035_s24 + $0x300] ss:$8 sps:$4 sm:$0xff]   ;;  %v4544_v14 = vld [vmem:[%s5035_s24 + $0x424] ss:$8 sps:$4 sm:$0xff]  }
  0xe1   : > { %2449 = vmatprep.mubr.bf16.mxu1 %v4430_v18  ;;  %2642 = vmatprep.mubr.bf16.mxu0 %v4433_v19  ;;  %v4474_v15 = vld [vmem:[#allocation2 + $0x128] ss:$36 sps:$4 sm:$0xff]   ;;  %v4482_v18 = vld [vmem:[#allocation2 + $0x174] ss:$36 sps:$4 sm:$0xff]  }
  0xe2   : > { %725 = vperm.xlu1 %4235, %v599_v55   ;;  %730 = vperm.xlu0 %4234, %v600_v58   ;;  %v4520_v19 = vld [vmem:[%s5035_s24 + $0x3f4] ss:$8 sps:$4 sm:$0xff]   ;;  %v4593_v55 = vld [vmem:[%s5035_s24 + $0x380] ss:$8 sps:$4 sm:$0xff]  }
  0xe3   : > { %2448 = vmatpush2.bf16.msra.mxu1 %v4422_v16  ;;  %2641 = vmatpush2.bf16.msra.mxu0 %v4425_v17  ;;  %v4475_v16 = vld [vmem:[#allocation2 + $0x130] ss:$36 sps:$4 sm:$0xff]  }
  0xe4   : > { %2803 = vmatprep.subr.bf16.mxu1 %v4436_v22  ;;  %2996 = vmatprep.subr.bf16.mxu0 %v4439_v23  ;;  %v606_v17 = vld [vmem:[%s5808_s2 + $0xf0] sm:$0xff]  ;;  %v4532_v23 = vld [vmem:[%s5035_s24 + $0x3e4] ss:$8 sps:$4 sm:$0xff]  }
  0xe5   : > { %v4518_v22 = vld [vmem:[%s5035_s24 + $0x3f0] ss:$8 sps:$4 sm:$0xff]  }
  0xe6   : > { %2450 = vmatmul.mubr.bf16.vlgmr.msra.gmra.mxu1 %v4428_v24  ;;  %2643 = vmatmul.mubr.bf16.vlgmr.msra.gmra.mxu0 %v4431_v25  ;;  %v4542_v24 = vld [vmem:[%s5035_s24 + $0x420] ss:$8 sps:$4 sm:$0xff]   ;;  %v4565_v25 = vld [vmem:[%s5035_s24 + $0x414] ss:$8 sps:$4 sm:$0xff]  }
  0xe7   : > { %2804 = vmatpush1.bf16.msra.mxu1 %v4434_v26  ;;  %2997 = vmatpush1.bf16.msra.mxu0 %v4437_v27  ;;  %v4530_v26 = vld [vmem:[%s5035_s24 + $0x3e0] ss:$8 sps:$4 sm:$0xff]   ;;  %v4486_v27 = vld [vmem:[#allocation2 + $0x170] ss:$36 sps:$4 sm:$0xff]  }
  0xe8   : > { %2459 = vmatprep.mubr.bf16.mxu1 %v4440_v28  ;;  %2652 = vmatprep.mubr.bf16.mxu0 %v4442_v29  ;;  %v4487_v28 = vld [vmem:[#allocation2 + $0x178] ss:$36 sps:$4 sm:$0xff]   ;;  %v4528_v58 = vld [vmem:[#allocation2 + $0x290] ss:$36 sps:$4 sm:$0xff]  }
  0xe9   : > { %2805 = vmatprep.subr.bf16.mxu1 %v4448_v31  ;;  %2998 = vmatprep.subr.bf16.mxu0 %v4460_v34  ;;  %v4563_v29 = vld [vmem:[%s5035_s24 + $0x410] ss:$8 sps:$4 sm:$0xff]   ;;  %v4491_v31 = vld [vmem:[#allocation2 + $0x1bc] ss:$36 sps:$4 sm:$0xff]  }
  0xea   : > { %735 = vperm.xlu1 %4235, %v601_v60   ;;  %740 = vperm.xlu0 %4234, %v602_v3   ;;  %v4539_v34 = vld [vmem:[%s5035_s24 + $0x3d0] ss:$8 sps:$4 sm:$0xff]   ;;  %v4533_v60 = vld [vmem:[#allocation2 + $0x2dc] ss:$36 sps:$4 sm:$0xff]  }
  0xeb   : > { %2806 = vmatpush1.bf16.msra.mxu1 %v4446_v30  ;;  %2999 = vmatpush1.bf16.msra.mxu0 %v4458_v35  ;;  %v4541_v30 = vld [vmem:[%s5035_s24 + $0x3d4] ss:$8 sps:$4 sm:$0xff]   ;;  %v4584_v35 = vld [vmem:[%s5035_s24 + $0x400] ss:$8 sps:$4 sm:$0xff]  }
  0xec   : > { %2807 = vmatprep.subr.bf16.mxu1 %v4457_v37  ;;  %3000 = vmatprep.subr.bf16.mxu0 %v4481_v38  ;;  %v4495_v37 = vld [vmem:[#allocation2 + $0x1b8] ss:$36 sps:$4 sm:$0xff]   ;;  %v4496_v38 = vld [vmem:[#allocation2 + $0x1c0] ss:$36 sps:$4 sm:$0xff]  }
  0xed   : > { %v4549_v3 = vld [vmem:[#allocation2 + $0x320] ss:$36 sps:$4 sm:$0xff]  }
  0xee   : > { %2460 = vmatmul.mubr.bf16.gmra.mxu1 %v4444_v36  ;;  %2653 = vmatmul.mubr.bf16.gmra.mxu0 %v4445_v39  ;;  %v4553_v36 = vld [vmem:[%s5035_s24 + $0x3c4] ss:$8 sps:$4 sm:$0xff]   ;;  %v4551_v39 = vld [vmem:[%s5035_s24 + $0x3c0] ss:$8 sps:$4 sm:$0xff]  }
  0xef   : > { %2469 = vmatprep.mubr.bf16.mxu1 %v4449_v41  ;;  %2662 = vmatprep.mubr.bf16.mxu0 %v4451_v42  ;;  %v4503_v41 = vld [vmem:[#allocation2 + $0x204] ss:$36 sps:$4 sm:$0xff]   ;;  %v4505_v42 = vld [vmem:[#allocation2 + $0x20c] ss:$36 sps:$4 sm:$0xff]  }
  0xf0   : > { %2808 = vmatpush1.bf16.msra.mxu1 %v4455_v43  ;;  %3001 = vmatpush1.bf16.msra.mxu0 %v4479_v47  ;;  %v4560_v43 = vld [vmem:[%s5035_s24 + $0x3b0] ss:$8 sps:$4 sm:$0xff]   ;;  %v4583_v47 = vld [vmem:[%s5035_s24 + $0x394] ss:$8 sps:$4 sm:$0xff]  }
  0xf1   : > { %2809 = vmatprep.subr.bf16.mxu1 %v4469_v45  ;;  %3002 = vmatprep.subr.bf16.mxu0 %v4502_v48  ;;  %v4507_v45 = vld [vmem:[#allocation2 + $0x200] ss:$36 sps:$4 sm:$0xff]   ;;  %v4508_v48 = vld [vmem:[#allocation2 + $0x208] ss:$36 sps:$4 sm:$0xff]  }
  0xf2   : > { %745 = vperm.xlu1 %4235, %v603_v6   ;;  %750 = vperm.xlu0 %4234, %v604_v9   ;;  %v4556_v6 = vld [vmem:[#allocation2 + $0x374] ss:$36 sps:$4 sm:$0xff]  }
  0xf3   : > { %v4566_v9 = vld [vmem:[#allocation2 + $0x3b4] ss:$36 sps:$4 sm:$0xff]  }
  0xf4   : > { %2810 = vmatpush1.bf16.msra.mxu1 %v4467_v51  ;;  %3003 = vmatpush1.bf16.msra.mxu0 %v4500_v61  ;;  %v4581_v51 = vld [vmem:[%s5035_s24 + $0x390] ss:$8 sps:$4 sm:$0xff]   ;;  %v4535_v61 = vld [vmem:[#allocation2 + $0x2e4] ss:$36 sps:$4 sm:$0xff]   ;;  %s3767_s24 = sshll.u32 %s5032_s28, 8 }
  0xf5   : > { %2811 = vmatprep.subr.bf16.mxu1 %v4478_v53  ;;  %3004 = vmatprep.subr.bf16.mxu0 %v4523_v63  ;;  %v4516_v53 = vld [vmem:[#allocation2 + $0x248] ss:$36 sps:$4 sm:$0xff]   ;;  %v4538_v63 = vld [vmem:[#allocation2 + $0x2e0] ss:$36 sps:$4 sm:$0xff]   ;;  %s5623_s11 = scalar_lea.vmem [#allocation7], %s3767_s24  ;;  %s5635_s5 = scalar_lea.vmem [#allocation8], %s3767_s24 }
  0xf6   : > { %2470 = vmatmul.mubr.bf16.gmra.mxu1 %v4453_v49  ;;  %2663 = vmatmul.mubr.bf16.gmra.mxu0 %v4454_v50  ;;  %v4512_v49 = vld [vmem:[#allocation2 + $0x24c] ss:$36 sps:$4 sm:$0xff]   ;;  %v4514_v50 = vld [vmem:[#allocation2 + $0x254] ss:$36 sps:$4 sm:$0xff]   ;;  %s3651_s20 = sshll.u32 %s5635_s5, 4  ;;  %s5762_s20 = int_to_ptr.vmem [resolvable:$true] %s3651_s20 }
  0xf7   : > { %2479 = vmatprep.mubr.bf16.mxu1 %v4461_v54  ;;  %2672 = vmatprep.mubr.bf16.mxu0 %v4463_v56  ;;  %v4517_v54 = vld [vmem:[#allocation2 + $0x250] ss:$36 sps:$4 sm:$0xff]   ;;  %s4742_s10 = scalar_lea.vmem %s5762_s20, 4096  ;;  %p4749_p2 = scmp.lt.s32.totalorder %s5762_s20, %s4747_s9 }
  0xf8   : > { %2812 = vmatpush1.bf16.msra.mxu1 %v4476_v57  ;;  %755 = vperm.xlu1 %4235, %v605_v11   ;;  %v4524_v56 = vld [vmem:[#allocation2 + $0x294] ss:$36 sps:$4 sm:$0xff]   ;;  %v4526_v57 = vld [vmem:[#allocation2 + $0x29c] ss:$36 sps:$4 sm:$0xff]   ;;  %p4743_p12 = scmp.ne.s32.totalorder %s5762_s20, %s4742_s10  ;;  %p4750_p4 = scmp.lt.s32.totalorder %s4748_s23, %s4742_s10 }
  0xf9   : > { %2813 = vmatprep.subr.bf16.mxu1 %v4490_v59  ;;  %3005 = vmatpush1.bf16.msra.mxu0 %v4521_v12  ;;  %v4529_v59 = vld [vmem:[#allocation2 + $0x298] ss:$36 sps:$4 sm:$0xff]   ;;  %v4570_v11 = vld [vmem:[#allocation2 + $0x3b0] ss:$36 sps:$4 sm:$0xff]  }
  0xfa   : > { %3006 = vmatprep.subr.bf16.mxu0 %v4544_v14  ;;  %760 = vperm.xlu0 %4234, %v606_v17   ;;  %v4571_v12 = vld [vmem:[#allocation2 + $0x3b8] ss:$36 sps:$4 sm:$0xff]   ;;  %v4577_v14 = vld [vmem:[#allocation2 + $0x404] ss:$36 sps:$4 sm:$0xff]   ;;  %p4744_p8 = pnand %p4743_p12, %p5918_p1  ;;  %p4751_p5 = por %p4750_p4, %p4749_p2 }
  0xfb   : > { %v4587_v17 = vld [vmem:[#allocation2 + $0x444] ss:$36 sps:$4 sm:$0xff]  }
  0xfc   : > { %2814 = vmatpush1.bf16.msra.mxu1 %v4488_v62  ;;  %765 = vperm.xlu1 %4235, %v607_v20   ;;  %v4537_v62 = vld [vmem:[#allocation2 + $0x2d8] ss:$36 sps:$4 sm:$0xff]   ;;  %v4592_v20 = vld [vmem:[#allocation2 + $0x448] ss:$36 sps:$4 sm:$0xff]   ;;  %p4745_p10 = pneg %p4744_p8 }
  0xfd   : > { %2815 = vmatprep.subr.bf16.mxu1 %v4499_v4  ;;  %3007 = vmatpush1.bf16.msra.mxu0 %v4542_v24  ;;  %v4550_v4 = vld [vmem:[#allocation2 + $0x328] ss:$36 sps:$4 sm:$0xff]  }
  0xfe   : > { %2480 = vmatmul.mubr.bf16.gmra.mxu1 %v4465_v1  ;;  %2673 = vmatmul.mubr.bf16.gmra.mxu0 %v4466_v2  ;;  %v4545_v1 = vld [vmem:[#allocation2 + $0x324] ss:$36 sps:$4 sm:$0xff]   ;;  %v4547_v2 = vld [vmem:[#allocation2 + $0x32c] ss:$36 sps:$4 sm:$0xff]   ;;  %p4752_p9 = pnand %p4751_p5, %p4745_p10 }
  0xff   : > { %2489 = vmatprep.mubr.bf16.mxu1 %v4470_v5  ;;  %2682 = vmatprep.mubr.bf16.mxu0 %v4472_v7  ;;  %v4554_v5 = vld [vmem:[#allocation2 + $0x36c] ss:$36 sps:$4 sm:$0xff]   ;;  %v4600_v24 = vld [vmem:[#allocation2 + $0x64] ss:$36 sps:$4 sm:$0xff]  }
 0x100   : > { %2816 = vmatpush1.bf16.msra.mxu1 %v4497_v8  ;;  %3008 = vmatprep.subr.bf16.mxu0 %v4565_v25  ;;  %v4558_v7 = vld [vmem:[#allocation2 + $0x368] ss:$36 sps:$4 sm:$0xff]   ;;  %v4559_v8 = vld [vmem:[#allocation2 + $0x370] ss:$36 sps:$4 sm:$0xff]  }
 0x101   : > { %2817 = vmatprep.subr.bf16.mxu1 %v4511_v10  ;;  %3009 = vmatpush1.bf16.msra.mxu0 %v4563_v29  ;;  %v4568_v10 = vld [vmem:[#allocation2 + $0x3bc] ss:$36 sps:$4 sm:$0xff]  }
 0x102   : > { %3010 = vmatprep.subr.bf16.mxu0 %v4586_v32  ;;  %v4603_v32 = vld [vmem:[#allocation2 + $0x68] ss:$36 sps:$4 sm:$0xff]  }
 0x104   : > { %2818 = vmatpush1.bf16.msra.mxu1 %v4509_v13  ;;  %v4575_v13 = vld [vmem:[#allocation2 + $0x3fc] ss:$36 sps:$4 sm:$0xff]  }
 0x105   : > { %2819 = vmatprep.subr.bf16.mxu1 %v4520_v19  ;;  %3011 = vmatpush1.bf16.msra.mxu0 %v4584_v35  ;;  %v4591_v19 = vld [vmem:[#allocation2 + $0x440] ss:$36 sps:$4 sm:$0xff]  }
 0x106   : > { %2490 = vmatmul.mubr.bf16.gmra.mxu1 %v4474_v15  ;;  %2683 = vmatmul.mubr.bf16.gmra.mxu0 %v4475_v16  ;;  %v4579_v15 = vld [vmem:[#allocation2 + $0x3f8] ss:$36 sps:$4 sm:$0xff]   ;;  %v4580_v16 = vld [vmem:[#allocation2 + $0x400] ss:$36 sps:$4 sm:$0xff]  }
 0x107   : > { %2499 = vmatprep.mubr.bf16.mxu1 %v4482_v18  ;;  %2692 = vmatprep.mubr.bf16.mxu0 %v4484_v21  ;;  %v4589_v18 = vld [vmem:[#allocation2 + $0x44c] ss:$36 sps:$4 sm:$0xff]   ;;  %v4598_v21 = vld [vmem:[#allocation2 + $0x1c] ss:$36 sps:$4 sm:$0xff]  }
 0x108   : > { %2820 = vmatpush2.bf16.msra.mxu1 %v4518_v22  ;;  %v4596_v22 = vld [vmem:[#allocation2 + $0x18] ss:$36 sps:$4 sm:$0xff]  }
 0x109   : > { %2821 = vmatprep.subr.bf16.mxu1 %v4532_v23  ;;  %v4599_v23 = vld [vmem:[#allocation2 + $0x20] ss:$36 sps:$4 sm:$0xff]  }
 0x10c   : > { %2822 = vmatpush2.bf16.msra.mxu1 %v4530_v26 }
 0x10d   : > { %2823 = vmatprep.subr.bf16.mxu1 %v4541_v30 }
 0x10e   : > { %2500 = vmatmul.mubr.bf16.gmra.mxu1 %v4486_v27  ;;  %2693 = vmatmul.mubr.bf16.gmra.mxu0 %v4487_v28 }
 0x10f   : > { %2509 = vmatprep.mubr.bf16.mxu1 %v4491_v31  ;;  %2702 = vmatprep.mubr.bf16.mxu0 %v4493_v33  ;;  %v4602_v31 = vld [vmem:[#allocation2 + $0x60] ss:$36 sps:$4 sm:$0xff]   ;;  %v4604_v33 = vld [vmem:[#allocation2 + $0xac] ss:$36 sps:$4 sm:$0xff]  }
 0x110   : > { %2824 = vmatpush2.bf16.msra.mxu1 %v4539_v34 }
 0x111   : > { %2825 = vmatprep.subr.bf16.mxu1 %v4553_v36 }
 0x114   : > { %2826 = vmatpush2.bf16.msra.mxu1 %v4551_v39 }
 0x115   : > { %2827 = vmatprep.subr.bf16.mxu1 %v4562_v40 }
 0x116   : > { %2510 = vmatmul.mubr.bf16.gmra.mxu1 %v4495_v37  ;;  %2703 = vmatmul.mubr.bf16.gmra.mxu0 %v4496_v38 }
 0x117   : > { %2519 = vmatprep.mubr.bf16.mxu1 %v4503_v41  ;;  %2712 = vmatprep.mubr.bf16.mxu0 %v4505_v42  ;;  %v4606_v42 = vld [vmem:[#allocation2 + $0xa8] ss:$36 sps:$4 sm:$0xff]  }
 0x118   : > { %2828 = vmatpush2.bf16.msra.mxu1 %v4560_v43  ;;  %v4607_v43 = vld [vmem:[#allocation2 + $0xb0] ss:$36 sps:$4 sm:$0xff]  }
 0x119   : > { %2829 = vmatprep.subr.bf16.mxu1 %v4574_v44  ;;  %v4608_v44 = vld [vmem:[#allocation2 + $0xf4] ss:$36 sps:$4 sm:$0xff]  }
 0x11c   : > { %2830 = vmatpush2.bf16.msra.mxu1 %v4572_v46 }
 0x11d   : > { %2831 = vmatprep.subr.bf16.mxu1 %v4583_v47 }
 0x11e   : > { %2520 = vmatmul.mubr.bf16.gmra.mxu1 %v4507_v45  ;;  %2713 = vmatmul.mubr.bf16.gmra.mxu0 %v4508_v48 }
 0x11f   : > { %2529 = vmatprep.mubr.bf16.mxu1 %v4512_v49  ;;  %2722 = vmatprep.mubr.bf16.mxu0 %v4514_v50 }
 0x120   : > { %2832 = vmatpush2.bf16.msra.mxu1 %v4581_v51 }
 0x121   : > { %2833 = vmatprep.subr.bf16.mxu1 %v4595_v52 }
 0x124   : > { %2834 = vmatpush2.bf16.msra.mxu1 %v4593_v55  ;;  %v4614_v55 = vld [vmem:[#allocation2 + $0x13c] ss:$36 sps:$4 sm:$0xff]  }
 0x126   : > { %2530 = vmatmul.mubr.bf16.gmra.mxu1 %v4516_v53  ;;  %2723 = vmatmul.mubr.bf16.gmra.mxu0 %v4517_v54  ;;  %v4610_v53 = vld [vmem:[#allocation2 + $0xf0] ss:$36 sps:$4 sm:$0xff]   ;;  %v4611_v54 = vld [vmem:[#allocation2 + $0xf8] ss:$36 sps:$4 sm:$0xff]  }
 0x127   : > { %2539 = vmatprep.mubr.bf16.mxu1 %v4524_v56  ;;  %2732 = vmatprep.mubr.bf16.mxu0 %v4526_v57 }
 0x12e   : > { %2540 = vmatmul.mubr.bf16.gmra.mxu1 %v4528_v58  ;;  %2733 = vmatmul.mubr.bf16.gmra.mxu0 %v4529_v59 }
 0x12f   : > { %2549 = vmatprep.mubr.bf16.mxu1 %v4533_v60  ;;  %2742 = vmatprep.mubr.bf16.mxu0 %v4535_v61 }
 0x136   : > { %2550 = vmatmul.mubr.bf16.gmra.mxu1 %v4537_v62  ;;  %2743 = vmatmul.mubr.bf16.gmra.mxu0 %v4538_v63 }
 0x137   : > { %2559 = vmatprep.mubr.bf16.mxu1 %v4545_v1  ;;  %2752 = vmatprep.mubr.bf16.mxu0 %v4547_v2  ;;  %v4612_v1 = vld [vmem:[#allocation2 + $0x138] ss:$36 sps:$4 sm:$0xff]   ;;  %v4615_v2 = vld [vmem:[#allocation2 + $0x140] ss:$36 sps:$4 sm:$0xff]  }
 0x13e   : > { %2560 = vmatmul.mubr.bf16.gmra.mxu1 %v4549_v3  ;;  %2753 = vmatmul.mubr.bf16.gmra.mxu0 %v4550_v4  ;;  %v4618_v3 = vld [vmem:[#allocation2 + $0x184] ss:$36 sps:$4 sm:$0xff]  }
 0x13f   : > { %2569 = vmatprep.mubr.bf16.mxu1 %v4554_v5  ;;  %2762 = vmatprep.mubr.bf16.mxu0 %v4556_v6 }
 0x146   : > { %2570 = vmatmul.mubr.bf16.gmra.mxu1 %v4558_v7  ;;  %2763 = vmatmul.mubr.bf16.gmra.mxu0 %v4559_v8 }
 0x147   : > { %2579 = vmatprep.mubr.bf16.mxu1 %v4566_v9  ;;  %2772 = vmatprep.mubr.bf16.mxu0 %v4568_v10 }
 0x14e   : > { %2580 = vmatmul.mubr.bf16.gmra.mxu1 %v4570_v11  ;;  %2773 = vmatmul.mubr.bf16.gmra.mxu0 %v4571_v12  ;;  %v4616_v12 = vld [vmem:[#allocation2 + $0x180] ss:$36 sps:$4 sm:$0xff]  }
 0x14f   : > { %2589 = vmatprep.mubr.bf16.mxu1 %v4575_v13  ;;  %2782 = vmatprep.mubr.bf16.mxu0 %v4577_v14  ;;  %v4619_v13 = vld [vmem:[#allocation2 + $0x188] ss:$36 sps:$4 sm:$0xff]  }
 0x150   : > { %v4622_v14 = vld [vmem:[#allocation2 + $0x1cc] ss:$36 sps:$4 sm:$0xff]  }
 0x156   : > { %2590 = vmatmul.mubr.bf16.gmra.mxu1 %v4579_v15  ;;  %2783 = vmatmul.mubr.bf16.gmra.mxu0 %v4580_v16 }
 0x157   : > { %2599 = vmatprep.mubr.bf16.mxu1 %v4587_v17  ;;  %2792 = vmatprep.mubr.bf16.mxu0 %v4589_v18 }
 0x15e   : > { %2600 = vmatmul.mubr.bf16.gmra.mxu1 %v4591_v19  ;;  %2793 = vmatmul.mubr.bf16.gmra.mxu0 %v4592_v20 }
 0x15f   : > { %2835 = vmatprep.mubr.bf16.mxu1 %v4598_v21  ;;  %3028 = vmatprep.mubr.bf16.mxu0 %v5817_v0 }
 0x166   : > { %v5284_v25 = vpop.f32.mrf.mxu0  ;;  %v5286_v26 = vpop.f32.mrf.mxu1  ;;  %2836 = vmatmul.mubr.bf16.vlgmr.msra.gmra.mxu1 %v4596_v22  ;;  %3029 = vmatmul.mubr.bf16.vlgmr.msra.gmra.mxu0 %v4599_v23  ;;  %v4620_v23 = vld [vmem:[#allocation2 + $0x1c8] ss:$36 sps:$4 sm:$0xff]  }
 0x167   : > { %2845 = vmatprep.mubr.bf16.mxu1 %v4600_v24  ;;  %3038 = vmatprep.mubr.bf16.mxu0 %v5817_v0  ;;  %v4623_v24 = vld [vmem:[#allocation2 + $0x1d0] ss:$36 sps:$4 sm:$0xff]  }
 0x168   : > { %v5289_v27 = vpop.f32.mrf.mxu0  ;;  %v5291_v28 = vpop.f32.mrf.mxu1 }
 0x16a   : > { %v5293_v29 = vpop.f32.mrf.mxu0  ;;  %v5295_v30 = vpop.f32.mrf.mxu1 }
 0x16c   : > { %v5297_v34 = vpop.f32.mrf.mxu0  ;;  %v5299_v35 = vpop.f32.mrf.mxu1 }
 0x16e   : > { %v5301_v36 = vpop.f32.mrf.mxu0  ;;  %v5303_v37 = vpop.f32.mrf.mxu1  ;;  %2846 = vmatmul.mubr.bf16.gmra.mxu1 %v4602_v31  ;;  %3039 = vmatmul.mubr.bf16.gmra.mxu0 %v4603_v32  ;;  %v4626_v31 = vld [vmem:[#allocation2 + $0x214] ss:$36 sps:$4 sm:$0xff]  }
 0x16f   : > { %2855 = vmatprep.mubr.bf16.mxu1 %v4604_v33  ;;  %3048 = vmatprep.mubr.bf16.mxu0 %v5817_v0 }
 0x170   : > { %v5306_v38 = vpop.f32.mrf.mxu0  ;;  %v5308_v39 = vpop.f32.mrf.mxu1 }
 0x172   : > { %v5310_v40 = vpop.f32.mrf.mxu0  ;;  %v5312_v41 = vpop.f32.mrf.mxu1 }
 0x174   : > { %v5314_v45 = vpop.f32.mrf.mxu0  ;;  %v5316_v46 = vpop.f32.mrf.mxu1 }
 0x176   : > { %v5318_v47 = vpop.f32.mrf.mxu0  ;;  %v5320_v48 = vpop.f32.mrf.mxu1  ;;  %2856 = vmatmul.mubr.bf16.gmra.mxu1 %v4606_v42  ;;  %3049 = vmatmul.mubr.bf16.gmra.mxu0 %v4607_v43 }
 0x177   : > { %2865 = vmatprep.mubr.bf16.mxu1 %v4608_v44  ;;  %3058 = vmatprep.mubr.bf16.mxu0 %v5817_v0 }
 0x178   : > { %v5323_v49 = vpop.f32.mrf.mxu0  ;;  %v5325_v50 = vpop.f32.mrf.mxu1 }
 0x17a   : > { %v5327_v51 = vpop.f32.mrf.mxu0  ;;  %v5329_v52 = vpop.f32.mrf.mxu1 }
 0x17c   : > { %v5331_v56 = vpop.f32.mrf.mxu0  ;;  %v5333_v57 = vpop.f32.mrf.mxu1 }
 0x17d   : > { %5831 = vst [vmem:[#allocation12_spill] sm:$0xff] %v5333_v57 }
 0x17e   : > { %v5335_v58 = vpop.f32.mrf.mxu0  ;;  %v5337_v59 = vpop.f32.mrf.mxu1  ;;  %2866 = vmatmul.mubr.bf16.gmra.mxu1 %v4610_v53  ;;  %3059 = vmatmul.mubr.bf16.gmra.mxu0 %v4611_v54 }
 0x17f   : > { %5832 = vst [vmem:[#allocation13_spill] sm:$0xff] %v5337_v59  ;;  %2875 = vmatprep.mubr.bf16.mxu1 %v4614_v55  ;;  %3068 = vmatprep.mubr.bf16.mxu0 %v5817_v0 }
 0x180   : > { %v5340_v60 = vpop.f32.mrf.mxu0  ;;  %v5342_v61 = vpop.f32.mrf.mxu1 }
 0x181   : > { %5833 = vst [vmem:[#allocation14_spill] sm:$0xff] %v5342_v61  ;;  %v4632_v61 = vld [vmem:[#allocation2 + $0x2a0] ss:$36 sps:$4 sm:$0xff]  }
 0x182   : > { %v5344_v62 = vpop.f32.mrf.mxu0  ;;  %v5346_v63 = vpop.f32.mrf.mxu1 }
 0x183   : > { %5834 = vst [vmem:[#allocation15_spill] sm:$0xff] %v5346_v63 }
 0x184   : > { %v5348_v4 = vpop.f32.mrf.mxu0  ;;  %v5350_v5 = vpop.f32.mrf.mxu1 }
 0x185   : > { %5835 = vst [vmem:[#allocation16_spill] sm:$0xff] %v5350_v5 }
 0x186   : > { %v5352_v6 = vpop.f32.mrf.mxu0  ;;  %v5354_v7 = vpop.f32.mrf.mxu1  ;;  %2876 = vmatmul.mubr.bf16.gmra.mxu1 %v4612_v1  ;;  %3069 = vmatmul.mubr.bf16.gmra.mxu0 %v4615_v2  ;;  %v4624_v1 = vld [vmem:[#allocation2 + $0x210] ss:$36 sps:$4 sm:$0xff]   ;;  %v4627_v2 = vld [vmem:[#allocation2 + $0x218] ss:$36 sps:$4 sm:$0xff]  }
 0x187   : > { %5836 = vst [vmem:[#allocation17_spill] sm:$0xff] %v5354_v7  ;;  %2885 = vmatprep.mubr.bf16.mxu1 %v4618_v3  ;;  %3078 = vmatprep.mubr.bf16.mxu0 %v5817_v0  ;;  %v4630_v3 = vld [vmem:[#allocation2 + $0x25c] ss:$36 sps:$4 sm:$0xff]  }
 0x188   : > { %v5357_v8 = vpop.f32.mrf.mxu0  ;;  %v5359_v9 = vpop.f32.mrf.mxu1 }
 0x189   : > { %5837 = vst [vmem:[#allocation18_spill] sm:$0xff] %v5359_v9  ;;  %v621_v9 = vpop.permute.xlu1 %620 }
 0x18a   : > { %v5361_v10 = vpop.f32.mrf.mxu0  ;;  %v5363_v11 = vpop.f32.mrf.mxu1 }
 0x18b   : > { %5838 = vst [vmem:[#allocation19_spill] sm:$0xff] %v5363_v11 }
 0x18c   : > { %v5365_v15 = vpop.f32.mrf.mxu0  ;;  %v5367_v16 = vpop.f32.mrf.mxu1 }
 0x18d   : > { %5839 = vst [vmem:[#allocation20_spill] sm:$0xff] %v5367_v16  ;;  %v5852_v16 = vmov 0  }
 0x18e   : > { %v5369_v17 = vpop.f32.mrf.mxu0  ;;  %v5371_v18 = vpop.f32.mrf.mxu1  ;;  %2886 = vmatmul.mubr.bf16.gmra.mxu1 %v4616_v12  ;;  %3079 = vmatmul.mubr.bf16.gmra.mxu0 %v4619_v13 }
 0x18f   : > { %5840 = vst [vmem:[#allocation21_spill] sm:$0xff] %v5371_v18  ;;  %2895 = vmatprep.mubr.bf16.mxu1 %v4622_v14  ;;  %3088 = vmatprep.mubr.bf16.mxu0 %v5817_v0 }
 0x190   : > { %v5374_v19 = vpop.f32.mrf.mxu0  ;;  %v5376_v20 = vpop.f32.mrf.mxu1 }
 0x191   : > { %5841 = vst [vmem:[#allocation22_spill] sm:$0xff] %v5376_v20 }
 0x192   : > { %v5378_v21 = vpop.f32.mrf.mxu0  ;;  %v5380_v22 = vpop.f32.mrf.mxu1 }
 0x193   : > { %5842 = vst [vmem:[#allocation23_spill] sm:$0xff] %v5380_v22  ;;  %v4634_v22 = vld [vmem:[#allocation2 + $0x2a4] ss:$36 sps:$4 sm:$0xff]  }
 0x194   : > { %v5382_v32 = vpop.f32.mrf.mxu0  ;;  %v5384_v33 = vpop.f32.mrf.mxu1 }
 0x195   : > { %5843 = vst [vmem:[#allocation24_spill] sm:$0xff] %v5384_v33  ;;  %v4628_v33 = vld [vmem:[#allocation2 + $0x258] ss:$36 sps:$4 sm:$0xff]  }
 0x196   : > { %v5386_v42 = vpop.f32.mrf.mxu0  ;;  %v5388_v43 = vpop.f32.mrf.mxu1  ;;  %2896 = vmatmul.mubr.bf16.gmra.mxu1 %v4620_v23  ;;  %3089 = vmatmul.mubr.bf16.gmra.mxu0 %v4623_v24 }
 0x197   : > { %5844 = vst [vmem:[#allocation25_spill] sm:$0xff] %v5388_v43  ;;  %2905 = vmatprep.mubr.bf16.mxu1 %v4626_v31  ;;  %3098 = vmatprep.mubr.bf16.mxu0 %v5817_v0 }
 0x198   : > { %v5391_v44 = vpop.f32.mrf.mxu0  ;;  %v5393_v53 = vpop.f32.mrf.mxu1 }
 0x199   : > { %5845 = vst [vmem:[#allocation26_spill] sm:$0xff] %v5393_v53 }
 0x19a   : > { %v5395_v54 = vpop.f32.mrf.mxu0  ;;  %v5397_v55 = vpop.f32.mrf.mxu1 }
 0x19b   : > { %5846 = vst [vmem:[#allocation27_spill] sm:$0xff] %v5397_v55  ;;  %v611_v55 = vpop.permute.xlu0 %610 }
 0x19c   : > { %v5399_v12 = vpop.f32.mrf.mxu0  ;;  %v5401_v13 = vpop.f32.mrf.mxu1 }
 0x19d   : > { %5847 = vst [vmem:[#allocation28_spill] sm:$0xff] %v5401_v13  ;;  %v4631_v13 = vld [vmem:[#allocation2 + $0x260] ss:$36 sps:$4 sm:$0xff]  }
 0x19e   : > { %v5403_v14 = vpop.f32.mrf.mxu0  ;;  %v5405_v23 = vpop.f32.mrf.mxu1  ;;  %2906 = vmatmul.mubr.bf16.gmra.mxu1 %v4624_v1  ;;  %3099 = vmatmul.mubr.bf16.gmra.mxu0 %v4627_v2  ;;  %v2259_v1 = vadd.f32 %v5284_v25, %v611_v55 }
 0x19f   : > { %5848 = vst [vmem:[#allocation29_spill] sm:$0xff] %v5405_v23  ;;  %2915 = vmatprep.mubr.bf16.mxu1 %v4630_v3  ;;  %3108 = vmatprep.mubr.bf16.mxu0 %v5817_v0  ;;  %v616_v0 = vpop.permute.xlu0 %615 }
 0x1a0   : > { %v5408_v24 = vpop.f32.mrf.mxu0  ;;  %v5410_v31 = vpop.f32.mrf.mxu1  ;;  %v2263_v7 = vadd.f32 %v5293_v29, %v616_v0 }
 0x1a1   : > { %5849 = vst [vmem:[#allocation30_spill] sm:$0xff] %v5410_v31  ;;  %v2261_v31 = vadd.f32 %v5289_v27, %v611_v55 }
 0x1a2   : > { %v5412_v53 = vpop.f32.mrf.mxu0  ;;  %v5414_v43 = vpop.f32.mrf.mxu1 }
 0x1a3   : > { %5850 = vst [vmem:[#allocation31_spill] sm:$0xff] %v5414_v43 }
 0x1a4   : > { %v5416_v20 = vpop.f32.mrf.mxu0  ;;  %v5418_v23 = vpop.f32.mrf.mxu1 }
 0x1a5   : > { %5851 = vst [vmem:[#allocation32_spill] sm:$0xff] %v5418_v23 }
 0x1a6   : > { %v2451_v2 = vpop.f32.mrf.mxu1  ;;  %v2644_v3 = vpop.f32.mrf.mxu0  ;;  %2916 = vmatmul.mubr.bf16.gmra.mxu1 %v4628_v33  ;;  %3109 = vmatmul.mubr.bf16.gmra.mxu0 %v4631_v13  ;;  %v4635_v33 = vld [vmem:[#allocation2 + $0x2a8] ss:$36 sps:$4 sm:$0xff]   ;;  %v2265_v13 = vadd.f32 %v5297_v34, %v616_v0 }
 0x1a7   : > { %v2452_v18 = vadd.f32 %v2451_v2, %v2259_v1  ;;  %2925 = vmatprep.mubr.bf16.mxu1 %v4634_v22  ;;  %3118 = vmatprep.mubr.bf16.mxu0 %v5852_v16  ;;  %v4638_v22 = vld [vmem:[#allocation2 + $0x2ec] ss:$36 sps:$4 sm:$0xff]   ;;  %v2269_v2 = vadd.f32 %v5301_v36, %v621_v9 }
 0x1a8   : > { %v2453_v43 = vpop.f32.mrf.mxu1  ;;  %v2646_v11 = vpop.f32.mrf.mxu0 }
 0x1a9   : > { %v5424_v5 = vadd.f32 %v2644_v3, %v2452_v18  ;;  %v2454_v23 = vadd.f32 %v2453_v43, %v2261_v31  ;;  %v626_v43 = vpop.permute.xlu1 %625  ;;  %v2271_v31 = vadd.f32 %v5306_v38, %v621_v9 }
 0x1aa   : > { %v2455_v25 = vpop.f32.mrf.mxu1  ;;  %v2648_v63 = vpop.f32.mrf.mxu0  ;;  %v2273_v36 = vadd.f32 %v5310_v40, %v626_v43  ;;  %v2275_v38 = vadd.f32 %v5314_v45, %v626_v43 }
 0x1ab   : > { %5853 = vst [vmem:[#allocation33_spill] sm:$0xff] %v5424_v5  ;;  %v5427_v59 = vadd.f32 %v2646_v11, %v2454_v23  ;;  %v2456_v27 = vadd.f32 %v2455_v25, %v2263_v7 }
 0x1ac   : > { %v2457_v55 = vpop.f32.mrf.mxu1  ;;  %v2650_v1 = vpop.f32.mrf.mxu0 }
 0x1ad   : > { %v5430_v57 = vadd.f32 %v2648_v63, %v2456_v27  ;;  %v2458_v29 = vadd.f32 %v2457_v55, %v2265_v13  ;;  %v631_v13 = vpop.permute.xlu0 %630 }
 0x1ae   : > { %v2461_v18 = vpop.f32.mrf.mxu1  ;;  %v2654_v3 = vpop.f32.mrf.mxu0  ;;  %2926 = vmatmul.mubr.bf16.gmra.mxu1 %v4632_v61  ;;  %3119 = vmatmul.mubr.bf16.gmra.mxu0 %v4635_v33  ;;  %v4636_v61 = vld [vmem:[#allocation2 + $0x2e8] ss:$36 sps:$4 sm:$0xff]   ;;  %v4639_v33 = vld [vmem:[#allocation2 + $0x2f0] ss:$36 sps:$4 sm:$0xff]  }
 0x1af   : > { %v5433_v5 = vadd.f32 %v2650_v1, %v2458_v29  ;;  %v2462_v0 = vadd.f32 %v2461_v18, %v2269_v2  ;;  %2935 = vmatprep.mubr.bf16.mxu1 %v4638_v22  ;;  %3128 = vmatprep.mubr.bf16.mxu0 %v5852_v16  ;;  %v4642_v22 = vld [vmem:[#allocation2 + $0x334] ss:$36 sps:$4 sm:$0xff]   ;;  %v2279_v2 = vadd.f32 %v5318_v47, %v631_v13 }
 0x1b0   : > { %v2463_v34 = vpop.f32.mrf.mxu1  ;;  %v2656_v7 = vpop.f32.mrf.mxu0 }
 0x1b1   : > { %v5437_v63 = vadd.f32 %v2654_v3, %v2462_v0  ;;  %v2464_v11 = vadd.f32 %v2463_v34, %v2271_v31  ;;  %v636_v31 = vpop.permute.xlu1 %635  ;;  %v2281_v0 = vadd.f32 %v5323_v49, %v631_v13 }
 0x1b2   : > { %v2465_v23 = vpop.f32.mrf.mxu1  ;;  %v2658_v25 = vpop.f32.mrf.mxu0  ;;  %v2283_v47 = vadd.f32 %v5327_v51, %v636_v31  ;;  %v2285_v49 = vadd.f32 %v5331_v56, %v636_v31 }
 0x1b3   : > { %v5440_v9 = vadd.f32 %v2656_v7, %v2464_v11  ;;  %v2466_v27 = vadd.f32 %v2465_v23, %v2273_v36 }
 0x1b4   : > { %v2467_v55 = vpop.f32.mrf.mxu1  ;;  %v2660_v1 = vpop.f32.mrf.mxu0 }
 0x1b5   : > { %v5443_v29 = vadd.f32 %v2658_v25, %v2466_v27  ;;  %v2468_v40 = vadd.f32 %v2467_v55, %v2275_v38  ;;  %v641_v38 = vpop.permute.xlu0 %640 }
 0x1b6   : > { %v2471_v18 = vpop.f32.mrf.mxu1  ;;  %v2664_v3 = vpop.f32.mrf.mxu0  ;;  %2936 = vmatmul.mubr.bf16.gmra.mxu1 %v4636_v61  ;;  %3129 = vmatmul.mubr.bf16.gmra.mxu0 %v4639_v33  ;;  %v4640_v61 = vld [vmem:[#allocation2 + $0x330] ss:$36 sps:$4 sm:$0xff]   ;;  %v4643_v33 = vld [vmem:[#allocation2 + $0x338] ss:$36 sps:$4 sm:$0xff]  }
 0x1b7   : > { %v5446_v34 = vadd.f32 %v2660_v1, %v2468_v40  ;;  %v2472_v45 = vadd.f32 %v2471_v18, %v2279_v2  ;;  %2945 = vmatprep.mubr.bf16.mxu1 %v4642_v22  ;;  %3138 = vmatprep.mubr.bf16.mxu0 %v5852_v16  ;;  %v4646_v22 = vld [vmem:[#allocation2 + $0x37c] ss:$36 sps:$4 sm:$0xff]   ;;  %v2289_v2 = vadd.f32 %v5335_v58, %v641_v38 }
 0x1b8   : > { %v2473_v43 = vpop.f32.mrf.mxu1  ;;  %v2666_v7 = vpop.f32.mrf.mxu0 }
 0x1b9   : > { %v5450_v36 = vadd.f32 %v2664_v3, %v2472_v45  ;;  %v2474_v11 = vadd.f32 %v2473_v43, %v2281_v0  ;;  %v646_v0 = vpop.permute.xlu1 %645  ;;  %v2291_v45 = vadd.f32 %v5340_v60, %v641_v38 }
 0x1ba   : > { %v2475_v23 = vpop.f32.mrf.mxu1  ;;  %v2668_v25 = vpop.f32.mrf.mxu0  ;;  %v2293_v58 = vadd.f32 %v5344_v62, %v646_v0  ;;  %v2295_v60 = vadd.f32 %v5348_v4, %v646_v0 }
 0x1bb   : > { %v5453_v13 = vadd.f32 %v2666_v7, %v2474_v11  ;;  %v2476_v27 = vadd.f32 %v2475_v23, %v2283_v47 }
 0x1bc   : > { %v2477_v55 = vpop.f32.mrf.mxu1  ;;  %v2670_v1 = vpop.f32.mrf.mxu0 }
 0x1bd   : > { %v5456_v40 = vadd.f32 %v2668_v25, %v2476_v27  ;;  %v2478_v51 = vadd.f32 %v2477_v55, %v2285_v49  ;;  %v651_v49 = vpop.permute.xlu0 %650 }
 0x1be   : > { %v2481_v18 = vpop.f32.mrf.mxu1  ;;  %v2674_v3 = vpop.f32.mrf.mxu0  ;;  %2946 = vmatmul.mubr.bf16.gmra.mxu1 %v4640_v61  ;;  %3139 = vmatmul.mubr.bf16.gmra.mxu0 %v4643_v33  ;;  %v4644_v61 = vld [vmem:[#allocation2 + $0x378] ss:$36 sps:$4 sm:$0xff]   ;;  %v4647_v33 = vld [vmem:[#allocation2 + $0x380] ss:$36 sps:$4 sm:$0xff]  }
 0x1bf   : > { %v5459_v43 = vadd.f32 %v2670_v1, %v2478_v51  ;;  %v2482_v56 = vadd.f32 %v2481_v18, %v2289_v2  ;;  %2955 = vmatprep.mubr.bf16.mxu1 %v4646_v22  ;;  %3148 = vmatprep.mubr.bf16.mxu0 %v5852_v16  ;;  %v4650_v22 = vld [vmem:[#allocation2 + $0x3c4] ss:$36 sps:$4 sm:$0xff]   ;;  %v2299_v2 = vadd.f32 %v5352_v6, %v651_v49 }
 0x1c0   : > { %v2483_v31 = vpop.f32.mrf.mxu1  ;;  %v2676_v7 = vpop.f32.mrf.mxu0 }
 0x1c1   : > { %v5463_v47 = vadd.f32 %v2674_v3, %v2482_v56  ;;  %v2484_v11 = vadd.f32 %v2483_v31, %v2291_v45  ;;  %v656_v45 = vpop.permute.xlu1 %655  ;;  %v2301_v56 = vadd.f32 %v5357_v8, %v651_v49 }
 0x1c2   : > { %v2485_v23 = vpop.f32.mrf.mxu1  ;;  %v2678_v25 = vpop.f32.mrf.mxu0  ;;  %v2303_v6 = vadd.f32 %v5361_v10, %v656_v45  ;;  %v2305_v8 = vadd.f32 %v5365_v15, %v656_v45 }
 0x1c3   : > { %v5466_v38 = vadd.f32 %v2676_v7, %v2484_v11  ;;  %v2486_v27 = vadd.f32 %v2485_v23, %v2293_v58 }
 0x1c4   : > { %v2487_v55 = vpop.f32.mrf.mxu1  ;;  %v2680_v1 = vpop.f32.mrf.mxu0 }
 0x1c5   : > { %v5469_v51 = vadd.f32 %v2678_v25, %v2486_v27  ;;  %v2488_v62 = vadd.f32 %v2487_v55, %v2295_v60  ;;  %v661_v60 = vpop.permute.xlu0 %660 }
 0x1c6   : > { %v2491_v18 = vpop.f32.mrf.mxu1  ;;  %v2684_v3 = vpop.f32.mrf.mxu0  ;;  %2956 = vmatmul.mubr.bf16.gmra.mxu1 %v4644_v61  ;;  %3149 = vmatmul.mubr.bf16.gmra.mxu0 %v4647_v33  ;;  %v4648_v61 = vld [vmem:[#allocation2 + $0x3c0] ss:$36 sps:$4 sm:$0xff]   ;;  %v4651_v33 = vld [vmem:[#allocation2 + $0x3c8] ss:$36 sps:$4 sm:$0xff]  }
 0x1c7   : > { %v5472_v31 = vadd.f32 %v2680_v1, %v2488_v62  ;;  %v2492_v4 = vadd.f32 %v2491_v18, %v2299_v2  ;;  %2965 = vmatprep.mubr.bf16.mxu1 %v4650_v22  ;;  %3158 = vmatprep.mubr.bf16.mxu0 %v5852_v16  ;;  %v4654_v22 = vld [vmem:[#allocation2 + $0x40c] ss:$36 sps:$4 sm:$0xff]   ;;  %v2309_v2 = vadd.f32 %v5369_v17, %v661_v60 }
 0x1c8   : > { %v2493_v0 = vpop.f32.mrf.mxu1  ;;  %v2686_v7 = vpop.f32.mrf.mxu0 }
 0x1c9   : > { %v5476_v58 = vadd.f32 %v2684_v3, %v2492_v4  ;;  %v2494_v11 = vadd.f32 %v2493_v0, %v2301_v56  ;;  %v666_v56 = vpop.permute.xlu1 %665  ;;  %v2311_v4 = vadd.f32 %v5374_v19, %v661_v60 }
 0x1ca   : > { %v2495_v23 = vpop.f32.mrf.mxu1  ;;  %v2688_v25 = vpop.f32.mrf.mxu0  ;;  %v2313_v17 = vadd.f32 %v5378_v21, %v666_v56  ;;  %v2315_v19 = vadd.f32 %v5382_v32, %v666_v56 }
 0x1cb   : > { %v5479_v49 = vadd.f32 %v2686_v7, %v2494_v11  ;;  %v2496_v27 = vadd.f32 %v2495_v23, %v2303_v6 }
 0x1cc   : > { %v2497_v55 = vpop.f32.mrf.mxu1  ;;  %v2690_v1 = vpop.f32.mrf.mxu0 }
 0x1cd   : > { %v5482_v62 = vadd.f32 %v2688_v25, %v2496_v27  ;;  %v2498_v10 = vadd.f32 %v2497_v55, %v2305_v8  ;;  %v671_v8 = vpop.permute.xlu0 %670 }
 0x1ce   : > { %v2501_v18 = vpop.f32.mrf.mxu1  ;;  %v2694_v3 = vpop.f32.mrf.mxu0  ;;  %2966 = vmatmul.mubr.bf16.gmra.mxu1 %v4648_v61  ;;  %3159 = vmatmul.mubr.bf16.gmra.mxu0 %v4651_v33  ;;  %v4652_v61 = vld [vmem:[#allocation2 + $0x408] ss:$36 sps:$4 sm:$0xff]   ;;  %v4655_v33 = vld [vmem:[#allocation2 + $0x410] ss:$36 sps:$4 sm:$0xff]  }
 0x1cf   : > { %v5485_v0 = vadd.f32 %v2690_v1, %v2498_v10  ;;  %v2502_v15 = vadd.f32 %v2501_v18, %v2309_v2  ;;  %2975 = vmatprep.mubr.bf16.mxu1 %v4654_v22  ;;  %3168 = vmatprep.mubr.bf16.mxu0 %v5852_v16  ;;  %v4658_v22 = vld [vmem:[#allocation2 + $0x454] ss:$36 sps:$4 sm:$0xff]   ;;  %v2319_v2 = vadd.f32 %v5386_v42, %v671_v8 }
 0x1d0   : > { %v2503_v45 = vpop.f32.mrf.mxu1  ;;  %v2696_v7 = vpop.f32.mrf.mxu0 }
 0x1d1   : > { %v5489_v6 = vadd.f32 %v2694_v3, %v2502_v15  ;;  %v2504_v11 = vadd.f32 %v2503_v45, %v2311_v4  ;;  %v676_v4 = vpop.permute.xlu1 %675  ;;  %v2321_v15 = vadd.f32 %v5391_v44, %v671_v8 }
 0x1d2   : > { %v2505_v23 = vpop.f32.mrf.mxu1  ;;  %v2698_v25 = vpop.f32.mrf.mxu0  ;;  %v2323_v42 = vadd.f32 %v5395_v54, %v676_v4  ;;  %v2325_v44 = vadd.f32 %v5399_v12, %v676_v4 }
 0x1d3   : > { %v5492_v60 = vadd.f32 %v2696_v7, %v2504_v11  ;;  %v2506_v27 = vadd.f32 %v2505_v23, %v2313_v17 }
 0x1d4   : > { %v2507_v55 = vpop.f32.mrf.mxu1  ;;  %v2700_v1 = vpop.f32.mrf.mxu0 }
 0x1d5   : > { %v5495_v10 = vadd.f32 %v2698_v25, %v2506_v27  ;;  %v2508_v21 = vadd.f32 %v2507_v55, %v2315_v19  ;;  %v681_v19 = vpop.permute.xlu0 %680 }
 0x1d6   : > { %v2511_v18 = vpop.f32.mrf.mxu1  ;;  %v2704_v3 = vpop.f32.mrf.mxu0  ;;  %2976 = vmatmul.mubr.bf16.gmra.mxu1 %v4652_v61  ;;  %3169 = vmatmul.mubr.bf16.gmra.mxu0 %v4655_v33  ;;  %v4656_v61 = vld [vmem:[#allocation2 + $0x450] ss:$36 sps:$4 sm:$0xff]   ;;  %v4659_v33 = vld [vmem:[#allocation2 + $0x458] ss:$36 sps:$4 sm:$0xff]  }
 0x1d7   : > { %v5498_v45 = vadd.f32 %v2700_v1, %v2508_v21  ;;  %v2512_v32 = vadd.f32 %v2511_v18, %v2319_v2  ;;  %2985 = vmatprep.mubr.bf16.mxu1 %v4658_v22  ;;  %3178 = vmatprep.mubr.bf16.mxu0 %v5852_v16  ;;  %v2329_v16 = vadd.f32 %v5403_v14, %v681_v19  ;;  %v686_v18 = vpop.permute.xlu1 %685 }
 0x1d8   : > { %v2513_v56 = vpop.f32.mrf.mxu1  ;;  %v2706_v7 = vpop.f32.mrf.mxu0 }
 0x1d9   : > { %v5502_v17 = vadd.f32 %v2704_v3, %v2512_v32  ;;  %v2514_v11 = vadd.f32 %v2513_v56, %v2321_v15  ;;  %v2331_v3 = vadd.f32 %v5408_v24, %v681_v19  ;;  %v691_v56 = vpop.permute.xlu0 %690 }
 0x1da   : > { %v2515_v23 = vpop.f32.mrf.mxu1  ;;  %v2708_v25 = vpop.f32.mrf.mxu0  ;;  %v2339_v19 = vadd.f32 %v5286_v26, %v691_v56 }
 0x1db   : > { %v5505_v8 = vadd.f32 %v2706_v7, %v2514_v11  ;;  %v2516_v27 = vadd.f32 %v2515_v23, %v2323_v42  ;;  %v2333_v7 = vadd.f32 %v5412_v53, %v686_v18 }
 0x1dc   : > { %v2517_v22 = vpop.f32.mrf.mxu1  ;;  %v2710_v55 = vpop.f32.mrf.mxu0 }
 0x1dd   : > { %v5508_v1 = vadd.f32 %v2708_v25, %v2516_v27  ;;  %v2518_v54 = vadd.f32 %v2517_v22, %v2325_v44  ;;  %v2335_v25 = vadd.f32 %v5416_v20, %v686_v18  ;;  %v696_v27 = vpop.permute.xlu1 %695 }
 0x1de   : > { %v2521_v2 = vpop.f32.mrf.mxu1  ;;  %v2714_v21 = vpop.f32.mrf.mxu0  ;;  %2986 = vmatmul.mubr.bf16.gmra.mxu1 %v4656_v61  ;;  %3179 = vmatmul.mubr.bf16.gmra.mxu0 %v4659_v33  ;;  %v2343_v18 = vadd.f32 %v5295_v30, %v696_v27 }
 0x1df   : > { %v5511_v15 = vadd.f32 %v2710_v55, %v2518_v54  ;;  %v2522_v12 = vadd.f32 %v2521_v2, %v2329_v16  ;;  %v2341_v54 = vadd.f32 %v5291_v28, %v691_v56 }
 0x1e0   : > { %v2523_v4 = vpop.f32.mrf.mxu1  ;;  %v2716_v32 = vpop.f32.mrf.mxu0 }
 0x1e1   : > { %v5514_v42 = vadd.f32 %v2714_v21, %v2522_v12  ;;  %v2524_v14 = vadd.f32 %v2523_v4, %v2331_v3  ;;  %v701_v12 = vpop.permute.xlu0 %700 }
 0x1e2   : > { %v2525_v11 = vpop.f32.mrf.mxu1  ;;  %v2718_v23 = vpop.f32.mrf.mxu0  ;;  %v2349_v56 = vadd.f32 %v5303_v37, %v701_v12 }
 0x1e3   : > { %v5517_v61 = vadd.f32 %v2716_v32, %v2524_v14  ;;  %v2526_v33 = vadd.f32 %v2525_v11, %v2333_v7  ;;  %v2345_v14 = vadd.f32 %v5299_v35, %v696_v27 }
 0x1e4   : > { %v2527_v44 = vpop.f32.mrf.mxu1  ;;  %v2720_v24 = vpop.f32.mrf.mxu0 }
 0x1e5   : > { %v5520_v22 = vadd.f32 %v2718_v23, %v2526_v33  ;;  %v2528_v55 = vadd.f32 %v2527_v44, %v2335_v25  ;;  %v706_v33 = vpop.permute.xlu1 %705 }
 0x1e6   : > { %v2531_v16 = vpop.f32.mrf.mxu1  ;;  %v2724_v53 = vpop.f32.mrf.mxu0  ;;  %v2353_v27 = vadd.f32 %v5312_v41, %v706_v33 }
 0x1e7   : > { %v5523_v2 = vadd.f32 %v2720_v24, %v2528_v55  ;;  %v2532_v21 = vadd.f32 %v2531_v16, %v2339_v19  ;;  %v2351_v55 = vadd.f32 %v5308_v39, %v701_v12 }
 0x1e8   : > { %v2533_v3 = vpop.f32.mrf.mxu1  ;;  %v2726_v20 = vpop.f32.mrf.mxu0 }
 0x1e9   : > { %v5526_v4 = vadd.f32 %v2724_v53, %v2532_v21  ;;  %v2534_v32 = vadd.f32 %v2533_v3, %v2341_v54  ;;  %v711_v21 = vpop.permute.xlu0 %710 }
 0x1ea   : > { %v2535_v26 = vpop.f32.mrf.mxu1  ;;  %v2728_v7 = vpop.f32.mrf.mxu0  ;;  %v2359_v12 = vadd.f32 %v5320_v48, %v711_v21 }
 0x1eb   : > { %v5529_v11 = vadd.f32 %v2726_v20, %v2534_v32  ;;  %v2536_v23 = vadd.f32 %v2535_v26, %v2343_v18  ;;  %v2355_v32 = vadd.f32 %v5316_v46, %v706_v33 }
 0x1ec   : > { %v2537_v25 = vpop.f32.mrf.mxu1  ;;  %v2730_v28 = vpop.f32.mrf.mxu0 }
 0x1ed   : > { %v5532_v44 = vadd.f32 %v2728_v7, %v2536_v23  ;;  %v2538_v24 = vadd.f32 %v2537_v25, %v2345_v14  ;;  %v716_v23 = vpop.permute.xlu1 %715 }
 0x1ee   : > { %v2541_v30 = vpop.f32.mrf.mxu1  ;;  %v2734_v19 = vpop.f32.mrf.mxu0  ;;  %v2363_v33 = vadd.f32 %v5329_v52, %v716_v23 }
 0x1ef   : > { %v5535_v16 = vadd.f32 %v2730_v28, %v2538_v24  ;;  %v2542_v53 = vadd.f32 %v2541_v30, %v2349_v56  ;;  %v2361_v24 = vadd.f32 %v5325_v50, %v711_v21  ;;  %v5857_v21 = vld [vmem:[#allocation13_spill] sm:$0xff] }
 0x1f0   : > { %v2543_v54 = vpop.f32.mrf.mxu1  ;;  %v2736_v35 = vpop.f32.mrf.mxu0 }
 0x1f1   : > { %v5538_v3 = vadd.f32 %v2734_v19, %v2542_v53  ;;  %v2544_v20 = vadd.f32 %v2543_v54, %v2351_v55  ;;  %v721_v53 = vpop.permute.xlu0 %720 }
 0x1f2   : > { %v2545_v37 = vpop.f32.mrf.mxu1  ;;  %v2738_v18 = vpop.f32.mrf.mxu0 }
 0x1f3   : > { %v5541_v26 = vadd.f32 %v2736_v35, %v2544_v20  ;;  %v2546_v7 = vadd.f32 %v2545_v37, %v2353_v27  ;;  %v5855_v20 = vld [vmem:[#allocation12_spill] sm:$0xff] }
 0x1f4   : > { %v2547_v14 = vpop.f32.mrf.mxu1  ;;  %v2740_v39 = vpop.f32.mrf.mxu0  ;;  %v2365_v37 = vadd.f32 %v5855_v20, %v716_v23 }
 0x1f5   : > { %v5544_v25 = vadd.f32 %v2738_v18, %v2546_v7  ;;  %v2548_v28 = vadd.f32 %v2547_v14, %v2355_v32  ;;  %v2369_v14 = vadd.f32 %v5857_v21, %v721_v53 }
 0x1f6   : > { %v2551_v41 = vpop.f32.mrf.mxu1  ;;  %v2744_v56 = vpop.f32.mrf.mxu0 }
 0x1f7   : > { %v5547_v30 = vadd.f32 %v2740_v39, %v2548_v28  ;;  %v2552_v19 = vadd.f32 %v2551_v41, %v2359_v12  ;;  %v726_v39 = vpop.permute.xlu1 %725 }
 0x1f8   : > { %v2553_v55 = vpop.f32.mrf.mxu1  ;;  %v2746_v46 = vpop.f32.mrf.mxu0 }
 0x1f9   : > { %v5550_v54 = vadd.f32 %v2744_v56, %v2552_v19  ;;  %v2554_v35 = vadd.f32 %v2553_v55, %v2361_v24  ;;  %v5859_v56 = vld [vmem:[#allocation14_spill] sm:$0xff] }
 0x1fa   : > { %v2555_v48 = vpop.f32.mrf.mxu1  ;;  %v2748_v27 = vpop.f32.mrf.mxu0  ;;  %v2371_v19 = vadd.f32 %v5859_v56, %v721_v53 }
 0x1fb   : > { %5854 = vst [vmem:[#allocation34_spill] sm:$0xff] %v5550_v54  ;;  %v5553_v18 = vadd.f32 %v2746_v46, %v2554_v35  ;;  %v2556_v32 = vadd.f32 %v2555_v48, %v2363_v33  ;;  %v5861_v46 = vld [vmem:[#allocation15_spill] sm:$0xff]  ;;  %v731_v33 = vpop.permute.xlu0 %730 }
 0x1fc   : > { %v2557_v7 = vpop.f32.mrf.mxu1  ;;  %v2750_v50 = vpop.f32.mrf.mxu0  ;;  %v2373_v35 = vadd.f32 %v5861_v46, %v726_v39 }
 0x1fd   : > { %5856 = vst [vmem:[#allocation12_spill] sm:$0xff] %v5553_v18  ;;  %v5556_v12 = vadd.f32 %v2748_v27, %v2556_v32  ;;  %v2558_v28 = vadd.f32 %v2557_v7, %v2365_v37  ;;  %v5863_v27 = vld [vmem:[#allocation16_spill] sm:$0xff] }
 0x1fe   : > { %v2561_v52 = vpop.f32.mrf.mxu1  ;;  %v2754_v41 = vpop.f32.mrf.mxu0  ;;  %v2375_v32 = vadd.f32 %v5863_v27, %v726_v39 }
 0x1ff   : > { %5858 = vst [vmem:[#allocation13_spill] sm:$0xff] %v5556_v12  ;;  %v5559_v24 = vadd.f32 %v2750_v50, %v2558_v28  ;;  %v2562_v55 = vadd.f32 %v2561_v52, %v2369_v14  ;;  %v5865_v50 = vld [vmem:[#allocation17_spill] sm:$0xff]  ;;  %v736_v14 = vpop.permute.xlu1 %735 }
 0x200   : > { %v2563_v54 = vpop.f32.mrf.mxu1  ;;  %v2756_v23 = vpop.f32.mrf.mxu0  ;;  %v2379_v28 = vadd.f32 %v5865_v50, %v731_v33 }
 0x201   : > { %5860 = vst [vmem:[#allocation14_spill] sm:$0xff] %v5559_v24  ;;  %v5562_v48 = vadd.f32 %v2754_v41, %v2562_v55  ;;  %v2564_v20 = vadd.f32 %v2563_v54, %v2371_v19  ;;  %v5867_v41 = vld [vmem:[#allocation18_spill] sm:$0xff] }
 0x202   : > { %v2565_v21 = vpop.f32.mrf.mxu1  ;;  %v2758_v18 = vpop.f32.mrf.mxu0  ;;  %v2381_v55 = vadd.f32 %v5867_v41, %v731_v33 }
 0x203   : > { %5862 = vst [vmem:[#allocation15_spill] sm:$0xff] %v5562_v48  ;;  %v5565_v37 = vadd.f32 %v2756_v23, %v2564_v20  ;;  %v2566_v7 = vadd.f32 %v2565_v21, %v2373_v35  ;;  %v5869_v23 = vld [vmem:[#allocation19_spill] sm:$0xff]  ;;  %v741_v35 = vpop.permute.xlu0 %740 }
 0x204   : > { %v2567_v12 = vpop.f32.mrf.mxu1  ;;  %v2760_v53 = vpop.f32.mrf.mxu0  ;;  %v2383_v20 = vadd.f32 %v5869_v23, %v736_v14 }
 0x205   : > { %5864 = vst [vmem:[#allocation16_spill] sm:$0xff] %v5565_v37  ;;  %v5568_v52 = vadd.f32 %v2758_v18, %v2566_v7  ;;  %v2568_v56 = vadd.f32 %v2567_v12, %v2375_v32  ;;  %v5871_v18 = vld [vmem:[#allocation20_spill] sm:$0xff] }
 0x206   : > { %v2571_v46 = vpop.f32.mrf.mxu1  ;;  %v2764_v24 = vpop.f32.mrf.mxu0  ;;  %v2385_v7 = vadd.f32 %v5871_v18, %v736_v14 }
 0x207   : > { %5866 = vst [vmem:[#allocation17_spill] sm:$0xff] %v5568_v52  ;;  %v5571_v54 = vadd.f32 %v2760_v53, %v2568_v56  ;;  %v2572_v19 = vadd.f32 %v2571_v46, %v2379_v28  ;;  %v5873_v53 = vld [vmem:[#allocation21_spill] sm:$0xff]  ;;  %v746_v28 = vpop.permute.xlu1 %745 }
 0x208   : > { %v2573_v48 = vpop.f32.mrf.mxu1  ;;  %v2766_v39 = vpop.f32.mrf.mxu0  ;;  %v2389_v56 = vadd.f32 %v5873_v53, %v741_v35 }
 0x209   : > { %5868 = vst [vmem:[#allocation18_spill] sm:$0xff] %v5571_v54  ;;  %v5574_v21 = vadd.f32 %v2764_v24, %v2572_v19  ;;  %v2574_v27 = vadd.f32 %v2573_v48, %v2381_v55  ;;  %v5875_v24 = vld [vmem:[#allocation22_spill] sm:$0xff] }
 0x20a   : > { %v2575_v50 = vpop.f32.mrf.mxu1  ;;  %v2768_v37 = vpop.f32.mrf.mxu0  ;;  %v2391_v19 = vadd.f32 %v5875_v24, %v741_v35 }
 0x20b   : > { %5870 = vst [vmem:[#allocation19_spill] sm:$0xff] %v5574_v21  ;;  %v5577_v12 = vadd.f32 %v2766_v39, %v2574_v27  ;;  %v2576_v32 = vadd.f32 %v2575_v50, %v2383_v20  ;;  %v5877_v39 = vld [vmem:[#allocation23_spill] sm:$0xff]  ;;  %v751_v20 = vpop.permute.xlu0 %750 }
 0x20c   : > { %v2577_v52 = vpop.f32.mrf.mxu1  ;;  %v2770_v33 = vpop.f32.mrf.mxu0  ;;  %v2393_v27 = vadd.f32 %v5877_v39, %v746_v28 }
 0x20d   : > { %5872 = vst [vmem:[#allocation20_spill] sm:$0xff] %v5577_v12  ;;  %v5580_v46 = vadd.f32 %v2768_v37, %v2576_v32  ;;  %v2578_v41 = vadd.f32 %v2577_v52, %v2385_v7  ;;  %v5879_v37 = vld [vmem:[#allocation24_spill] sm:$0xff] }
 0x20e   : > { %v2581_v23 = vpop.f32.mrf.mxu1  ;;  %v2774_v54 = vpop.f32.mrf.mxu0  ;;  %v2395_v32 = vadd.f32 %v5879_v37, %v746_v28 }
 0x20f   : > { %5874 = vst [vmem:[#allocation21_spill] sm:$0xff] %v5580_v46  ;;  %v5583_v48 = vadd.f32 %v2770_v33, %v2578_v41  ;;  %v2582_v55 = vadd.f32 %v2581_v23, %v2389_v56  ;;  %v5881_v33 = vld [vmem:[#allocation25_spill] sm:$0xff]  ;;  %v756_v56 = vpop.permute.xlu1 %755 }
 0x210   : > { %v2583_v21 = vpop.f32.mrf.mxu1  ;;  %v2776_v14 = vpop.f32.mrf.mxu0  ;;  %v2399_v41 = vadd.f32 %v5881_v33, %v751_v20 }
 0x211   : > { %5876 = vst [vmem:[#allocation22_spill] sm:$0xff] %v5583_v48  ;;  %v5586_v50 = vadd.f32 %v2774_v54, %v2582_v55  ;;  %v2584_v18 = vadd.f32 %v2583_v21, %v2391_v19  ;;  %v5883_v54 = vld [vmem:[#allocation26_spill] sm:$0xff] }
 0x212   : > { %v2585_v53 = vpop.f32.mrf.mxu1  ;;  %v2778_v12 = vpop.f32.mrf.mxu0  ;;  %v2401_v55 = vadd.f32 %v5883_v54, %v751_v20 }
 0x213   : > { %5878 = vst [vmem:[#allocation23_spill] sm:$0xff] %v5586_v50  ;;  %v5589_v52 = vadd.f32 %v2776_v14, %v2584_v18  ;;  %v2586_v7 = vadd.f32 %v2585_v53, %v2393_v27  ;;  %v5884_v14 = vld [vmem:[#allocation27_spill] sm:$0xff]  ;;  %v761_v27 = vpop.permute.xlu0 %760 }
 0x214   : > { %v2587_v46 = vpop.f32.mrf.mxu1  ;;  %v2780_v35 = vpop.f32.mrf.mxu0  ;;  %v2403_v18 = vadd.f32 %v5884_v14, %v756_v56 }
 0x215   : > { %5880 = vst [vmem:[#allocation24_spill] sm:$0xff] %v5589_v52  ;;  %v5592_v23 = vadd.f32 %v2778_v12, %v2586_v7  ;;  %v2588_v24 = vadd.f32 %v2587_v46, %v2395_v32  ;;  %v5886_v12 = vld [vmem:[#allocation28_spill] sm:$0xff] }
 0x216   : > { %v2591_v39 = vpop.f32.mrf.mxu1  ;;  %v2784_v48 = vpop.f32.mrf.mxu0  ;;  %v2405_v7 = vadd.f32 %v5886_v12, %v756_v56 }
 0x217   : > { %5882 = vst [vmem:[#allocation25_spill] sm:$0xff] %v5592_v23  ;;  %v5595_v21 = vadd.f32 %v2780_v35, %v2588_v24  ;;  %v2592_v19 = vadd.f32 %v2591_v39, %v2399_v41  ;;  %v5887_v35 = vld [vmem:[#allocation29_spill] sm:$0xff]  ;;  %v766_v24 = vpop.permute.xlu1 %765 }
 0x218   : > { %v2593_v50 = vpop.f32.mrf.mxu1  ;;  %v2786_v28 = vpop.f32.mrf.mxu0  ;;  %v2409_v41 = vadd.f32 %v5887_v35, %v761_v27 }
 0x219   : > { %v5598_v53 = vadd.f32 %v2784_v48, %v2592_v19  ;;  %v2594_v37 = vadd.f32 %v2593_v50, %v2401_v55  ;;  %v5889_v19 = vld [vmem:[#allocation30_spill] sm:$0xff] }
 0x21a   : > { %v2595_v33 = vpop.f32.mrf.mxu1  ;;  %v2788_v52 = vpop.f32.mrf.mxu0  ;;  %v2411_v50 = vadd.f32 %v5889_v19, %v761_v27 }
 0x21b   : > { %5885 = vst [vmem:[#allocation26_spill] sm:$0xff] %v5598_v53  ;;  %v5601_v46 = vadd.f32 %v2786_v28, %v2594_v37  ;;  %v2596_v32 = vadd.f32 %v2595_v33, %v2403_v18  ;;  %v5890_v37 = vld [vmem:[#allocation31_spill] sm:$0xff] }
 0x21c   : > { %v2597_v23 = vpop.f32.mrf.mxu1  ;;  %v2790_v20 = vpop.f32.mrf.mxu0  ;;  %v2413_v18 = vadd.f32 %v5890_v37, %v766_v24 }
 0x21d   : > { %v5604_v39 = vadd.f32 %v2788_v52, %v2596_v32  ;;  %v2598_v54 = vadd.f32 %v2597_v23, %v2405_v7  ;;  %v5892_v32 = vld [vmem:[#allocation32_spill] sm:$0xff] }
 0x21e   : > { %v2601_v14 = vpop.f32.mrf.mxu1  ;;  %v2794_v48 = vpop.f32.mrf.mxu0  ;;  %v2415_v23 = vadd.f32 %v5892_v32, %v766_v24  ;;  %v3253_v24 = vld [vmem:[%s5623_s11] sm:$0xff] }
 0x21f   : > { %5888 = vst [vmem:[#allocation27_spill] sm:$0xff] %v5604_v39  ;;  %v5607_v55 = vadd.f32 %v2790_v20, %v2598_v54  ;;  %v2602_v53 = vadd.f32 %v2601_v14, %v2409_v41 }
 0x220   : > { %v2603_v56 = vpop.f32.mrf.mxu1  ;;  %v2796_v28 = vpop.f32.mrf.mxu0 }
 0x221   : > { %v5610_v33 = vadd.f32 %v2794_v48, %v2602_v53  ;;  %v2604_v12 = vadd.f32 %v2603_v56, %v2411_v50  ;;  %v5896_v53 = vld [vmem:[#allocation33_spill] sm:$0xff] }
 0x222   : > { %v2605_v35 = vpop.f32.mrf.mxu1  ;;  %v2798_v52 = vpop.f32.mrf.mxu0 }
 0x223   : > { %5891 = vst [vmem:[#allocation28_spill] sm:$0xff] %v5610_v33  ;;  %v5614_v7 = vadd.f32 %v2796_v28, %v2604_v12  ;;  %v2606_v39 = vadd.f32 %v2605_v35, %v2413_v18 }
 0x224   : > { %v2607_v27 = vpop.f32.mrf.mxu1  ;;  %v2800_v20 = vpop.f32.mrf.mxu0 }
 0x225   : > { %5893 = vst [vmem:[#allocation29_spill] sm:$0xff] %v5614_v7  ;;  %v5616_v54 = vadd.f32 %v2798_v52, %v2606_v39  ;;  %v2608_v41 = vadd.f32 %v2607_v27, %v2415_v23  ;;  %v3285_v39 = vunpack.c.l.bf16 %v3253_v24  ;;  %v3286_v23 = vunpack.c.h.bf16 %v3253_v24 }
 0x226   : > { %v2837_v14 = vpop.f32.mrf.mxu1  ;;  %v3030_v19 = vpop.f32.mrf.mxu0 }
 0x227   : > { %5894 = vst [vmem:[#allocation30_spill] sm:$0xff] %v5616_v54  ;;  %v5618_v37 = vadd.f32 %v2800_v20, %v2608_v41  ;;  %v2838_v48 = vadd.f32 %v2837_v14, %v5896_v53  ;;  %v3254_v20 = vld [vmem:[%s5623_s11 + $0x8] sm:$0xff] }
 0x228   : > { %v2839_v50 = vpop.f32.mrf.mxu1  ;;  %v3032_v56 = vpop.f32.mrf.mxu0 }
 0x229   : > { %5895 = vst [vmem:[#allocation31_spill] sm:$0xff] %v5618_v37  ;;  %v3031_v28 = vadd.f32 %v3030_v19, %v2838_v48  ;;  %v2840_v18 = vadd.f32 %v2839_v50, %v5427_v59  ;;  %v3287_v19 = vunpack.c.l.bf16 %v3254_v20  ;;  %v3288_v48 = vunpack.c.h.bf16 %v3254_v20 }
 0x22a   : > { %v2841_v12 = vpop.f32.mrf.mxu1  ;;  %v3034_v35 = vpop.f32.mrf.mxu0 }
 0x22b   : > { %v3189_v52 = vmax.f32 %v3031_v28, 0.0  ;;  %v3033_v32 = vadd.f32 %v3032_v56, %v2840_v18  ;;  %v2842_v27 = vadd.f32 %v2841_v12, %v5430_v57 }
 0x22c   : > { %v2843_v41 = vpop.f32.mrf.mxu1  ;;  %v3036_v14 = vpop.f32.mrf.mxu0 }
 0x22d   : > { %v3190_v53 = vmax.f32 %v3033_v32, 0.0  ;;  %v3035_v37 = vadd.f32 %v3034_v35, %v2842_v27  ;;  %v2844_v54 = vadd.f32 %v2843_v41, %v5433_v5  ;;  %v3349_v7 = vadd.f32 %v3285_v39, %v3189_v52  ;;  %v3255_v27 = vld [vmem:[%s5623_s11 + $0x10] sm:$0xff] }
 0x22e   : > { %v2847_v59 = vpop.f32.mrf.mxu1  ;;  %v3040_v50 = vpop.f32.mrf.mxu0  ;;  %v3290_v41 = vunpack.c.h.bf16 %v3255_v27 }
 0x22f   : > { %v3350_v33 = vadd.f32 %v3286_v23, %v3190_v53  ;;  %v3191_v28 = vmax.f32 %v3035_v37, 0.0  ;;  %v3037_v56 = vadd.f32 %v3036_v14, %v2844_v54  ;;  %v2848_v57 = vadd.f32 %v2847_v59, %v5437_v63  ;;  %v3256_v23 = vld [vmem:[%s5623_s11 + $0x18] sm:$0xff] }
 0x230   : > { %v2849_v24 = vpop.f32.mrf.mxu1  ;;  %v3042_v18 = vpop.f32.mrf.mxu0 }
 0x231   : > { %v4096_v12 = vpack.c.bf16 %v3350_v33, %v3349_v7  ;;  %v3192_v32 = vmax.f32 %v3037_v56, 0.0  ;;  %v3041_v35 = vadd.f32 %v3040_v50, %v2848_v57  ;;  %v2850_v5 = vadd.f32 %v2849_v24, %v5440_v9 }
 0x232   : > { %v2851_v39 = vpop.f32.mrf.mxu1  ;;  %v3044_v52 = vpop.f32.mrf.mxu0  ;;  %v3351_v37 = vadd.f32 %v3287_v19, %v3191_v28  ;;  %v3289_v33 = vunpack.c.l.bf16 %v3255_v27  ;;  %v3291_v57 = vunpack.c.l.bf16 %v3256_v23 }
 0x233   : > { %3605 = vst [vmem:[%s5635_s5] sm:$0xff] %v4096_v12  ;;  %v3352_v54 = vadd.f32 %v3288_v48, %v3192_v32  ;;  %v2852_v63 = vadd.f32 %v2851_v39, %v5443_v29  ;;  %v3193_v20 = vmax.f32 %v3041_v35, 0.0  ;;  %v3043_v7 = vadd.f32 %v3042_v18, %v2850_v5  ;;  %v3257_v32 = vld [vmem:[%s5623_s11 + $0x20] sm:$0xff] }
 0x234   : > { %v2853_v14 = vpop.f32.mrf.mxu1  ;;  %v3046_v9 = vpop.f32.mrf.mxu0  ;;  %v3292_v29 = vunpack.c.h.bf16 %v3256_v23 }
 0x235   : > { %v4097_v53 = vpack.c.bf16 %v3352_v54, %v3351_v37  ;;  %v3045_v59 = vadd.f32 %v3044_v52, %v2852_v63  ;;  %v2854_v50 = vadd.f32 %v2853_v14, %v5446_v34  ;;  %v3194_v56 = vmax.f32 %v3043_v7, 0.0 }
 0x236   : > { %v2857_v24 = vpop.f32.mrf.mxu1  ;;  %v3050_v19 = vpop.f32.mrf.mxu0  ;;  %v3353_v18 = vadd.f32 %v3289_v33, %v3193_v20  ;;  %v3293_v63 = vunpack.c.l.bf16 %v3257_v32  ;;  %v3294_v7 = vunpack.c.h.bf16 %v3257_v32 }
 0x237   : > { %3606 = vst [vmem:[%s5635_s5 + $0x8] sm:$0xff] %v4097_v53  ;;  %v3195_v48 = vmax.f32 %v3045_v59, 0.0  ;;  %v3047_v28 = vadd.f32 %v3046_v9, %v2854_v50  ;;  %v2858_v12 = vadd.f32 %v2857_v24, %v5450_v36  ;;  %v3354_v35 = vadd.f32 %v3290_v41, %v3194_v56  ;;  %v3258_v56 = vld [vmem:[%s5623_s11 + $0x28] sm:$0xff] }
 0x238   : > { %v2859_v27 = vpop.f32.mrf.mxu1  ;;  %v3052_v5 = vpop.f32.mrf.mxu0 }
 0x239   : > { %v3196_v39 = vmax.f32 %v3047_v28, 0.0  ;;  %v3051_v52 = vadd.f32 %v3050_v19, %v2858_v12  ;;  %v2860_v34 = vadd.f32 %v2859_v27, %v5453_v13  ;;  %v4098_v37 = vpack.c.bf16 %v3354_v35, %v3353_v18  ;;  %v3259_v12 = vld [vmem:[%s5623_s11 + $0x30] sm:$0xff] }
 0x23a   : > { %v3355_v54 = vadd.f32 %v3291_v57, %v3195_v48  ;;  %v2861_v14 = vpop.f32.mrf.mxu1  ;;  %v3054_v23 = vpop.f32.mrf.mxu0  ;;  %v3296_v35 = vunpack.c.h.bf16 %v3258_v56 }
 0x23b   : > { %v3356_v9 = vadd.f32 %v3292_v29, %v3196_v39  ;;  %v3197_v36 = vmax.f32 %v3051_v52, 0.0  ;;  %v3053_v53 = vadd.f32 %v3052_v5, %v2860_v34  ;;  %v2862_v20 = vadd.f32 %v2861_v14, %v5456_v40  ;;  %3607 = vst [vmem:[%s5635_s5 + $0x10] sm:$0xff] %v4098_v37 }
 0x23c   : > { %v2863_v33 = vpop.f32.mrf.mxu1  ;;  %v3056_v41 = vpop.f32.mrf.mxu0  ;;  %v3295_v40 = vunpack.c.l.bf16 %v3258_v56  ;;  %v3297_v37 = vunpack.c.l.bf16 %v3259_v12 }
 0x23d   : > { %v4099_v59 = vpack.c.bf16 %v3356_v9, %v3355_v54  ;;  %v3198_v50 = vmax.f32 %v3053_v53, 0.0  ;;  %v3055_v13 = vadd.f32 %v3054_v23, %v2862_v20  ;;  %v2864_v57 = vadd.f32 %v2863_v33, %v5459_v43  ;;  %v3260_v9 = vld [vmem:[%s5623_s11 + $0x38] sm:$0xff] }
 0x23e   : > { %v2867_v24 = vpop.f32.mrf.mxu1  ;;  %v3060_v19 = vpop.f32.mrf.mxu0  ;;  %v3357_v48 = vadd.f32 %v3293_v63, %v3197_v36  ;;  %v3299_v56 = vunpack.c.l.bf16 %v3260_v9 }
 0x23f   : > { %3608 = vst [vmem:[%s5635_s5 + $0x18] sm:$0xff] %v4099_v59  ;;  %v3358_v28 = vadd.f32 %v3294_v7, %v3198_v50  ;;  %v2868_v29 = vadd.f32 %v2867_v24, %v5463_v47  ;;  %v3199_v32 = vmax.f32 %v3055_v13, 0.0  ;;  %v3057_v18 = vadd.f32 %v3056_v41, %v2864_v57 }
 0x240   : > { %v2869_v27 = vpop.f32.mrf.mxu1  ;;  %v3062_v5 = vpop.f32.mrf.mxu0  ;;  %v3298_v47 = vunpack.c.h.bf16 %v3259_v12  ;;  %v3300_v57 = vunpack.c.h.bf16 %v3260_v9 }
 0x241   : > { %v4100_v39 = vpack.c.bf16 %v3358_v28, %v3357_v48  ;;  %v3061_v52 = vadd.f32 %v3060_v19, %v2868_v29  ;;  %v2870_v43 = vadd.f32 %v2869_v27, %v5466_v38  ;;  %v3200_v34 = vmax.f32 %v3057_v18, 0.0 }
 0x242   : > { %v2871_v54 = vpop.f32.mrf.mxu1  ;;  %v3064_v63 = vpop.f32.mrf.mxu0  ;;  %v3359_v36 = vadd.f32 %v3295_v40, %v3199_v32 }
 0x243   : > { %3609 = vst [vmem:[%s5635_s5 + $0x20] sm:$0xff] %v4100_v39  ;;  %v3201_v7 = vmax.f32 %v3061_v52, 0.0  ;;  %v3063_v14 = vadd.f32 %v3062_v5, %v2870_v43  ;;  %v2872_v23 = vadd.f32 %v2871_v54, %v5469_v51  ;;  %v3360_v53 = vadd.f32 %v3296_v35, %v3200_v34  ;;  %v3261_v35 = vld [vmem:[%s5623_s11 + $0x40] sm:$0xff] }
 0x244   : > { %v2873_v20 = vpop.f32.mrf.mxu1  ;;  %v3066_v33 = vpop.f32.mrf.mxu0 }
 0x245   : > { %v3202_v41 = vmax.f32 %v3063_v14, 0.0  ;;  %v3065_v59 = vadd.f32 %v3064_v63, %v2872_v23  ;;  %v2874_v38 = vadd.f32 %v2873_v20, %v5472_v31  ;;  %v4101_v50 = vpack.c.bf16 %v3360_v53, %v3359_v36 }
 0x246   : > { %v3361_v13 = vadd.f32 %v3297_v37, %v3201_v7  ;;  %v2877_v24 = vpop.f32.mrf.mxu1  ;;  %v3070_v19 = vpop.f32.mrf.mxu0  ;;  %v3262_v37 = vld [vmem:[%s5623_s11 + $0x48] sm:$0xff]  ;;  %v3302_v7 = vunpack.c.h.bf16 %v3261_v35 }
 0x247   : > { %v3362_v48 = vadd.f32 %v3298_v47, %v3202_v41  ;;  %v3203_v51 = vmax.f32 %v3065_v59, 0.0  ;;  %v3067_v28 = vadd.f32 %v3066_v33, %v2874_v38  ;;  %v2878_v29 = vadd.f32 %v2877_v24, %v5476_v58  ;;  %3610 = vst [vmem:[%s5635_s5 + $0x28] sm:$0xff] %v4101_v50  ;;  %v3263_v50 = vld [vmem:[%s5623_s11 + $0x50] sm:$0xff] }
 0x248   : > { %v2879_v12 = vpop.f32.mrf.mxu1  ;;  %v3072_v32 = vpop.f32.mrf.mxu0  ;;  %v3301_v58 = vunpack.c.l.bf16 %v3261_v35  ;;  %v3303_v53 = vunpack.c.l.bf16 %v3262_v37 }
 0x249   : > { %v4102_v40 = vpack.c.bf16 %v3362_v48, %v3361_v13  ;;  %v3204_v18 = vmax.f32 %v3067_v28, 0.0  ;;  %v3071_v31 = vadd.f32 %v3070_v19, %v2878_v29  ;;  %v2880_v27 = vadd.f32 %v2879_v12, %v5479_v49 }
 0x24a   : > { %v2881_v5 = vpop.f32.mrf.mxu1  ;;  %v3074_v39 = vpop.f32.mrf.mxu0  ;;  %v3363_v52 = vadd.f32 %v3299_v56, %v3203_v51  ;;  %v3305_v29 = vunpack.c.l.bf16 %v3263_v50  ;;  %v3306_v12 = vunpack.c.h.bf16 %v3263_v50 }
 0x24b   : > { %3611 = vst [vmem:[%s5635_s5 + $0x30] sm:$0xff] %v4102_v40  ;;  %v3364_v43 = vadd.f32 %v3300_v57, %v3204_v18  ;;  %v2882_v34 = vadd.f32 %v2881_v5, %v5482_v62  ;;  %v3205_v54 = vmax.f32 %v3071_v31, 0.0  ;;  %v3073_v63 = vadd.f32 %v3072_v32, %v2880_v27 }
 0x24c   : > { %v2883_v14 = vpop.f32.mrf.mxu1  ;;  %v3076_v47 = vpop.f32.mrf.mxu0  ;;  %v3304_v62 = vunpack.c.h.bf16 %v3262_v37 }
 0x24d   : > { %v4103_v23 = vpack.c.bf16 %v3364_v43, %v3363_v52  ;;  %v3075_v9 = vadd.f32 %v3074_v39, %v2882_v34  ;;  %v2884_v49 = vadd.f32 %v2883_v14, %v5485_v0  ;;  %v3206_v36 = vmax.f32 %v3073_v63, 0.0  ;;  %v3264_v43 = vld [vmem:[%s5623_s11 + $0x58] sm:$0xff]  ;;  %v3265_v14 = vld [vmem:[%s5623_s11 + $0x60] sm:$0xff] }
 0x24e   : > { %v2887_v20 = vpop.f32.mrf.mxu1  ;;  %v3080_v33 = vpop.f32.mrf.mxu0  ;;  %v3365_v13 = vadd.f32 %v3301_v58, %v3205_v54 }
 0x24f   : > { %3612 = vst [vmem:[%s5635_s5 + $0x38] sm:$0xff] %v4103_v23  ;;  %v3207_v41 = vmax.f32 %v3075_v9, 0.0  ;;  %v3077_v59 = vadd.f32 %v3076_v47, %v2884_v49  ;;  %v2888_v38 = vadd.f32 %v2887_v20, %v5489_v6  ;;  %v3366_v56 = vadd.f32 %v3302_v7, %v3206_v36 }
 0x250   : > { %v2889_v57 = vpop.f32.mrf.mxu1  ;;  %v3082_v24 = vpop.f32.mrf.mxu0  ;;  %v3308_v9 = vunpack.c.h.bf16 %v3264_v43 }
 0x251   : > { %v3208_v19 = vmax.f32 %v3077_v59, 0.0  ;;  %v3081_v48 = vadd.f32 %v3080_v33, %v2888_v38  ;;  %v2890_v0 = vadd.f32 %v2889_v57, %v5492_v60  ;;  %v4104_v51 = vpack.c.bf16 %v3366_v56, %v3365_v13  ;;  %v3266_v56 = vld [vmem:[%s5623_s11 + $0x68] sm:$0xff] }
 0x252   : > { %v3367_v28 = vadd.f32 %v3303_v53, %v3207_v41  ;;  %v2891_v32 = vpop.f32.mrf.mxu1  ;;  %v3084_v40 = vpop.f32.mrf.mxu0  ;;  %v3309_v41 = vunpack.c.l.bf16 %v3265_v14 }
 0x253   : > { %v3368_v18 = vadd.f32 %v3304_v62, %v3208_v19  ;;  %v3209_v6 = vmax.f32 %v3081_v48, 0.0  ;;  %v3083_v31 = vadd.f32 %v3082_v24, %v2890_v0  ;;  %v2892_v35 = vadd.f32 %v2891_v32, %v5495_v10  ;;  %3613 = vst [vmem:[%s5635_s5 + $0x40] sm:$0xff] %v4104_v51 }
 0x254   : > { %v2893_v27 = vpop.f32.mrf.mxu1  ;;  %v3086_v5 = vpop.f32.mrf.mxu0  ;;  %v3307_v10 = vunpack.c.l.bf16 %v3264_v43  ;;  %v3312_v32 = vunpack.c.h.bf16 %v3266_v56 }
 0x255   : > { %v4105_v39 = vpack.c.bf16 %v3368_v18, %v3367_v28  ;;  %v3210_v52 = vmax.f32 %v3083_v31, 0.0  ;;  %v3085_v60 = vadd.f32 %v3084_v40, %v2892_v35  ;;  %v2894_v34 = vadd.f32 %v2893_v27, %v5498_v45 }
 0x256   : > { %v2897_v37 = vpop.f32.mrf.mxu1  ;;  %v3090_v54 = vpop.f32.mrf.mxu0  ;;  %v3369_v58 = vadd.f32 %v3305_v29, %v3209_v6 }
 0x257   : > { %3614 = vst [vmem:[%s5635_s5 + $0x48] sm:$0xff] %v4105_v39  ;;  %v3370_v63 = vadd.f32 %v3306_v12, %v3210_v52  ;;  %v2898_v7 = vadd.f32 %v2897_v37, %v5502_v17  ;;  %v3211_v47 = vmax.f32 %v3085_v60, 0.0  ;;  %v3087_v23 = vadd.f32 %v3086_v5, %v2894_v34  ;;  %v3267_v60 = vld [vmem:[%s5623_s11 + $0x70] sm:$0xff] }
 0x258   : > { %v2899_v49 = vpop.f32.mrf.mxu1  ;;  %v3092_v36 = vpop.f32.mrf.mxu0  ;;  %v3310_v17 = vunpack.c.h.bf16 %v3265_v14  ;;  %v3311_v12 = vunpack.c.l.bf16 %v3266_v56 }
 0x259   : > { %v4106_v53 = vpack.c.bf16 %v3370_v63, %v3369_v58  ;;  %v3091_v20 = vadd.f32 %v3090_v54, %v2898_v7  ;;  %v2900_v45 = vadd.f32 %v2899_v49, %v5505_v8  ;;  %v3212_v33 = vmax.f32 %v3087_v23, 0.0  ;;  %v3268_v7 = vld [vmem:[%s5623_s11 + $0x78] sm:$0xff] }
 0x25a   : > { %v2901_v59 = vpop.f32.mrf.mxu1  ;;  %v3094_v62 = vpop.f32.mrf.mxu0  ;;  %v3371_v57 = vadd.f32 %v3307_v10, %v3211_v47  ;;  %v3314_v10 = vunpack.c.h.bf16 %v3267_v60 }
 0x25b   : > { %3615 = vst [vmem:[%s5635_s5 + $0x50] sm:$0xff] %v4106_v53  ;;  %v3213_v38 = vmax.f32 %v3091_v20, 0.0  ;;  %v3093_v50 = vadd.f32 %v3092_v36, %v2900_v45  ;;  %v2902_v13 = vadd.f32 %v2901_v59, %v5508_v1  ;;  %v3372_v24 = vadd.f32 %v3308_v9, %v3212_v33 }
 0x25c   : > { %v2903_v19 = vpop.f32.mrf.mxu1  ;;  %v3096_v48 = vpop.f32.mrf.mxu0  ;;  %v3315_v20 = vunpack.c.l.bf16 %v3268_v7 }
 0x25d   : > { %v3214_v0 = vmax.f32 %v3093_v50, 0.0  ;;  %v3095_v51 = vadd.f32 %v3094_v62, %v2902_v13  ;;  %v2904_v8 = vadd.f32 %v2903_v19, %v5511_v15  ;;  %v4107_v28 = vpack.c.bf16 %v3372_v24, %v3371_v57 }
 0x25e   : > { %v3373_v29 = vadd.f32 %v3309_v41, %v3213_v38  ;;  %v2907_v40 = vpop.f32.mrf.mxu1  ;;  %v3100_v18 = vpop.f32.mrf.mxu0  ;;  %v3269_v38 = vld [vmem:[%s5623_s11 + $0x80] sm:$0xff] }
 0x25f   : > { %v3374_v6 = vadd.f32 %v3310_v17, %v3214_v0  ;;  %v3215_v1 = vmax.f32 %v3095_v51, 0.0  ;;  %v3097_v31 = vadd.f32 %v3096_v48, %v2904_v8  ;;  %v2908_v35 = vadd.f32 %v2907_v40, %v5514_v42  ;;  %3616 = vst [vmem:[%s5635_s5 + $0x58] sm:$0xff] %v4107_v28 }
 0x260   : > { %v2909_v27 = vpop.f32.mrf.mxu1  ;;  %v3102_v5 = vpop.f32.mrf.mxu0  ;;  %v3313_v42 = vunpack.c.l.bf16 %v3267_v60  ;;  %v3317_v0 = vunpack.c.l.bf16 %v3269_v38  ;;  %v3318_v51 = vunpack.c.h.bf16 %v3269_v38  ;;  %v3271_v60 = vld [vmem:[%s5623_s11 + $0x90] sm:$0xff] }
 0x261   : > { %v4108_v39 = vpack.c.bf16 %v3374_v6, %v3373_v29  ;;  %v3216_v52 = vmax.f32 %v3097_v31, 0.0  ;;  %v3101_v15 = vadd.f32 %v3100_v18, %v2908_v35  ;;  %v2910_v43 = vadd.f32 %v2909_v27, %v5517_v61  ;;  %v3270_v31 = vld [vmem:[%s5623_s11 + $0x88] sm:$0xff] }
 0x262   : > { %v2911_v34 = vpop.f32.mrf.mxu1  ;;  %v3104_v37 = vpop.f32.mrf.mxu0  ;;  %v3375_v54 = vadd.f32 %v3311_v12, %v3215_v1 }
 0x263   : > { %3617 = vst [vmem:[%s5635_s5 + $0x60] sm:$0xff] %v4108_v39  ;;  %v3376_v58 = vadd.f32 %v3312_v32, %v3216_v52  ;;  %v2912_v63 = vadd.f32 %v2911_v34, %v5520_v22  ;;  %v3217_v14 = vmax.f32 %v3101_v15, 0.0  ;;  %v3103_v47 = vadd.f32 %v3102_v5, %v2910_v43 }
 0x264   : > { %v2913_v23 = vpop.f32.mrf.mxu1  ;;  %v3106_v9 = vpop.f32.mrf.mxu0  ;;  %v3316_v22 = vunpack.c.h.bf16 %v3268_v7 }
 0x265   : > { %v4109_v49 = vpack.c.bf16 %v3376_v58, %v3375_v54  ;;  %v3105_v36 = vadd.f32 %v3104_v37, %v2912_v63  ;;  %v2914_v61 = vadd.f32 %v2913_v23, %v5523_v2  ;;  %v3218_v53 = vmax.f32 %v3103_v47, 0.0 }
 0x266   : > { %v2917_v45 = vpop.f32.mrf.mxu1  ;;  %v3110_v33 = vpop.f32.mrf.mxu0  ;;  %v3377_v50 = vadd.f32 %v3313_v42, %v3217_v14  ;;  %v3320_v37 = vunpack.c.h.bf16 %v3270_v31  ;;  %v3321_v42 = vunpack.c.l.bf16 %v3271_v60 }
 0x267   : > { %3618 = vst [vmem:[%s5635_s5 + $0x68] sm:$0xff] %v4109_v49  ;;  %v3219_v41 = vmax.f32 %v3105_v36, 0.0  ;;  %v3107_v59 = vadd.f32 %v3106_v9, %v2914_v61  ;;  %v2918_v62 = vadd.f32 %v2917_v45, %v5526_v4  ;;  %v3378_v17 = vadd.f32 %v3314_v10, %v3218_v53  ;;  %v3272_v36 = vld [vmem:[%s5623_s11 + $0x98] sm:$0xff] }
 0x268   : > { %v2919_v13 = vpop.f32.mrf.mxu1  ;;  %v3112_v56 = vpop.f32.mrf.mxu0  ;;  %v3324_v38 = vunpack.c.h.bf16 %v3272_v36 }
 0x269   : > { %v3220_v57 = vmax.f32 %v3107_v59, 0.0  ;;  %v3111_v24 = vadd.f32 %v3110_v33, %v2918_v62  ;;  %v2920_v2 = vadd.f32 %v2919_v13, %v5529_v11  ;;  %v4110_v19 = vpack.c.bf16 %v3378_v17, %v3377_v50 }
 0x26a   : > { %v3379_v48 = vadd.f32 %v3315_v20, %v3219_v41  ;;  %v2921_v8 = vpop.f32.mrf.mxu1  ;;  %v3114_v28 = vpop.f32.mrf.mxu0  ;;  %v3323_v62 = vunpack.c.l.bf16 %v3272_v36 }
 0x26b   : > { %v3380_v29 = vadd.f32 %v3316_v22, %v3220_v57  ;;  %v3221_v4 = vmax.f32 %v3111_v24, 0.0  ;;  %v3113_v12 = vadd.f32 %v3112_v56, %v2920_v2  ;;  %v2922_v32 = vadd.f32 %v2921_v8, %v5532_v44  ;;  %3619 = vst [vmem:[%s5635_s5 + $0x70] sm:$0xff] %v4110_v19  ;;  %v5897_v57 = vld [vmem:[#allocation34_spill] sm:$0xff]  ;;  %v5898_v8 = vld [vmem:[#allocation12_spill] sm:$0xff] }
 0x26c   : > { %v2923_v40 = vpop.f32.mrf.mxu1  ;;  %v3116_v18 = vpop.f32.mrf.mxu0  ;;  %v3319_v44 = vunpack.c.l.bf16 %v3270_v31 }
 0x26d   : > { %v4111_v6 = vpack.c.bf16 %v3380_v29, %v3379_v48  ;;  %v3222_v1 = vmax.f32 %v3113_v12, 0.0  ;;  %v3115_v11 = vadd.f32 %v3114_v28, %v2922_v32  ;;  %v2924_v35 = vadd.f32 %v2923_v40, %v5535_v16  ;;  %v5899_v40 = vld [vmem:[#allocation13_spill] sm:$0xff] }
 0x26e   : > { %v2927_v27 = vpop.f32.mrf.mxu1  ;;  %v3120_v5 = vpop.f32.mrf.mxu0  ;;  %v3381_v39 = vadd.f32 %v3317_v0, %v3221_v4 }
 0x26f   : > { %3620 = vst [vmem:[%s5635_s5 + $0x78] sm:$0xff] %v4111_v6  ;;  %v3382_v52 = vadd.f32 %v3318_v51, %v3222_v1  ;;  %v2928_v15 = vadd.f32 %v2927_v27, %v5538_v3  ;;  %v3223_v43 = vmax.f32 %v3115_v11, 0.0  ;;  %v3117_v34 = vadd.f32 %v3116_v18, %v2924_v35  ;;  %v3273_v51 = vld [vmem:[%s5623_s11 + $0xa0] sm:$0xff]  ;;  %v3274_v6 = vld [vmem:[%s5623_s11 + $0xa8] sm:$0xff] }
 0x270   : > { %v2929_v54 = vpop.f32.mrf.mxu1  ;;  %v3122_v58 = vpop.f32.mrf.mxu0  ;;  %v3322_v3 = vunpack.c.h.bf16 %v3271_v60  ;;  %v3325_v11 = vunpack.c.l.bf16 %v3273_v51  ;;  %v3326_v35 = vunpack.c.h.bf16 %v3273_v51  ;;  %v5905_v51 = vld [vmem:[#allocation19_spill] sm:$0xff] }
 0x271   : > { %v4112_v63 = vpack.c.bf16 %v3382_v52, %v3381_v39  ;;  %v3121_v7 = vadd.f32 %v3120_v5, %v2928_v15  ;;  %v2930_v16 = vadd.f32 %v2929_v54, %v5541_v26  ;;  %v3224_v14 = vmax.f32 %v3117_v34, 0.0  ;;  %v5900_v15 = vld [vmem:[#allocation14_spill] sm:$0xff] }
 0x272   : > { %v2931_v47 = vpop.f32.mrf.mxu1  ;;  %v3124_v10 = vpop.f32.mrf.mxu0  ;;  %v3383_v61 = vadd.f32 %v3319_v44, %v3223_v43  ;;  %v3327_v44 = vunpack.c.l.bf16 %v3274_v6 }
 0x273   : > { %3621 = vst [vmem:[%s5635_s5 + $0x80] sm:$0xff] %v4112_v63  ;;  %v3225_v23 = vmax.f32 %v3121_v7, 0.0  ;;  %v3123_v9 = vadd.f32 %v3122_v58, %v2930_v16  ;;  %v2932_v49 = vadd.f32 %v2931_v47, %v5544_v25  ;;  %v3384_v53 = vadd.f32 %v3320_v37, %v3224_v14  ;;  %v5901_v7 = vld [vmem:[#allocation15_spill] sm:$0xff]  ;;  %v3275_v14 = vld [vmem:[%s5623_s11 + $0xb0] sm:$0xff] }
 0x274   : > { %v2933_v20 = vpop.f32.mrf.mxu1  ;;  %v3126_v45 = vpop.f32.mrf.mxu0  ;;  %v3328_v63 = vunpack.c.h.bf16 %v3274_v6 }
 0x275   : > { %v3226_v33 = vmax.f32 %v3123_v9, 0.0  ;;  %v3125_v41 = vadd.f32 %v3124_v10, %v2932_v49  ;;  %v2934_v26 = vadd.f32 %v2933_v20, %v5547_v30  ;;  %v4113_v59 = vpack.c.bf16 %v3384_v53, %v3383_v61  ;;  %v5902_v49 = vld [vmem:[#allocation16_spill] sm:$0xff] }
 0x276   : > { %v3385_v22 = vadd.f32 %v3321_v42, %v3225_v23  ;;  %v2937_v50 = vpop.f32.mrf.mxu1  ;;  %v3130_v17 = vpop.f32.mrf.mxu0  ;;  %v3329_v20 = vunpack.c.l.bf16 %v3275_v14 }
 0x277   : > { %v3386_v13 = vadd.f32 %v3322_v3, %v3226_v33  ;;  %v3227_v25 = vmax.f32 %v3125_v41, 0.0  ;;  %v3127_v56 = vadd.f32 %v3126_v45, %v2934_v26  ;;  %v2938_v24 = vadd.f32 %v2937_v50, %v5897_v57  ;;  %3622 = vst [vmem:[%s5635_s5 + $0x88] sm:$0xff] %v4113_v59  ;;  %v3276_v57 = vld [vmem:[%s5623_s11 + $0xb8] sm:$0xff] }
 0x278   : > { %v2939_v2 = vpop.f32.mrf.mxu1  ;;  %v3132_v19 = vpop.f32.mrf.mxu0  ;;  %v3330_v45 = vunpack.c.h.bf16 %v3275_v14  ;;  %v5908_v14 = vld [vmem:[#allocation22_spill] sm:$0xff] }
 0x279   : > { %v4114_v48 = vpack.c.bf16 %v3386_v13, %v3385_v22  ;;  %v3228_v0 = vmax.f32 %v3127_v56, 0.0  ;;  %v3131_v30 = vadd.f32 %v3130_v17, %v2938_v24  ;;  %v2940_v28 = vadd.f32 %v2939_v2, %v5898_v8  ;;  %v5904_v24 = vld [vmem:[#allocation18_spill] sm:$0xff] }
 0x27a   : > { %v2941_v29 = vpop.f32.mrf.mxu1  ;;  %v3134_v4 = vpop.f32.mrf.mxu0  ;;  %v3387_v12 = vadd.f32 %v3323_v62, %v3227_v25  ;;  %v5903_v62 = vld [vmem:[#allocation17_spill] sm:$0xff] }
 0x27b   : > { %3623 = vst [vmem:[%s5635_s5 + $0x90] sm:$0xff] %v4114_v48  ;;  %v3388_v32 = vadd.f32 %v3324_v38, %v3228_v0  ;;  %v2942_v18 = vadd.f32 %v2941_v29, %v5899_v40  ;;  %v3229_v1 = vmax.f32 %v3131_v30, 0.0  ;;  %v3133_v31 = vadd.f32 %v3132_v19, %v2940_v28  ;;  %v3277_v28 = vld [vmem:[%s5623_s11 + $0xc0] sm:$0xff] }
 0x27c   : > { %v2943_v27 = vpop.f32.mrf.mxu1  ;;  %v3136_v5 = vpop.f32.mrf.mxu0 }
 0x27d   : > { %v4115_v39 = vpack.c.bf16 %v3388_v32, %v3387_v12  ;;  %v3135_v52 = vadd.f32 %v3134_v4, %v2942_v18  ;;  %v2944_v60 = vadd.f32 %v2943_v27, %v5900_v15  ;;  %v3230_v43 = vmax.f32 %v3133_v31, 0.0 }
 0x27e   : > { %v2947_v34 = vpop.f32.mrf.mxu1  ;;  %v3140_v37 = vpop.f32.mrf.mxu0  ;;  %v3389_v42 = vadd.f32 %v3325_v11, %v3229_v1  ;;  %v3331_v4 = vunpack.c.l.bf16 %v3276_v57  ;;  %v3332_v32 = vunpack.c.h.bf16 %v3276_v57  ;;  %v5906_v11 = vld [vmem:[#allocation20_spill] sm:$0xff]  ;;  %v3333_v27 = vunpack.c.l.bf16 %v3277_v28  ;;  %v5911_v57 = vld [vmem:[#allocation25_spill] sm:$0xff] }
 0x27f   : > { %3624 = vst [vmem:[%s5635_s5 + $0x98] sm:$0xff] %v4115_v39  ;;  %v3231_v54 = vmax.f32 %v3135_v52, 0.0  ;;  %v3137_v58 = vadd.f32 %v3136_v5, %v2944_v60  ;;  %v2948_v16 = vadd.f32 %v2947_v34, %v5901_v7  ;;  %v3390_v47 = vadd.f32 %v3326_v35, %v3230_v43  ;;  %v5907_v43 = vld [vmem:[#allocation21_spill] sm:$0xff] }
 0x280   : > { %v2949_v10 = vpop.f32.mrf.mxu1  ;;  %v3142_v23 = vpop.f32.mrf.mxu0  ;;  %v3334_v60 = vunpack.c.h.bf16 %v3277_v28  ;;  %v3278_v34 = vld [vmem:[%s5623_s11 + $0xc8] sm:$0xff] }
 0x281   : > { %v3232_v9 = vmax.f32 %v3137_v58, 0.0  ;;  %v3141_v3 = vadd.f32 %v3140_v37, %v2948_v16  ;;  %v2950_v36 = vadd.f32 %v2949_v10, %v5902_v49  ;;  %v4116_v61 = vpack.c.bf16 %v3390_v47, %v3389_v42 }
 0x282   : > { %v3391_v53 = vadd.f32 %v3327_v44, %v3231_v54  ;;  %v2951_v33 = vpop.f32.mrf.mxu1  ;;  %v3144_v41 = vpop.f32.mrf.mxu0 }
 0x283   : > { %v3392_v26 = vadd.f32 %v3328_v63, %v3232_v9  ;;  %v3233_v59 = vmax.f32 %v3141_v3, 0.0  ;;  %v3143_v22 = vadd.f32 %v3142_v23, %v2950_v36  ;;  %v2952_v38 = vadd.f32 %v2951_v33, %v5903_v62  ;;  %3625 = vst [vmem:[%s5635_s5 + $0xa0] sm:$0xff] %v4116_v61  ;;  %v3279_v62 = vld [vmem:[%s5623_s11 + $0xd0] sm:$0xff] }
 0x284   : > { %v2953_v50 = vpop.f32.mrf.mxu1  ;;  %v3146_v17 = vpop.f32.mrf.mxu0  ;;  %v3335_v23 = vunpack.c.l.bf16 %v3278_v34  ;;  %v3336_v9 = vunpack.c.h.bf16 %v3278_v34 }
 0x285   : > { %v4117_v13 = vpack.c.bf16 %v3392_v26, %v3391_v53  ;;  %v3234_v25 = vmax.f32 %v3143_v22, 0.0  ;;  %v3145_v56 = vadd.f32 %v3144_v41, %v2952_v38  ;;  %v2954_v2 = vadd.f32 %v2953_v50, %v5904_v24  ;;  %v5910_v38 = vld [vmem:[#allocation24_spill] sm:$0xff] }
 0x286   : > { %v2957_v19 = vpop.f32.mrf.mxu1  ;;  %v3150_v48 = vpop.f32.mrf.mxu0  ;;  %v3393_v0 = vadd.f32 %v3329_v20, %v3233_v59  ;;  %v5909_v20 = vld [vmem:[#allocation23_spill] sm:$0xff] }
 0x287   : > { %3626 = vst [vmem:[%s5635_s5 + $0xa8] sm:$0xff] %v4117_v13  ;;  %v3394_v30 = vadd.f32 %v3330_v45, %v3234_v25  ;;  %v2958_v8 = vadd.f32 %v2957_v19, %v5905_v51  ;;  %v3235_v29 = vmax.f32 %v3145_v56, 0.0  ;;  %v3147_v12 = vadd.f32 %v3146_v17, %v2954_v2  ;;  %v3280_v2 = vld [vmem:[%s5623_s11 + $0xd8] sm:$0xff] }
 0x288   : > { %v2959_v40 = vpop.f32.mrf.mxu1  ;;  %v3152_v18 = vpop.f32.mrf.mxu0 }
 0x289   : > { %v4118_v6 = vpack.c.bf16 %v3394_v30, %v3393_v0  ;;  %v3151_v1 = vadd.f32 %v3150_v48, %v2958_v8  ;;  %v2960_v31 = vadd.f32 %v2959_v40, %v5906_v11  ;;  %v3236_v35 = vmax.f32 %v3147_v12, 0.0 }
 0x28a   : > { %v2961_v5 = vpop.f32.mrf.mxu1  ;;  %v3154_v39 = vpop.f32.mrf.mxu0  ;;  %v3395_v37 = vadd.f32 %v3331_v4, %v3235_v29  ;;  %v3337_v48 = vunpack.c.l.bf16 %v3279_v62  ;;  %v3338_v30 = vunpack.c.h.bf16 %v3279_v62  ;;  %v3340_v11 = vunpack.c.h.bf16 %v3280_v2 }
 0x28b   : > { %3627 = vst [vmem:[%s5635_s5 + $0xb0] sm:$0xff] %v4118_v6  ;;  %v3237_v52 = vmax.f32 %v3151_v1, 0.0  ;;  %v3153_v15 = vadd.f32 %v3152_v18, %v2960_v31  ;;  %v2962_v44 = vadd.f32 %v2961_v5, %v5907_v43  ;;  %v3396_v54 = vadd.f32 %v3332_v32, %v3236_v35  ;;  %v5912_v31 = vld [vmem:[#allocation26_spill] sm:$0xff] }
 0x28c   : > { %v2963_v58 = vpop.f32.mrf.mxu1  ;;  %v3156_v63 = vpop.f32.mrf.mxu0  ;;  %v3339_v32 = vunpack.c.l.bf16 %v3280_v2 }
 0x28d   : > { %v3238_v7 = vmax.f32 %v3153_v15, 0.0  ;;  %v3155_v16 = vadd.f32 %v3154_v39, %v2962_v44  ;;  %v2964_v42 = vadd.f32 %v2963_v58, %v5908_v14  ;;  %v4119_v47 = vpack.c.bf16 %v3396_v54, %v3395_v37 }
 0x28e   : > { %v3397_v10 = vadd.f32 %v3333_v27, %v3237_v52  ;;  %v2967_v3 = vpop.f32.mrf.mxu1  ;;  %v3160_v49 = vpop.f32.mrf.mxu0  ;;  %v3281_v27 = vld [vmem:[%s5623_s11 + $0xe0] sm:$0xff] }
 0x28f   : > { %v3398_v36 = vadd.f32 %v3334_v60, %v3238_v7  ;;  %v3239_v61 = vmax.f32 %v3155_v16, 0.0  ;;  %v3157_v53 = vadd.f32 %v3156_v63, %v2964_v42  ;;  %v2968_v45 = vadd.f32 %v2967_v3, %v5909_v20  ;;  %3628 = vst [vmem:[%s5635_s5 + $0xb8] sm:$0xff] %v4119_v47  ;;  %v5913_v42 = vld [vmem:[#allocation27_spill] sm:$0xff] }
 0x290   : > { %v2969_v33 = vpop.f32.mrf.mxu1  ;;  %v3162_v41 = vpop.f32.mrf.mxu0  ;;  %v3341_v37 = vunpack.c.l.bf16 %v3281_v27  ;;  %v3342_v54 = vunpack.c.h.bf16 %v3281_v27 }
 0x291   : > { %v4120_v26 = vpack.c.bf16 %v3398_v36, %v3397_v10  ;;  %v3240_v59 = vmax.f32 %v3157_v53, 0.0  ;;  %v3161_v22 = vadd.f32 %v3160_v49, %v2968_v45  ;;  %v2970_v50 = vadd.f32 %v2969_v33, %v5910_v38  ;;  %v3282_v49 = vld [vmem:[%s5623_s11 + $0xe8] sm:$0xff]  ;;  %v5914_v33 = vld [vmem:[#allocation28_spill] sm:$0xff] }
 0x292   : > { %v2971_v17 = vpop.f32.mrf.mxu1  ;;  %v3164_v13 = vpop.f32.mrf.mxu0  ;;  %v3399_v25 = vadd.f32 %v3335_v23, %v3239_v61  ;;  %v3344_v38 = vunpack.c.h.bf16 %v3282_v49 }
 0x293   : > { %3629 = vst [vmem:[%s5635_s5 + $0xc0] sm:$0xff] %v4120_v26  ;;  %v3400_v56 = vadd.f32 %v3336_v9, %v3240_v59  ;;  %v2972_v24 = vadd.f32 %v2971_v17, %v5911_v57  ;;  %v3241_v19 = vmax.f32 %v3161_v22, 0.0  ;;  %v3163_v0 = vadd.f32 %v3162_v41, %v2970_v50  ;;  %v3283_v26 = vld [vmem:[%s5623_s11 + $0xf0] sm:$0xff] }
 0x294   : > { %v2973_v51 = vpop.f32.mrf.mxu1  ;;  %v3166_v8 = vpop.f32.mrf.mxu0  ;;  %v3343_v22 = vunpack.c.l.bf16 %v3282_v49 }
 0x295   : > { %v4121_v28 = vpack.c.bf16 %v3400_v56, %v3399_v25  ;;  %v3165_v29 = vadd.f32 %v3164_v13, %v2972_v24  ;;  %v2974_v4 = vadd.f32 %v2973_v51, %v5595_v21  ;;  %v3242_v12 = vmax.f32 %v3163_v0, 0.0  ;;  %v5915_v56 = vld [vmem:[#allocation29_spill] sm:$0xff]  ;;  %v5916_v51 = vld [vmem:[#allocation30_spill] sm:$0xff] }
 0x296   : > { %v2977_v40 = vpop.f32.mrf.mxu1  ;;  %v3170_v18 = vpop.f32.mrf.mxu0  ;;  %v3401_v5 = vadd.f32 %v3337_v48, %v3241_v19  ;;  %v3345_v24 = vunpack.c.l.bf16 %v3283_v26 }
 0x297   : > { %3630 = vst [vmem:[%s5635_s5 + $0xc8] sm:$0xff] %v4121_v28  ;;  %v3243_v6 = vmax.f32 %v3165_v29, 0.0  ;;  %v3167_v1 = vadd.f32 %v3166_v8, %v2974_v4  ;;  %v2978_v35 = vadd.f32 %v2977_v40, %v5912_v31  ;;  %v3402_v39 = vadd.f32 %v3338_v30, %v3242_v12  ;;  %v3284_v28 = vld [vmem:[%s5623_s11 + $0xf8] sm:$0xff] }
 0x298   : > { %v2979_v52 = vpop.f32.mrf.mxu1  ;;  %v3172_v15 = vpop.f32.mrf.mxu0  ;;  %v3346_v30 = vunpack.c.h.bf16 %v3283_v26 }
 0x299   : > { %v3244_v60 = vmax.f32 %v3167_v1, 0.0  ;;  %v3171_v43 = vadd.f32 %v3170_v18, %v2978_v35  ;;  %v2980_v21 = vadd.f32 %v2979_v52, %v5601_v46  ;;  %v4122_v44 = vpack.c.bf16 %v3402_v39, %v3401_v5  ;;  %v5917_v18 = vld [vmem:[#allocation31_spill] sm:$0xff] }
 0x29a   : > { %v3403_v34 = vadd.f32 %v3339_v32, %v3243_v6  ;;  %v2981_v58 = vpop.f32.mrf.mxu1  ;;  %v3174_v63 = vpop.f32.mrf.mxu0  ;;  %v3348_v35 = vunpack.c.h.bf16 %v3284_v28 }
 0x29b   : > { %v3404_v7 = vadd.f32 %v3340_v11, %v3244_v60  ;;  %v3245_v16 = vmax.f32 %v3171_v43, 0.0  ;;  %v3173_v14 = vadd.f32 %v3172_v15, %v2980_v21  ;;  %v2982_v47 = vadd.f32 %v2981_v58, %v5913_v42  ;;  %3631 = vst [vmem:[%s5635_s5 + $0xd0] sm:$0xff] %v4122_v44 }
 0x29c   : > { %v2983_v10 = vpop.f32.mrf.mxu1  ;;  %v3176_v23 = vpop.f32.mrf.mxu0  ;;  %v3347_v11 = vunpack.c.l.bf16 %v3284_v28 }
 0x29d   : > { %v4123_v9 = vpack.c.bf16 %v3404_v7, %v3403_v34  ;;  %v3246_v3 = vmax.f32 %v3173_v14, 0.0  ;;  %v3175_v46 = vadd.f32 %v3174_v63, %v2982_v47  ;;  %v2984_v36 = vadd.f32 %v2983_v10, %v5607_v55 }
 0x29e   : > { %v2987_v61 = vpop.f32.mrf.mxu1  ;;  %v3180_v53 = vpop.f32.mrf.mxu0  ;;  %v3405_v20 = vadd.f32 %v3341_v37, %v3245_v16 }
 0x29f   : > { %3632 = vst [vmem:[%s5635_s5 + $0xd8] sm:$0xff] %v4123_v9  ;;  %v3406_v45 = vadd.f32 %v3342_v54, %v3246_v3  ;;  %v2988_v41 = vadd.f32 %v2987_v61, %v5914_v33  ;;  %v3247_v59 = vmax.f32 %v3175_v46, 0.0  ;;  %v3177_v62 = vadd.f32 %v3176_v23, %v2984_v36 }
 0x2a0   : > { %v2989_v50 = vpop.f32.mrf.mxu1  ;;  %v3182_v17 = vpop.f32.mrf.mxu0 }
 0x2a1   : > { %v4124_v13 = vpack.c.bf16 %v3406_v45, %v3405_v20  ;;  %v3181_v25 = vadd.f32 %v3180_v53, %v2988_v41  ;;  %v2990_v55 = vadd.f32 %v2989_v50, %v5915_v56  ;;  %v3248_v57 = vmax.f32 %v3177_v62, 0.0 }
 0x2a2   : > { %v2991_v2 = vpop.f32.mrf.mxu1  ;;  %v3184_v19 = vpop.f32.mrf.mxu0  ;;  %v3407_v29 = vadd.f32 %v3343_v22, %v3247_v59 }
 0x2a3   : > { %3633 = vst [vmem:[%s5635_s5 + $0xe0] sm:$0xff] %v4124_v13  ;;  %v3249_v48 = vmax.f32 %v3181_v25, 0.0  ;;  %v3183_v0 = vadd.f32 %v3182_v17, %v2990_v55  ;;  %v2992_v8 = vadd.f32 %v2991_v2, %v5916_v51  ;;  %v3408_v4 = vadd.f32 %v3344_v38, %v3248_v57 }
 0x2a4   : > { %v2993_v12 = vpop.f32.mrf.mxu1  ;;  %v3186_v31 = vpop.f32.mrf.mxu0 }
 0x2a5   : > { %v3250_v32 = vmax.f32 %v3183_v0, 0.0  ;;  %v3185_v40 = vadd.f32 %v3184_v19, %v2992_v8  ;;  %v2994_v6 = vadd.f32 %v2993_v12, %v5917_v18  ;;  %v4125_v1 = vpack.c.bf16 %v3408_v4, %v3407_v29 }
 0x2a6   : > { %v3409_v27 = vadd.f32 %v3345_v24, %v3249_v48 }
 0x2a7   : > { %v3410_v5 = vadd.f32 %v3346_v30, %v3250_v32  ;;  %v3251_v39 = vmax.f32 %v3185_v40, 0.0  ;;  %v3187_v52 = vadd.f32 %v3186_v31, %v2994_v6  ;;  %3634 = vst [vmem:[%s5635_s5 + $0xe8] sm:$0xff] %v4125_v1 }
 0x2a9   : > { %v4126_v15 = vpack.c.bf16 %v3410_v5, %v3409_v27  ;;  %v3252_v60 = vmax.f32 %v3187_v52, 0.0  ;;  %v3411_v43 = vadd.f32 %v3347_v11, %v3251_v39 }
 0x2ab   : > { %3635 = vst [vmem:[%s5635_s5 + $0xf0] sm:$0xff] %v4126_v15  ;;  %v3412_v21 = vadd.f32 %v3348_v35, %v3252_v60 }
 0x2ad   : > { %v4127_v44 = vpack.c.bf16 %v3412_v21, %v3411_v43 }
 0x2af   : > { %3636 = vst [vmem:[%s5635_s5 + $0xf8] sm:$0xff] %v4127_v44 }
 0x2b0   : > { %4755 = shalt.err (!%p4752_p9)
}
 0x2b1   : > { %s4756_s12 = scalar_lea.hbm %s5760_s27, 4096  ;;  %s4760_s26 = scalar_lea.hbm %s5810_s4, 8192 }
 0x2b2   : > { %p4757_p13 = scmp.ne.s32.totalorder %s5760_s27, %s4756_s12  ;;  %p4761_p0 = scmp.lt.s32.totalorder %s5760_s27, %s5810_s4 }
 0x2b3   : > { %p4762_p3 = scmp.lt.s32.totalorder %s4760_s26, %s4756_s12 }
 0x2b4   : > { %p4758_p7 = pnand %p4757_p13, %p5918_p1 }
 0x2b5   : > { %p4763_p11 = por %p4762_p3, %p4761_p0 }
 0x2b6   : > { %p4759_p6 = pneg %p4758_p7 }
 0x2b8   : > { %p4764_p12 = pnand %p4763_p11, %p4759_p6 }
 0x2ba   : > { %4767 = shalt.err (!%p4764_p12)
}
 0x2bb   : > { %s4822_s5 = smov 128   ;;  %s4823_s13 = smov 256  }
 0x2bc   : > { %s4824_s30 = smov 8  }
 0x2bd   : > { %4171 = dma.vmem_to_hbm [thread:$0]  (%p5918_p1), %s5762_s20, 4096, %s5760_s27, %s3638_s21, %s4822_s5, %s4823_s13, %s4824_s30  }
 0x2be PF: > { %s3666_s25 = sand.u32 1, %s4798_s15   ;;  %p5919_p8 = scmp.ne.s32.totalorder %s5822_s6, 0 }
 0x2bf   : > { %p5920_p10 = scmp.ge.s32.totalorder %s4810_s18, 2  ;;  %s3667_s10 = scalar_lea.sflag [#allocation4], %s3666_s25 }
 0x2c1   : > { %p4185_p2 = pnand %p5920_p10, %p5919_p8 }
 0x2c3   : > { %p4186_p4 = pneg %p4185_p2 }
 0x2c5   : > { %4793 = dma.done.wait (%p4186_p4), %s3667_s10, 4096  }
 0x2c6   : > { %4795 = vsyncadd (%p4186_p4), %s3667_s10, 4294963200  ;;  %p18_p5 = scmp.ge.s32.totalorder %s4871_s19, 4   ;;  %s5921_s15 = smov %s4802_s16 }
 0x2c7   : > { %s5922_s16 = smov %s4806_s17  ;;  %s5923_s17 = smov %s4882_s22 }
 0x2c8   : > { %s5924_s18 = smov %s4871_s19  ;;  %20 = sbr.rel (!%p18_p5) target bundleno = 6 (0x6), region = 97 }
 0x2cd   :  { %3672 = vsyncpa [#allocation3], 1 }
 0x2ce   :  { %3674 = vsyncpa [#allocation3 + $0x1], 1 }
 0x2cf   :  { %3675 = vsyncpa [#allocation6], 1 }
 0x2d0   :  { %3677 = vsyncpa [#allocation6 + $0x1], 1 }
 0x2d1   :  { %3678 = vsyncpa [#allocation4], 1 }
 0x2d2   :  { %3680 = vsyncpa [#allocation4 + $0x1], 1 }

</bundles_post_ra>
